<compile_context>
chip_gen: v7x
topology: tpu7x:2x2x1
jax: 0.10.0
libtpu: 0.0.40
codegen_flags: <defaults>
</compile_context>

<pallas_src>
import functools

import jax
import jax.numpy as jnp
from jax.experimental import pallas as pl
from jax.experimental.pallas import tpu as pltpu

# Logical MLP dimensions (fixed by the module definition).
DIMS = [784, 512, 256, 128, 64, 10]
# Lane-aligned (multiple-of-128) padded dimensions used inside the kernel.
PDIMS = [896, 512, 256, 128, 128, 128]


def mlp_kernel(x_ref,
               w1_ref, b1_ref,
               w2_ref, b2_ref,
               w3_ref, b3_ref,
               w4_ref, b4_ref,
               w5_ref, b5_ref,
               o_ref):
    """Whole 5-layer MLP fused into one kernel.

    x_ref:  [T, 896]  bf16 (zero-padded features 784->896)
    wN_ref: bf16 weights, (in_pad, out_pad)
    bN_ref: f32 biases, (1, out_pad)  (zero-padded)
    o_ref:  [T, 128]  f32 (only first 10 columns are real logits)
    """
    def layer(h_bf16, w_ref, b_ref, relu):
        # bf16 x bf16 -> f32 accumulation on the MXU.
        acc = jnp.dot(h_bf16, w_ref[...], preferred_element_type=jnp.float32)
        acc = acc + b_ref[...]          # f32 elementwise (v5e-safe)
        if relu:
            acc = jnp.maximum(acc, 0.0)
        return acc

    h = x_ref[...]                                        # bf16 [T, 896]
    h = layer(h, w1_ref, b1_ref, relu=True).astype(jnp.bfloat16)
    h = layer(h, w2_ref, b2_ref, relu=True).astype(jnp.bfloat16)
    h = layer(h, w3_ref, b3_ref, relu=True).astype(jnp.bfloat16)
    h = layer(h, w4_ref, b4_ref, relu=True).astype(jnp.bfloat16)
    o_ref[...] = layer(h, w5_ref, b5_ref, relu=False).astype(o_ref.dtype)


def _flatten_padded_params(params):
    """(out,in) torch-style weights -> padded bf16 (in,out); biases -> padded f32 (1,out)."""
    flat = []
    for li, (w, b) in enumerate(params):
        d_in, d_out = DIMS[li], DIMS[li + 1]
        p_in, p_out = PDIMS[li], PDIMS[li + 1]
        wt = jnp.asarray(w, jnp.float32).T                      # (in, out)
        wt = jnp.pad(wt, ((0, p_in - d_in), (0, p_out - d_out)))
        flat.append(wt.astype(jnp.bfloat16))
        bb = jnp.pad(jnp.asarray(b, jnp.float32), (0, p_out - d_out))
        flat.append(bb[None, :])                                # (1, p_out) f32
    return flat


@functools.partial(jax.jit, static_argnames=("batch_tile",))
def net_forward(x, params, batch_tile=256):
    """x: [B, 1, 28, 28] (or anything flattening to [B, 784])."""
    x2d = x.reshape(-1, DIMS[0]).astype(jnp.float32)
    b = x2d.shape[0]
    b_pad = pl.cdiv(b, batch_tile) * batch_tile
    # pad batch up to a tile multiple and features 784 -> 896 (7*128), then bf16
    x2d = jnp.pad(x2d, ((0, b_pad - b), (0, PDIMS[0] - DIMS[0])))
    x2d = x2d.astype(jnp.bfloat16)

    flat_args = _flatten_padded_params(params)

    in_specs = [pl.BlockSpec((batch_tile, PDIMS[0]), lambda i: (i, 0))]
    for li in range(5):
        p_in, p_out = PDIMS[li], PDIMS[li + 1]
        # weights / biases are grid-invariant (constant index_map) -> stay resident
        in_specs.append(pl.BlockSpec((p_in, p_out), lambda i: (0, 0)))
        in_specs.append(pl.BlockSpec((1, p_out), lambda i: (0, 0)))

    out = pl.pallas_call(
        mlp_kernel,
        out_shape=jax.ShapeDtypeStruct((b_pad, PDIMS[-1]), jnp.float32),
        grid_spec=pltpu.PrefetchScalarGridSpec(
            num_scalar_prefetch=0,
            grid=(b_pad // batch_tile,),
            in_specs=in_specs,
            out_specs=pl.BlockSpec((batch_tile, PDIMS[-1]), lambda i: (i, 0)),
        ),
        compiler_params=pltpu.CompilerParams(
            dimension_semantics=("parallel",),
            vmem_limit_bytes=48 * 1024 * 1024,
        ),
    )(x2d, *flat_args)

    # strip batch padding and the lane padding of the 10-wide logits
    return out[:b, :DIMS[-1]]


def init_params(key):
    """torch.nn.Linear default init: U(-1/sqrt(fan_in), 1/sqrt(fan_in)), weight (out,in)."""
    params = []
    for li in range(5):
        d_in, d_out = DIMS[li], DIMS[li + 1]
        key, kw, kb = jax.random.split(key, 3)
        bound = 1.0 / (d_in ** 0.5)
        w = jax.random.uniform(kw, (d_out, d_in), jnp.float32, -bound, bound)
        b = jax.random.uniform(kb, (d_out,), jnp.float32, -bound, bound)
        params.append((w, b))
    return params


def reference_forward_f32(x, params):
    """Pure-JAX f32 reference replicating the PyTorch forward semantics."""
    h = x.reshape(-1, DIMS[0]).astype(jnp.float32)
    for li, (w, b) in enumerate(params):
        h = h @ w.T + b
        if li < 4:
            h = jnp.maximum(h, 0.0)
    return h


def reference_forward_bf16(x, params):
    """Same math but with the kernel's bf16-in / f32-accumulate numerics."""
    h = x.reshape(-1, DIMS[0]).astype(jnp.float32)
    for li, (w, b) in enumerate(params):
        h = jnp.dot(h.astype(jnp.bfloat16), w.T.astype(jnp.bfloat16),
                    preferred_element_type=jnp.float32) + b
        if li < 4:
            h = jnp.maximum(h, 0.0)
    return h


if __name__ == "__main__":
    key = jax.random.PRNGKey(0)
    kp, kx = jax.random.split(key)
    params = init_params(kp)

    # MNIST-shaped batch, NCHW; 300 rows -> padded to 512 -> 2 grid steps of 256
    batch = 300
    x = jax.random.normal(kx, (batch, 1, 28, 28), dtype=jnp.float32)

    out = net_forward(x, params)
    jax.block_until_ready(out)
    assert out.shape == (batch, 10), out.shape

    # tight check vs a reference with matching bf16 numerics
    ref_bf16 = reference_forward_bf16(x, params)
    assert jnp.allclose(out, ref_bf16, atol=2e-3, rtol=2e-3), \
        float(jnp.max(jnp.abs(out - ref_bf16)))

    # loose sanity check vs the exact f32 PyTorch-semantics reference
    ref_f32 = reference_forward_f32(x, params)
    assert jnp.allclose(out, ref_f32, atol=5e-2, rtol=5e-2), \
        float(jnp.max(jnp.abs(out - ref_f32)))

    print("KERNEL_OK")
</pallas_src>

<mosaic_0001>
module attributes {stable_mosaic.version = 11 : i64} {
  func.func @mlp_kernel(%arg0: i32, %arg1: memref<256x896xbf16, #tpu.memory_space<vmem>>, %arg2: memref<896x512xbf16, #tpu.memory_space<vmem>>, %arg3: memref<1x512xf32, #tpu.memory_space<vmem>>, %arg4: memref<512x256xbf16, #tpu.memory_space<vmem>>, %arg5: memref<1x256xf32, #tpu.memory_space<vmem>>, %arg6: memref<256x128xbf16, #tpu.memory_space<vmem>>, %arg7: memref<1x128xf32, #tpu.memory_space<vmem>>, %arg8: memref<128x128xbf16, #tpu.memory_space<vmem>>, %arg9: memref<1x128xf32, #tpu.memory_space<vmem>>, %arg10: memref<128x128xbf16, #tpu.memory_space<vmem>>, %arg11: memref<1x128xf32, #tpu.memory_space<vmem>>, %arg12: memref<256x128xf32, #tpu.memory_space<vmem>>) attributes {dimension_semantics = [#tpu.dimension_semantics<parallel>], iteration_bounds = array<i64: 2>, scalar_prefetch = 0 : i64, scratch_operands = 0 : i64, tpu.core_type = #tpu.core_type<tc>, window_params = [{transform_indices = @transform_0, window_bounds = array<i64: 256, 896>}, {pipeline_mode = #tpu.pipeline_mode<synchronous>, transform_indices = @transform_1, window_bounds = array<i64: 896, 512>}, {pipeline_mode = #tpu.pipeline_mode<synchronous>, transform_indices = @transform_2, window_bounds = array<i64: 1, 512>}, {pipeline_mode = #tpu.pipeline_mode<synchronous>, transform_indices = @transform_3, window_bounds = array<i64: 512, 256>}, {pipeline_mode = #tpu.pipeline_mode<synchronous>, transform_indices = @transform_4, window_bounds = array<i64: 1, 256>}, {pipeline_mode = #tpu.pipeline_mode<synchronous>, transform_indices = @transform_5, window_bounds = array<i64: 256, 128>}, {pipeline_mode = #tpu.pipeline_mode<synchronous>, transform_indices = @transform_6, window_bounds = array<i64: 1, 128>}, {pipeline_mode = #tpu.pipeline_mode<synchronous>, transform_indices = @transform_7, window_bounds = array<i64: 128, 128>}, {pipeline_mode = #tpu.pipeline_mode<synchronous>, transform_indices = @transform_8, window_bounds = array<i64: 1, 128>}, {pipeline_mode = #tpu.pipeline_mode<synchronous>, transform_indices = @transform_9, window_bounds = array<i64: 128, 128>}, {pipeline_mode = #tpu.pipeline_mode<synchronous>, transform_indices = @transform_10, window_bounds = array<i64: 1, 128>}, {transform_indices = @transform_11, window_bounds = array<i64: 256, 128>}]} {
    %c0 = arith.constant 0 : index
    %c0_0 = arith.constant 0 : index
    %0 = vector.load %arg1[%c0, %c0_0] : memref<256x896xbf16, #tpu.memory_space<vmem>>, vector<256x896xbf16>
    %c0_1 = arith.constant 0 : index
    %c0_2 = arith.constant 0 : index
    %1 = vector.load %arg2[%c0_1, %c0_2] : memref<896x512xbf16, #tpu.memory_space<vmem>>, vector<896x512xbf16>
    %cst = arith.constant dense<0.000000e+00> : vector<256x512xf32>
    %2 = tpu.matmul %0, %1, %cst {dimension_numbers = #tpu.dot_dimension_numbers<[1], [0], [0], [1], [0, 0, 1, 1], [], []>} : vector<256x896xbf16>, vector<896x512xbf16>, vector<256x512xf32> -> vector<256x512xf32>
    %c0_3 = arith.constant 0 : index
    %c0_4 = arith.constant 0 : index
    %3 = vector.load %arg3[%c0_3, %c0_4] : memref<1x512xf32, #tpu.memory_space<vmem>>, vector<1x512xf32>
    %4 = vector.broadcast %3 : vector<1x512xf32> to vector<256x512xf32>
    %5 = arith.addf %2, %4 : vector<256x512xf32>
    %cst_5 = arith.constant 0.000000e+00 : f32
    %6 = vector.broadcast %cst_5 : f32 to vector<256x512xf32>
    %7 = arith.maximumf %5, %6 : vector<256x512xf32>
    %8 = arith.truncf %7 : vector<256x512xf32> to vector<256x512xbf16>
    %c0_6 = arith.constant 0 : index
    %c0_7 = arith.constant 0 : index
    %9 = vector.load %arg4[%c0_6, %c0_7] : memref<512x256xbf16, #tpu.memory_space<vmem>>, vector<512x256xbf16>
    %cst_8 = arith.constant dense<0.000000e+00> : vector<256x256xf32>
    %10 = tpu.matmul %8, %9, %cst_8 {dimension_numbers = #tpu.dot_dimension_numbers<[1], [0], [0], [1], [0, 0, 1, 1], [], []>} : vector<256x512xbf16>, vector<512x256xbf16>, vector<256x256xf32> -> vector<256x256xf32>
    %c0_9 = arith.constant 0 : index
    %c0_10 = arith.constant 0 : index
    %11 = vector.load %arg5[%c0_9, %c0_10] : memref<1x256xf32, #tpu.memory_space<vmem>>, vector<1x256xf32>
    %12 = vector.broadcast %11 : vector<1x256xf32> to vector<256x256xf32>
    %13 = arith.addf %10, %12 : vector<256x256xf32>
    %cst_11 = arith.constant 0.000000e+00 : f32
    %14 = vector.broadcast %cst_11 : f32 to vector<256x256xf32>
    %15 = arith.maximumf %13, %14 : vector<256x256xf32>
    %16 = arith.truncf %15 : vector<256x256xf32> to vector<256x256xbf16>
    %c0_12 = arith.constant 0 : index
    %c0_13 = arith.constant 0 : index
    %17 = vector.load %arg6[%c0_12, %c0_13] : memref<256x128xbf16, #tpu.memory_space<vmem>>, vector<256x128xbf16>
    %cst_14 = arith.constant dense<0.000000e+00> : vector<256x128xf32>
    %18 = tpu.matmul %16, %17, %cst_14 {dimension_numbers = #tpu.dot_dimension_numbers<[1], [0], [0], [1], [0, 0, 1, 1], [], []>} : vector<256x256xbf16>, vector<256x128xbf16>, vector<256x128xf32> -> vector<256x128xf32>
    %c0_15 = arith.constant 0 : index
    %c0_16 = arith.constant 0 : index
    %19 = vector.load %arg7[%c0_15, %c0_16] : memref<1x128xf32, #tpu.memory_space<vmem>>, vector<1x128xf32>
    %20 = vector.broadcast %19 : vector<1x128xf32> to vector<256x128xf32>
    %21 = arith.addf %18, %20 : vector<256x128xf32>
    %cst_17 = arith.constant 0.000000e+00 : f32
    %22 = vector.broadcast %cst_17 : f32 to vector<256x128xf32>
    %23 = arith.maximumf %21, %22 : vector<256x128xf32>
    %24 = arith.truncf %23 : vector<256x128xf32> to vector<256x128xbf16>
    %c0_18 = arith.constant 0 : index
    %c0_19 = arith.constant 0 : index
    %25 = vector.load %arg8[%c0_18, %c0_19] : memref<128x128xbf16, #tpu.memory_space<vmem>>, vector<128x128xbf16>
    %cst_20 = arith.constant dense<0.000000e+00> : vector<256x128xf32>
    %26 = tpu.matmul %24, %25, %cst_20 {dimension_numbers = #tpu.dot_dimension_numbers<[1], [0], [0], [1], [0, 0, 1, 1], [], []>} : vector<256x128xbf16>, vector<128x128xbf16>, vector<256x128xf32> -> vector<256x128xf32>
    %c0_21 = arith.constant 0 : index
    %c0_22 = arith.constant 0 : index
    %27 = vector.load %arg9[%c0_21, %c0_22] : memref<1x128xf32, #tpu.memory_space<vmem>>, vector<1x128xf32>
    %28 = vector.broadcast %27 : vector<1x128xf32> to vector<256x128xf32>
    %29 = arith.addf %26, %28 : vector<256x128xf32>
    %cst_23 = arith.constant 0.000000e+00 : f32
    %30 = vector.broadcast %cst_23 : f32 to vector<256x128xf32>
    %31 = arith.maximumf %29, %30 : vector<256x128xf32>
    %32 = arith.truncf %31 : vector<256x128xf32> to vector<256x128xbf16>
    %c0_24 = arith.constant 0 : index
    %c0_25 = arith.constant 0 : index
    %33 = vector.load %arg10[%c0_24, %c0_25] : memref<128x128xbf16, #tpu.memory_space<vmem>>, vector<128x128xbf16>
    %cst_26 = arith.constant dense<0.000000e+00> : vector<256x128xf32>
    %34 = tpu.matmul %32, %33, %cst_26 {dimension_numbers = #tpu.dot_dimension_numbers<[1], [0], [0], [1], [0, 0, 1, 1], [], []>} : vector<256x128xbf16>, vector<128x128xbf16>, vector<256x128xf32> -> vector<256x128xf32>
    %c0_27 = arith.constant 0 : index
    %c0_28 = arith.constant 0 : index
    %35 = vector.load %arg11[%c0_27, %c0_28] : memref<1x128xf32, #tpu.memory_space<vmem>>, vector<1x128xf32>
    %36 = vector.broadcast %35 : vector<1x128xf32> to vector<256x128xf32>
    %37 = arith.addf %34, %36 : vector<256x128xf32>
    %c0_29 = arith.constant 0 : index
    %c0_30 = arith.constant 0 : index
    %38 = vector.load %arg12[%c0_29, %c0_30] : memref<256x128xf32, #tpu.memory_space<vmem>>, vector<256x128xf32>
    tpu.vector_store %arg12[%c0_29, %c0_30], %37 {strides = array<i32>} : memref<256x128xf32, #tpu.memory_space<vmem>>, vector<256x128xf32>,
    return
  }
  func.func @transform_0(%arg0: i32) -> (i32, i32) {
    %c0_i32 = arith.constant 0 : i32
    %c0_i32_0 = arith.constant 0 : i32
    return %arg0, %c0_i32 : i32, i32
  }
  func.func @transform_1(%arg0: i32) -> (i32, i32) {
    %c0_i32 = arith.constant 0 : i32
    %c0_i32_0 = arith.constant 0 : i32
    %c0_i32_1 = arith.constant 0 : i32
    return %c0_i32, %c0_i32_0 : i32, i32
  }
  func.func @transform_2(%arg0: i32) -> (i32, i32) {
    %c0_i32 = arith.constant 0 : i32
    %c0_i32_0 = arith.constant 0 : i32
    %c0_i32_1 = arith.constant 0 : i32
    return %c0_i32, %c0_i32_0 : i32, i32
  }
  func.func @transform_3(%arg0: i32) -> (i32, i32) {
    %c0_i32 = arith.constant 0 : i32
    %c0_i32_0 = arith.constant 0 : i32
    %c0_i32_1 = arith.constant 0 : i32
    return %c0_i32, %c0_i32_0 : i32, i32
  }
  func.func @transform_4(%arg0: i32) -> (i32, i32) {
    %c0_i32 = arith.constant 0 : i32
    %c0_i32_0 = arith.constant 0 : i32
    %c0_i32_1 = arith.constant 0 : i32
    return %c0_i32, %c0_i32_0 : i32, i32
  }
  func.func @transform_5(%arg0: i32) -> (i32, i32) {
    %c0_i32 = arith.constant 0 : i32
    %c0_i32_0 = arith.constant 0 : i32
    %c0_i32_1 = arith.constant 0 : i32
    return %c0_i32, %c0_i32_0 : i32, i32
  }
  func.func @transform_6(%arg0: i32) -> (i32, i32) {
    %c0_i32 = arith.constant 0 : i32
    %c0_i32_0 = arith.constant 0 : i32
    %c0_i32_1 = arith.constant 0 : i32
    return %c0_i32, %c0_i32_0 : i32, i32
  }
  func.func @transform_7(%arg0: i32) -> (i32, i32) {
    %c0_i32 = arith.constant 0 : i32
    %c0_i32_0 = arith.constant 0 : i32
    %c0_i32_1 = arith.constant 0 : i32
    return %c0_i32, %c0_i32_0 : i32, i32
  }
  func.func @transform_8(%arg0: i32) -> (i32, i32) {
    %c0_i32 = arith.constant 0 : i32
    %c0_i32_0 = arith.constant 0 : i32
    %c0_i32_1 = arith.constant 0 : i32
    return %c0_i32, %c0_i32_0 : i32, i32
  }
  func.func @transform_9(%arg0: i32) -> (i32, i32) {
    %c0_i32 = arith.constant 0 : i32
    %c0_i32_0 = arith.constant 0 : i32
    %c0_i32_1 = arith.constant 0 : i32
    return %c0_i32, %c0_i32_0 : i32, i32
  }
  func.func @transform_10(%arg0: i32) -> (i32, i32) {
    %c0_i32 = arith.constant 0 : i32
    %c0_i32_0 = arith.constant 0 : i32
    %c0_i32_1 = arith.constant 0 : i32
    return %c0_i32, %c0_i32_0 : i32, i32
  }
  func.func @transform_11(%arg0: i32) -> (i32, i32) {
    %c0_i32 = arith.constant 0 : i32
    %c0_i32_0 = arith.constant 0 : i32
    return %arg0, %c0_i32 : i32, i32
  }
}

</mosaic_0001>

<bundles_post_ra>
// kernel: net_forward.1
= control target key start
LH: loop header
LB: loop body
LE: loop exit
PB: predicated region body
PF: predicated region fallthrough
CT: control target
= control target key end

     0   :  { %s8067_s17 = smov 0   ;;  %s9655_s0 = inlined_call_operand.vmem [shape: bf16[512,896], index: 0, kind: input, shape index: {}]   ;;  %s9656_s1 = inlined_call_operand.vmem [shape: bf16[896,512], index: 1, kind: input, shape index: {}]   ;;  %s9657_s2 = inlined_call_operand.vmem [shape: f32[1,512], index: 2, kind: input, shape index: {}]   ;;  %s9658_s3 = inlined_call_operand.vmem [shape: bf16[512,256], index: 3, kind: input, shape index: {}]   ;;  %s9659_s4 = inlined_call_operand.vmem [shape: f32[1,256], index: 4, kind: input, shape index: {}]   ;;  %s9660_s5 = inlined_call_operand.vmem [shape: bf16[256,128], index: 5, kind: input, shape index: {}]   ;;  %s9661_s6 = inlined_call_operand.vmem [shape: f32[1,128], index: 6, kind: input, shape index: {}]   ;;  %s9662_s7 = inlined_call_operand.vmem [shape: bf16[128,128], index: 7, kind: input, shape index: {}]   ;;  %s9663_s8 = inlined_call_operand.vmem [shape: f32[1,128], index: 8, kind: input, shape index: {}]   ;;  %s9664_s9 = inlined_call_operand.vmem [shape: bf16[128,128], index: 9, kind: input, shape index: {}]   ;;  %s9665_s10 = inlined_call_operand.vmem [shape: f32[1,128], index: 10, kind: input, shape index: {}]   ;;  %s9666_s11 = inlined_call_operand.vmem [shape: f32[512,128], index: 11, kind: output, shape index: {}]  }
   0x1 LB: > { %s6022_s18 = sadd.s32 4294967295, %s8004_s17   ;;  %p6026_p0 = scmp.ge.s32.totalorder %s8004_s17, 1  ;;  %s8004_s17 = sphi %s8067_s17, %s21_s17  }
   0x2   : > { %p339_p1 = scmp.lt.s32.totalorder %s8004_s17, 3 }
   0x4   : > { %p340_p2 = pnand %p6026_p0, %p339_p1 }
   0x5   : > { %v7374_v0 = vld [vmem:[%s9656_s1 + $0x4] ss:$16 sps:$4 sm:$0xff] (!%p340_p2)   ;;  %v7376_v1 = vld [vmem:[%s9656_s1 + $0xc] ss:$16 sps:$4 sm:$0xff] (!%p340_p2)   ;;  %v7378_v2 = vld [vmem:[%s9656_s1] ss:$16 sps:$4 sm:$0xff] (!%p340_p2)  }
   0x6   : > { %343 = sbr.rel (%p340_p2) target bundleno = 1809 (0x711), region = 64  ;;  %2464 = vmatprep.subr.bf16.mxu0 (!%p340_p2), %v7374_v0  ;;  %v7379_v3 = vld [vmem:[%s9656_s1 + $0x8] ss:$16 sps:$4 sm:$0xff] (!%p340_p2)   ;;  %3236 = vmatprep.subr.bf16.mxu1 (!%p340_p2), %v7376_v1  ;;  %v7380_v4 = vld [vmem:[%s9656_s1 + $0x24] ss:$16 sps:$4 sm:$0xff] (!%p340_p2)   ;;  %s6027_s28 = sshll.u32 (!%p340_p2), %s6022_s18, 5 }
   0x7   : > { %2465 = vmatpush1.bf16.msra.mxu0 (!%p340_p2), %v7378_v2  ;;  %3237 = vmatpush1.bf16.msra.mxu1 (!%p340_p2), %v7379_v3  ;;  %v7382_v5 = vld [vmem:[%s9656_s1 + $0x2c] ss:$16 sps:$4 sm:$0xff] (!%p340_p2)   ;;  %v7384_v6 = vld [vmem:[%s9656_s1 + $0x20] ss:$16 sps:$4 sm:$0xff] (!%p340_p2)   ;;  %v7385_v7 = vld [vmem:[%s9656_s1 + $0x28] ss:$16 sps:$4 sm:$0xff] (!%p340_p2)  }
   0x8   : > { %2466 = vmatprep.subr.bf16.mxu0 (!%p340_p2), %v7380_v4  ;;  %3238 = vmatprep.subr.bf16.mxu1 (!%p340_p2), %v7382_v5  ;;  %v7386_v8 = vld [vmem:[%s9656_s1 + $0x44] ss:$16 sps:$4 sm:$0xff] (!%p340_p2)   ;;  %v7388_v9 = vld [vmem:[%s9656_s1 + $0x4c] ss:$16 sps:$4 sm:$0xff] (!%p340_p2)   ;;  %v7390_v10 = vld [vmem:[%s9656_s1 + $0x40] ss:$16 sps:$4 sm:$0xff] (!%p340_p2)  }
   0x9   : > { %v7391_v11 = vld [vmem:[%s9656_s1 + $0x48] ss:$16 sps:$4 sm:$0xff] (!%p340_p2)   ;;  %v7392_v12 = vld [vmem:[%s9656_s1 + $0x64] ss:$16 sps:$4 sm:$0xff] (!%p340_p2)   ;;  %v7394_v13 = vld [vmem:[%s9656_s1 + $0x6c] ss:$16 sps:$4 sm:$0xff] (!%p340_p2)  }
   0xa   : > { %v7396_v14 = vld [vmem:[%s9656_s1 + $0x60] ss:$16 sps:$4 sm:$0xff] (!%p340_p2)   ;;  %v7397_v15 = vld [vmem:[%s9656_s1 + $0x68] ss:$16 sps:$4 sm:$0xff] (!%p340_p2)   ;;  %v7398_v16 = vld [vmem:[%s9656_s1 + $0x84] ss:$16 sps:$4 sm:$0xff] (!%p340_p2)  }
   0xb   : > { %2467 = vmatpush1.bf16.msra.mxu0 (!%p340_p2), %v7384_v6  ;;  %3239 = vmatpush1.bf16.msra.mxu1 (!%p340_p2), %v7385_v7  ;;  %v7400_v17 = vld [vmem:[%s9656_s1 + $0x8c] ss:$16 sps:$4 sm:$0xff] (!%p340_p2)   ;;  %v7402_v18 = vld [vmem:[%s9656_s1 + $0x80] ss:$16 sps:$4 sm:$0xff] (!%p340_p2)   ;;  %v7403_v19 = vld [vmem:[%s9656_s1 + $0x88] ss:$16 sps:$4 sm:$0xff] (!%p340_p2)  }
   0xc   : > { %2468 = vmatprep.subr.bf16.mxu0 (!%p340_p2), %v7386_v8  ;;  %3240 = vmatprep.subr.bf16.mxu1 (!%p340_p2), %v7388_v9  ;;  %v7404_v20 = vld [vmem:[%s9656_s1 + $0xa4] ss:$16 sps:$4 sm:$0xff] (!%p340_p2)   ;;  %v7406_v21 = vld [vmem:[%s9656_s1 + $0xac] ss:$16 sps:$4 sm:$0xff] (!%p340_p2)   ;;  %v7408_v22 = vld [vmem:[%s9656_s1 + $0xa0] ss:$16 sps:$4 sm:$0xff] (!%p340_p2)  }
   0xd   : > { %v7409_v23 = vld [vmem:[%s9656_s1 + $0xa8] ss:$16 sps:$4 sm:$0xff]   ;;  %v7410_v24 = vld [vmem:[%s9656_s1 + $0xc4] ss:$16 sps:$4 sm:$0xff]   ;;  %v7412_v25 = vld [vmem:[%s9656_s1 + $0xcc] ss:$16 sps:$4 sm:$0xff]  }
   0xe   : > { %v7414_v26 = vld [vmem:[%s9656_s1 + $0xc0] ss:$16 sps:$4 sm:$0xff]   ;;  %v7415_v27 = vld [vmem:[%s9656_s1 + $0xc8] ss:$16 sps:$4 sm:$0xff]   ;;  %v7416_v28 = vld [vmem:[%s9656_s1 + $0xe4] ss:$16 sps:$4 sm:$0xff]  }
   0xf   : > { %2469 = vmatpush1.bf16.msra.mxu0 %v7390_v10  ;;  %3241 = vmatpush1.bf16.msra.mxu1 %v7391_v11  ;;  %v7418_v29 = vld [vmem:[%s9656_s1 + $0xec] ss:$16 sps:$4 sm:$0xff]   ;;  %v7420_v30 = vld [vmem:[%s9656_s1 + $0xe0] ss:$16 sps:$4 sm:$0xff]   ;;  %v7421_v31 = vld [vmem:[%s9656_s1 + $0xe8] ss:$16 sps:$4 sm:$0xff]  }
  0x10   : > { %2470 = vmatprep.subr.bf16.mxu0 %v7392_v12  ;;  %3242 = vmatprep.subr.bf16.mxu1 %v7394_v13  ;;  %v7422_v32 = vld [vmem:[%s9656_s1 + $0x104] ss:$16 sps:$4 sm:$0xff]   ;;  %p381_p3 = scmp.lt.s32.totalorder %s6027_s28, 63  ;;  %v7424_v33 = vld [vmem:[%s9656_s1 + $0x10c] ss:$16 sps:$4 sm:$0xff]  }
  0x11   : > { %v7426_v34 = vld [vmem:[%s9656_s1 + $0x100] ss:$16 sps:$4 sm:$0xff]   ;;  %v7427_v35 = vld [vmem:[%s9656_s1 + $0x108] ss:$16 sps:$4 sm:$0xff]   ;;  %v7428_v36 = vld [vmem:[%s9656_s1 + $0x124] ss:$16 sps:$4 sm:$0xff]  }
  0x12   : > { %s9668_s28 = smov (!%p381_p3, %s6027_s28), 63  ;;  %v7430_v37 = vld [vmem:[%s9656_s1 + $0x12c] ss:$16 sps:$4 sm:$0xff]   ;;  %v7432_v38 = vld [vmem:[%s9656_s1 + $0x120] ss:$16 sps:$4 sm:$0xff]  }
  0x13   : > { %2471 = vmatpush1.bf16.msra.mxu0 %v7396_v14  ;;  %3243 = vmatpush1.bf16.msra.mxu1 %v7397_v15  ;;  %v7433_v39 = vld [vmem:[%s9656_s1 + $0x128] ss:$16 sps:$4 sm:$0xff]   ;;  %v7434_v40 = vld [vmem:[%s9656_s1 + $0x144] ss:$16 sps:$4 sm:$0xff]   ;;  %s7364_s15 = smul.u32 28, %s9668_s28 }
  0x14   : > { %2472 = vmatprep.subr.bf16.mxu0 %v7398_v16  ;;  %3244 = vmatprep.subr.bf16.mxu1 %v7400_v17  ;;  %v7436_v41 = vld [vmem:[%s9656_s1 + $0x14c] ss:$16 sps:$4 sm:$0xff]   ;;  %v7438_v42 = vld [vmem:[%s9656_s1 + $0x140] ss:$16 sps:$4 sm:$0xff]   ;;  %v7439_v43 = vld [vmem:[%s9656_s1 + $0x148] ss:$16 sps:$4 sm:$0xff]  }
  0x15   : > { %v7440_v44 = vld [vmem:[%s9656_s1 + $0x164] ss:$16 sps:$4 sm:$0xff]   ;;  %s8218_s27 = scalar_lea.vmem %s9655_s0, %s7364_s15  ;;  %v7442_v45 = vld [vmem:[%s9656_s1 + $0x16c] ss:$16 sps:$4 sm:$0xff]   ;;  %v7444_v46 = vld [vmem:[%s9656_s1 + $0x160] ss:$16 sps:$4 sm:$0xff]  }
  0x16   : > { %v7445_v47 = vld [vmem:[%s9656_s1 + $0x168] ss:$16 sps:$4 sm:$0xff]   ;;  %v7472_v48 = vld [vmem:[%s8218_s27 + $0x4] ss:$28 sps:$4 sm:$0xff]   ;;  %v7448_v50 = vld [vmem:[%s9656_s1 + $0x18c] ss:$16 sps:$4 sm:$0xff]  }
  0x17   : > { %2473 = vmatpush1.bf16.msra.mxu0 %v7402_v18  ;;  %3245 = vmatpush1.bf16.msra.mxu1 %v7403_v19  ;;  %v7446_v49 = vld [vmem:[%s9656_s1 + $0x184] ss:$16 sps:$4 sm:$0xff]   ;;  %v7450_v51 = vld [vmem:[%s9656_s1 + $0x180] ss:$16 sps:$4 sm:$0xff]   ;;  %v7451_v52 = vld [vmem:[%s9656_s1 + $0x188] ss:$16 sps:$4 sm:$0xff]  }
  0x18   : > { %2474 = vmatprep.subr.bf16.mxu0 %v7404_v20  ;;  %3246 = vmatprep.subr.bf16.mxu1 %v7406_v21  ;;  %v7452_v53 = vld [vmem:[%s9656_s1 + $0x1a4] ss:$16 sps:$4 sm:$0xff]   ;;  %v7454_v54 = vld [vmem:[%s9656_s1 + $0x1ac] ss:$16 sps:$4 sm:$0xff]   ;;  %v7456_v55 = vld [vmem:[%s9656_s1 + $0x1a0] ss:$16 sps:$4 sm:$0xff]  }
  0x19   : > { %2496 = vmatprep.mubr.bf16.mxu0 %v7472_v48  ;;  %3268 = vmatprep.mubr.bf16.mxu1 %v7472_v48  ;;  %v7457_v56 = vld [vmem:[%s9656_s1 + $0x1a8] ss:$16 sps:$4 sm:$0xff]   ;;  %v7458_v57 = vld [vmem:[%s9656_s1 + $0x1c4] ss:$16 sps:$4 sm:$0xff]   ;;  %v7460_v58 = vld [vmem:[%s9656_s1 + $0x1cc] ss:$16 sps:$4 sm:$0xff]  }
  0x1a   : > { %v7462_v59 = vld [vmem:[%s9656_s1 + $0x1c0] ss:$16 sps:$4 sm:$0xff]   ;;  %v7463_v60 = vld [vmem:[%s9656_s1 + $0x1c8] ss:$16 sps:$4 sm:$0xff]   ;;  %v7464_v61 = vld [vmem:[%s9656_s1 + $0x1e4] ss:$16 sps:$4 sm:$0xff]  }
  0x1b   : > { %2475 = vmatpush1.bf16.msra.mxu0 %v7408_v22  ;;  %3247 = vmatpush1.bf16.msra.mxu1 %v7409_v23  ;;  %v7466_v62 = vld [vmem:[%s9656_s1 + $0x1ec] ss:$16 sps:$4 sm:$0xff]   ;;  %v7468_v63 = vld [vmem:[%s9656_s1 + $0x1e0] ss:$16 sps:$4 sm:$0xff]   ;;  %v7469_v0 = vld [vmem:[%s9656_s1 + $0x1e8] ss:$16 sps:$4 sm:$0xff]  }
  0x1c   : > { %2476 = vmatprep.subr.bf16.mxu0 %v7410_v24  ;;  %3248 = vmatprep.subr.bf16.mxu1 %v7412_v25  ;;  %v7475_v1 = vld [vmem:[%s9656_s1 + $0x204] ss:$16 sps:$4 sm:$0xff]   ;;  %v7470_v2 = vld [vmem:[%s8218_s27] ss:$28 sps:$4 sm:$0xff]   ;;  %v7524_v7 = vld [vmem:[%s9656_s1 + $0x208] ss:$16 sps:$4 sm:$0xff]  }
  0x1d   : > { %v7473_v3 = vld [vmem:[%s9656_s1 + $0x200] ss:$16 sps:$4 sm:$0xff]   ;;  %v7476_v4 = vld [vmem:[%s8218_s27 + $0x3c] ss:$28 sps:$4 sm:$0xff]   ;;  %v7481_v5 = vld [vmem:[%s9656_s1 + $0x224] ss:$16 sps:$4 sm:$0xff]  }
  0x1e   : > { %v7479_v6 = vld [vmem:[%s9656_s1 + $0x220] ss:$16 sps:$4 sm:$0xff]   ;;  %v7526_v8 = vld [vmem:[%s9656_s1 + $0x20c] ss:$16 sps:$4 sm:$0xff]   ;;  %v7487_v9 = vld [vmem:[%s9656_s1 + $0x244] ss:$16 sps:$4 sm:$0xff]  }
  0x1f   : > { %2477 = vmatpush1.bf16.msra.mxu0 %v7414_v26  ;;  %3249 = vmatpush1.bf16.msra.mxu1 %v7415_v27  ;;  %v7529_v10 = vld [vmem:[%s9656_s1 + $0x22c] ss:$16 sps:$4 sm:$0xff]   ;;  %v7478_v11 = vld [vmem:[%s8218_s27 + $0x38] ss:$28 sps:$4 sm:$0xff]   ;;  %v7485_v13 = vld [vmem:[%s9656_s1 + $0x240] ss:$16 sps:$4 sm:$0xff]  }
  0x20   : > { %2478 = vmatprep.subr.bf16.mxu0 %v7416_v28  ;;  %3250 = vmatprep.subr.bf16.mxu1 %v7418_v29  ;;  %v7482_v12 = vld [vmem:[%s8218_s27 + $0x74] ss:$28 sps:$4 sm:$0xff]   ;;  %v7527_v14 = vld [vmem:[%s9656_s1 + $0x228] ss:$16 sps:$4 sm:$0xff]   ;;  %v7538_v16 = vld [vmem:[%s9656_s1 + $0x24c] ss:$16 sps:$4 sm:$0xff]  }
  0x21   : > { %v7493_v15 = vld [vmem:[%s9656_s1 + $0x264] ss:$16 sps:$4 sm:$0xff]   ;;  %v7491_v17 = vld [vmem:[%s9656_s1 + $0x260] ss:$16 sps:$4 sm:$0xff]   ;;  %v7536_v18 = vld [vmem:[%s9656_s1 + $0x248] ss:$16 sps:$4 sm:$0xff]  }
  0x22   : > { %v7499_v19 = vld [vmem:[%s9656_s1 + $0x284] ss:$16 sps:$4 sm:$0xff]   ;;  %v7541_v20 = vld [vmem:[%s9656_s1 + $0x26c] ss:$16 sps:$4 sm:$0xff]   ;;  %v7497_v23 = vld [vmem:[%s9656_s1 + $0x280] ss:$16 sps:$4 sm:$0xff]  }
  0x23   : > { %2479 = vmatpush1.bf16.msra.mxu0 %v7420_v30  ;;  %3251 = vmatpush1.bf16.msra.mxu1 %v7421_v31  ;;  %v7484_v21 = vld [vmem:[%s8218_s27 + $0x70] ss:$28 sps:$4 sm:$0xff]   ;;  %v7539_v24 = vld [vmem:[%s9656_s1 + $0x268] ss:$16 sps:$4 sm:$0xff]   ;;  %v7505_v25 = vld [vmem:[%s9656_s1 + $0x2a4] ss:$16 sps:$4 sm:$0xff]  }
  0x24   : > { %2480 = vmatprep.subr.bf16.mxu0 %v7422_v32  ;;  %3252 = vmatprep.subr.bf16.mxu1 %v7424_v33  ;;  %v7488_v22 = vld [vmem:[%s8218_s27 + $0xac] ss:$28 sps:$4 sm:$0xff]   ;;  %v7503_v27 = vld [vmem:[%s9656_s1 + $0x2a0] ss:$16 sps:$4 sm:$0xff]   ;;  %v7511_v29 = vld [vmem:[%s9656_s1 + $0x2c4] ss:$16 sps:$4 sm:$0xff]  }
  0x25   : > { %v7550_v26 = vld [vmem:[%s9656_s1 + $0x28c] ss:$16 sps:$4 sm:$0xff]   ;;  %v7548_v28 = vld [vmem:[%s9656_s1 + $0x288] ss:$16 sps:$4 sm:$0xff]   ;;  %v7494_v32 = vld [vmem:[%s8218_s27 + $0xe4] ss:$28 sps:$4 sm:$0xff]  }
  0x26   : > { %v7553_v30 = vld [vmem:[%s9656_s1 + $0x2ac] ss:$16 sps:$4 sm:$0xff]   ;;  %v7490_v31 = vld [vmem:[%s8218_s27 + $0xa8] ss:$28 sps:$4 sm:$0xff]   ;;  %v7509_v33 = vld [vmem:[%s9656_s1 + $0x2c0] ss:$16 sps:$4 sm:$0xff]  }
  0x27   : > { %2481 = vmatpush1.bf16.msra.mxu0 %v7426_v34  ;;  %3253 = vmatpush1.bf16.msra.mxu1 %v7427_v35  ;;  %v7551_v34 = vld [vmem:[%s9656_s1 + $0x2a8] ss:$16 sps:$4 sm:$0xff]   ;;  %v7517_v35 = vld [vmem:[%s9656_s1 + $0x2e4] ss:$16 sps:$4 sm:$0xff]   ;;  %s6030_s15 = sshll.u32 %s9668_s28, 3 }
  0x28   : > { %2482 = vmatprep.subr.bf16.mxu0 %v7428_v36  ;;  %3254 = vmatprep.subr.bf16.mxu1 %v7430_v37  ;;  %v7562_v36 = vld [vmem:[%s9656_s1 + $0x2cc] ss:$16 sps:$4 sm:$0xff]   ;;  %v7515_v37 = vld [vmem:[%s9656_s1 + $0x2e0] ss:$16 sps:$4 sm:$0xff]   ;;  %v7572_v48 = vld [vmem:[%s9656_s1 + $0x308] ss:$16 sps:$4 sm:$0xff]   ;;  %s9586_s21 = scalar_lea.vmem %s9666_s11, %s6030_s15 }
  0x2b   : > { %2483 = vmatpush1.bf16.msra.mxu0 %v7432_v38  ;;  %3255 = vmatpush1.bf16.msra.mxu1 %v7433_v39  ;;  %v7560_v38 = vld [vmem:[%s9656_s1 + $0x2c8] ss:$16 sps:$4 sm:$0xff]   ;;  %v7523_v39 = vld [vmem:[%s9656_s1 + $0x304] ss:$16 sps:$4 sm:$0xff]  }
  0x2c   : > { %2484 = vmatprep.subr.bf16.mxu0 %v7434_v40  ;;  %3256 = vmatprep.subr.bf16.mxu1 %v7436_v41  ;;  %v7565_v40 = vld [vmem:[%s9656_s1 + $0x2ec] ss:$16 sps:$4 sm:$0xff]  }
  0x2d   : > { %v7496_v41 = vld [vmem:[%s8218_s27 + $0xe0] ss:$28 sps:$4 sm:$0xff]  }
  0x2f   : > { %2485 = vmatpush1.bf16.msra.mxu0 %v7438_v42  ;;  %3257 = vmatpush1.bf16.msra.mxu1 %v7439_v43  ;;  %v7500_v42 = vld [vmem:[%s8218_s27 + $0x11c] ss:$28 sps:$4 sm:$0xff]   ;;  %v7521_v43 = vld [vmem:[%s9656_s1 + $0x300] ss:$16 sps:$4 sm:$0xff]  }
  0x30   : > { %2486 = vmatprep.subr.bf16.mxu0 %v7440_v44  ;;  %3258 = vmatprep.subr.bf16.mxu1 %v7442_v45  ;;  %v7563_v44 = vld [vmem:[%s9656_s1 + $0x2e8] ss:$16 sps:$4 sm:$0xff]   ;;  %v7535_v45 = vld [vmem:[%s9656_s1 + $0x324] ss:$16 sps:$4 sm:$0xff]  }
  0x33   : > { %2487 = vmatpush1.bf16.msra.mxu0 %v7444_v46  ;;  %3259 = vmatpush1.bf16.msra.mxu1 %v7445_v47  ;;  %v7574_v46 = vld [vmem:[%s9656_s1 + $0x30c] ss:$16 sps:$4 sm:$0xff]   ;;  %v7533_v47 = vld [vmem:[%s9656_s1 + $0x320] ss:$16 sps:$4 sm:$0xff]  }
  0x34   : > { %2488 = vmatprep.subr.bf16.mxu0 %v7446_v49  ;;  %3260 = vmatprep.subr.bf16.mxu1 %v7448_v50  ;;  %v7547_v49 = vld [vmem:[%s9656_s1 + $0x344] ss:$16 sps:$4 sm:$0xff]   ;;  %v7577_v50 = vld [vmem:[%s9656_s1 + $0x32c] ss:$16 sps:$4 sm:$0xff]  }
  0x37   : > { %2489 = vmatpush1.bf16.msra.mxu0 %v7450_v51  ;;  %3261 = vmatpush1.bf16.msra.mxu1 %v7451_v52  ;;  %v7502_v51 = vld [vmem:[%s8218_s27 + $0x118] ss:$28 sps:$4 sm:$0xff]  }
  0x38   : > { %2490 = vmatprep.subr.bf16.mxu0 %v7452_v53  ;;  %3262 = vmatprep.subr.bf16.mxu1 %v7454_v54  ;;  %v7506_v52 = vld [vmem:[%s8218_s27 + $0x154] ss:$28 sps:$4 sm:$0xff]   ;;  %v7575_v54 = vld [vmem:[%s9656_s1 + $0x328] ss:$16 sps:$4 sm:$0xff]  }
  0x39   : > { %v7545_v53 = vld [vmem:[%s9656_s1 + $0x340] ss:$16 sps:$4 sm:$0xff]  }
  0x3b   : > { %2491 = vmatpush1.bf16.msra.mxu0 %v7456_v55  ;;  %3263 = vmatpush1.bf16.msra.mxu1 %v7457_v56  ;;  %v7559_v55 = vld [vmem:[%s9656_s1 + $0x364] ss:$16 sps:$4 sm:$0xff]   ;;  %v7586_v56 = vld [vmem:[%s9656_s1 + $0x34c] ss:$16 sps:$4 sm:$0xff]  }
  0x3c   : > { %2492 = vmatprep.subr.bf16.mxu0 %v7458_v57  ;;  %3264 = vmatprep.subr.bf16.mxu1 %v7460_v58  ;;  %v7557_v57 = vld [vmem:[%s9656_s1 + $0x360] ss:$16 sps:$4 sm:$0xff]   ;;  %v7584_v58 = vld [vmem:[%s9656_s1 + $0x348] ss:$16 sps:$4 sm:$0xff]  }
  0x3f   : > { %2493 = vmatpush1.bf16.msra.mxu0 %v7462_v59  ;;  %3265 = vmatpush1.bf16.msra.mxu1 %v7463_v60  ;;  %v7571_v59 = vld [vmem:[%s9656_s1 + $0x384] ss:$16 sps:$4 sm:$0xff]   ;;  %v7589_v60 = vld [vmem:[%s9656_s1 + $0x36c] ss:$16 sps:$4 sm:$0xff]  }
  0x40   : > { %2494 = vmatprep.subr.bf16.mxu0 %v7464_v61  ;;  %3266 = vmatprep.subr.bf16.mxu1 %v7466_v62  ;;  %v7508_v61 = vld [vmem:[%s8218_s27 + $0x150] ss:$28 sps:$4 sm:$0xff]  }
  0x41   : > { %v7512_v62 = vld [vmem:[%s8218_s27 + $0x18c] ss:$28 sps:$4 sm:$0xff]  }
  0x43   : > { %2495 = vmatpush1.bf16.msra.mxu0 %v7468_v63  ;;  %3267 = vmatpush1.bf16.msra.mxu1 %v7469_v0  ;;  %v7569_v63 = vld [vmem:[%s9656_s1 + $0x380] ss:$16 sps:$4 sm:$0xff]   ;;  %v7587_v0 = vld [vmem:[%s9656_s1 + $0x368] ss:$16 sps:$4 sm:$0xff]  }
  0x44   : > { %2657 = vmatprep.subr.bf16.mxu0 %v7475_v1  ;;  %3429 = vmatprep.subr.bf16.mxu1 %v7526_v8  ;;  %v7583_v1 = vld [vmem:[%s9656_s1 + $0x3a4] ss:$16 sps:$4 sm:$0xff]  }
  0x45   : > { %v7518_v8 = vld [vmem:[%s8218_s27 + $0x1c4] ss:$28 sps:$4 sm:$0xff]  }
  0x46   : > { %2497 = vmatmul.mubr.bf16.vlgmr.msra.gmra.mrb[0].mxu0 %v7470_v2  ;;  %3269 = vmatmul.mubr.bf16.vlgmr.msra.gmra.mrb[0].mxu1 %v7470_v2  ;;  %v7598_v2 = vld [vmem:[%s9656_s1 + $0x38c] ss:$16 sps:$4 sm:$0xff]  }
  0x47   : > { %2658 = vmatpush1.bf16.msra.mxu0 %v7473_v3  ;;  %2506 = vmatprep.mubr.bf16.mxu0 %v7476_v4  ;;  %v7581_v3 = vld [vmem:[%s9656_s1 + $0x3a0] ss:$16 sps:$4 sm:$0xff]  }
  0x48   : > { %3278 = vmatprep.mubr.bf16.mxu1 %v7476_v4  ;;  %2659 = vmatprep.subr.bf16.mxu0 %v7481_v5  ;;  %v7596_v4 = vld [vmem:[%s9656_s1 + $0x388] ss:$16 sps:$4 sm:$0xff]   ;;  %v7595_v5 = vld [vmem:[%s9656_s1 + $0x3c4] ss:$16 sps:$4 sm:$0xff]  }
  0x49   : > { %3430 = vmatpush1.bf16.msra.mxu1 %v7524_v7  ;;  %v7514_v7 = vld [vmem:[%s8218_s27 + $0x188] ss:$28 sps:$4 sm:$0xff]  }
  0x4a   : > { %3431 = vmatprep.subr.bf16.mxu1 %v7529_v10  ;;  %v7599_v10 = vld [vmem:[%s9656_s1 + $0x3a8] ss:$16 sps:$4 sm:$0xff]  }
  0x4b   : > { %2660 = vmatpush1.bf16.msra.mxu0 %v7479_v6  ;;  %v7601_v6 = vld [vmem:[%s9656_s1 + $0x3ac] ss:$16 sps:$4 sm:$0xff]  }
  0x4c   : > { %2661 = vmatprep.subr.bf16.mxu0 %v7487_v9  ;;  %v7593_v9 = vld [vmem:[%s9656_s1 + $0x3c0] ss:$16 sps:$4 sm:$0xff]  }
  0x4d   : > { %3432 = vmatpush1.bf16.msra.mxu1 %v7527_v14  ;;  %v7608_v14 = vld [vmem:[%s9656_s1 + $0x3c8] ss:$16 sps:$4 sm:$0xff]  }
  0x4e   : > { %2507 = vmatmul.mubr.bf16.gmra.mrb[4].mxu0 %v7478_v11  ;;  %3279 = vmatmul.mubr.bf16.gmra.mrb[4].mxu1 %v7478_v11  ;;  %v7607_v11 = vld [vmem:[%s9656_s1 + $0x3e4] ss:$16 sps:$4 sm:$0xff]  }
  0x4f   : > { %2516 = vmatprep.mubr.bf16.mxu0 %v7482_v12  ;;  %3288 = vmatprep.mubr.bf16.mxu1 %v7482_v12  ;;  %v7610_v12 = vld [vmem:[%s9656_s1 + $0x3cc] ss:$16 sps:$4 sm:$0xff]  }
  0x50   : > { %2662 = vmatpush1.bf16.msra.mxu0 %v7485_v13  ;;  %3433 = vmatprep.subr.bf16.mxu1 %v7538_v16  ;;  %v7605_v13 = vld [vmem:[%s9656_s1 + $0x3e0] ss:$16 sps:$4 sm:$0xff]   ;;  %v7619_v16 = vld [vmem:[%s9656_s1 + $0x404] ss:$16 sps:$4 sm:$0xff]  }
  0x51   : > { %2663 = vmatprep.subr.bf16.mxu0 %v7493_v15  ;;  %3434 = vmatpush1.bf16.msra.mxu1 %v7536_v18  ;;  %v7613_v15 = vld [vmem:[%s9656_s1 + $0x3ec] ss:$16 sps:$4 sm:$0xff]  }
  0x52   : > { %3435 = vmatprep.subr.bf16.mxu1 %v7541_v20  ;;  %v7530_v18 = vld [vmem:[%s8218_s27 + $0x1fc] ss:$28 sps:$4 sm:$0xff]  }
  0x53   : > { %v7670_v20 = vld [vmem:[%s9656_s1 + $0x40c] ss:$16 sps:$4 sm:$0xff]  }
  0x54   : > { %2664 = vmatpush1.bf16.msra.mxu0 %v7491_v17  ;;  %v7520_v17 = vld [vmem:[%s8218_s27 + $0x1c0] ss:$28 sps:$4 sm:$0xff]  }
  0x55   : > { %2665 = vmatprep.subr.bf16.mxu0 %v7499_v19  ;;  %3436 = vmatpush1.bf16.msra.mxu1 %v7539_v24  ;;  %v7611_v19 = vld [vmem:[%s9656_s1 + $0x3e8] ss:$16 sps:$4 sm:$0xff]  }
  0x56   : > { %2517 = vmatmul.mubr.bf16.gmra.mrb[8].mxu0 %v7484_v21  ;;  %3289 = vmatmul.mubr.bf16.gmra.mrb[8].mxu1 %v7484_v21  ;;  %v7532_v21 = vld [vmem:[%s8218_s27 + $0x1f8] ss:$28 sps:$4 sm:$0xff]   ;;  %v7554_v24 = vld [vmem:[%s8218_s27 + $0x26c] ss:$28 sps:$4 sm:$0xff]  }
  0x57   : > { %2526 = vmatprep.mubr.bf16.mxu0 %v7488_v22  ;;  %3298 = vmatprep.mubr.bf16.mxu1 %v7488_v22  ;;  %v7542_v22 = vld [vmem:[%s8218_s27 + $0x234] ss:$28 sps:$4 sm:$0xff]  }
  0x58   : > { %2666 = vmatpush1.bf16.msra.mxu0 %v7497_v23  ;;  %3437 = vmatprep.subr.bf16.mxu1 %v7550_v26  ;;  %v7544_v23 = vld [vmem:[%s8218_s27 + $0x230] ss:$28 sps:$4 sm:$0xff]   ;;  %v7566_v26 = vld [vmem:[%s8218_s27 + $0x2a4] ss:$28 sps:$4 sm:$0xff]  }
  0x59   : > { %2667 = vmatprep.subr.bf16.mxu0 %v7505_v25  ;;  %3438 = vmatpush1.bf16.msra.mxu1 %v7548_v28  ;;  %v7556_v25 = vld [vmem:[%s8218_s27 + $0x268] ss:$28 sps:$4 sm:$0xff]   ;;  %v7578_v28 = vld [vmem:[%s8218_s27 + $0x2dc] ss:$28 sps:$4 sm:$0xff]  }
  0x5a   : > { %3439 = vmatprep.subr.bf16.mxu1 %v7553_v30  ;;  %v7590_v30 = vld [vmem:[%s8218_s27 + $0x314] ss:$28 sps:$4 sm:$0xff]  }
  0x5c   : > { %2668 = vmatpush1.bf16.msra.mxu0 %v7503_v27  ;;  %v7568_v27 = vld [vmem:[%s8218_s27 + $0x2a0] ss:$28 sps:$4 sm:$0xff]  }
  0x5d   : > { %2669 = vmatprep.subr.bf16.mxu0 %v7511_v29  ;;  %3440 = vmatpush1.bf16.msra.mxu1 %v7551_v34  ;;  %v7580_v29 = vld [vmem:[%s8218_s27 + $0x2d8] ss:$28 sps:$4 sm:$0xff]   ;;  %v7616_v34 = vld [vmem:[%s8218_s27 + $0xc] ss:$28 sps:$4 sm:$0xff]  }
  0x5e   : > { %2527 = vmatmul.mubr.bf16.gmra.mrb[12].mxu0 %v7490_v31  ;;  %3299 = vmatmul.mubr.bf16.gmra.mrb[12].mxu1 %v7490_v31  ;;  %v7592_v31 = vld [vmem:[%s8218_s27 + $0x310] ss:$28 sps:$4 sm:$0xff]  }
  0x5f   : > { %2536 = vmatprep.mubr.bf16.mxu0 %v7494_v32  ;;  %3308 = vmatprep.mubr.bf16.mxu1 %v7494_v32  ;;  %v7602_v32 = vld [vmem:[%s8218_s27 + $0x34c] ss:$28 sps:$4 sm:$0xff]  }
  0x60   : > { %2670 = vmatpush1.bf16.msra.mxu0 %v7509_v33  ;;  %3441 = vmatprep.subr.bf16.mxu1 %v7562_v36  ;;  %v7604_v33 = vld [vmem:[%s8218_s27 + $0x348] ss:$28 sps:$4 sm:$0xff]   ;;  %v7617_v36 = vld [vmem:[%s9656_s1 + $0x400] ss:$16 sps:$4 sm:$0xff]  }
  0x61   : > { %2671 = vmatprep.subr.bf16.mxu0 %v7517_v35  ;;  %3442 = vmatpush1.bf16.msra.mxu1 %v7560_v38  ;;  %v7614_v35 = vld [vmem:[%s8218_s27 + $0x8] ss:$28 sps:$4 sm:$0xff]  }
  0x62   : > { %3443 = vmatprep.subr.bf16.mxu1 %v7565_v40  ;;  %v7625_v38 = vld [vmem:[%s9656_s1 + $0x424] ss:$16 sps:$4 sm:$0xff]   ;;  %v7623_v40 = vld [vmem:[%s9656_s1 + $0x420] ss:$16 sps:$4 sm:$0xff]  }
  0x64   : > { %2672 = vmatpush1.bf16.msra.mxu0 %v7515_v37  ;;  %v7620_v37 = vld [vmem:[%s8218_s27 + $0x44] ss:$28 sps:$4 sm:$0xff]  }
  0x65   : > { %2673 = vmatprep.subr.bf16.mxu0 %v7523_v39  ;;  %3444 = vmatpush1.bf16.msra.mxu1 %v7563_v44  ;;  %v7668_v39 = vld [vmem:[%s9656_s1 + $0x408] ss:$16 sps:$4 sm:$0xff]  }
  0x66   : > { %2537 = vmatmul.mubr.bf16.gmra.mrb[16].mxu0 %v7496_v41  ;;  %3309 = vmatmul.mubr.bf16.gmra.mrb[16].mxu1 %v7496_v41  ;;  %v7673_v41 = vld [vmem:[%s9656_s1 + $0x42c] ss:$16 sps:$4 sm:$0xff]   ;;  %v7671_v44 = vld [vmem:[%s9656_s1 + $0x428] ss:$16 sps:$4 sm:$0xff]  }
  0x67   : > { %2546 = vmatprep.mubr.bf16.mxu0 %v7500_v42  ;;  %3318 = vmatprep.mubr.bf16.mxu1 %v7500_v42  ;;  %v7631_v42 = vld [vmem:[%s9656_s1 + $0x444] ss:$16 sps:$4 sm:$0xff]  }
  0x68   : > { %2674 = vmatpush1.bf16.msra.mxu0 %v7521_v43  ;;  %3445 = vmatprep.subr.bf16.mxu1 %v7574_v46  ;;  %v7622_v43 = vld [vmem:[%s8218_s27 + $0x40] ss:$28 sps:$4 sm:$0xff]  }
  0x69   : > { %2675 = vmatprep.subr.bf16.mxu0 %v7535_v45  ;;  %3446 = vmatpush1.bf16.msra.mxu1 %v7572_v48  ;;  %v7626_v45 = vld [vmem:[%s8218_s27 + $0x7c] ss:$28 sps:$4 sm:$0xff]   ;;  %v7629_v46 = vld [vmem:[%s9656_s1 + $0x440] ss:$16 sps:$4 sm:$0xff]   ;;  %v7637_v48 = vld [vmem:[%s9656_s1 + $0x464] ss:$16 sps:$4 sm:$0xff]  }
  0x6a   : > { %3447 = vmatprep.subr.bf16.mxu1 %v7577_v50  ;;  %v7635_v50 = vld [vmem:[%s9656_s1 + $0x460] ss:$16 sps:$4 sm:$0xff]  }
  0x6c   : > { %2676 = vmatpush1.bf16.msra.mxu0 %v7533_v47  ;;  %v7682_v47 = vld [vmem:[%s9656_s1 + $0x44c] ss:$16 sps:$4 sm:$0xff]  }
  0x6d   : > { %2677 = vmatprep.subr.bf16.mxu0 %v7547_v49  ;;  %3448 = vmatpush1.bf16.msra.mxu1 %v7575_v54  ;;  %v7680_v49 = vld [vmem:[%s9656_s1 + $0x448] ss:$16 sps:$4 sm:$0xff]  }
  0x6e   : > { %2547 = vmatmul.mubr.bf16.gmra.mrb[20].mxu0 %v7502_v51  ;;  %3319 = vmatmul.mubr.bf16.gmra.mrb[20].mxu1 %v7502_v51  ;;  %v7685_v51 = vld [vmem:[%s9656_s1 + $0x46c] ss:$16 sps:$4 sm:$0xff]   ;;  %v7628_v54 = vld [vmem:[%s8218_s27 + $0x78] ss:$28 sps:$4 sm:$0xff]  }
  0x6f   : > { %2556 = vmatprep.mubr.bf16.mxu0 %v7506_v52  ;;  %3328 = vmatprep.mubr.bf16.mxu1 %v7506_v52  ;;  %v7643_v52 = vld [vmem:[%s9656_s1 + $0x484] ss:$16 sps:$4 sm:$0xff]  }
  0x70   : > { %2678 = vmatpush1.bf16.msra.mxu0 %v7545_v53  ;;  %3449 = vmatprep.subr.bf16.mxu1 %v7586_v56  ;;  %v7683_v53 = vld [vmem:[%s9656_s1 + $0x468] ss:$16 sps:$4 sm:$0xff]   ;;  %v7641_v56 = vld [vmem:[%s9656_s1 + $0x480] ss:$16 sps:$4 sm:$0xff]  }
  0x71   : > { %2679 = vmatprep.subr.bf16.mxu0 %v7559_v55  ;;  %3450 = vmatpush1.bf16.msra.mxu1 %v7584_v58  ;;  %v7632_v55 = vld [vmem:[%s8218_s27 + $0xb4] ss:$28 sps:$4 sm:$0xff]  }
  0x72   : > { %3451 = vmatprep.subr.bf16.mxu1 %v7589_v60  ;;  %v7649_v58 = vld [vmem:[%s9656_s1 + $0x4a4] ss:$16 sps:$4 sm:$0xff]   ;;  %v7647_v60 = vld [vmem:[%s9656_s1 + $0x4a0] ss:$16 sps:$4 sm:$0xff]  }
  0x74   : > { %2680 = vmatpush1.bf16.msra.mxu0 %v7557_v57  ;;  %v7694_v57 = vld [vmem:[%s9656_s1 + $0x48c] ss:$16 sps:$4 sm:$0xff]  }
  0x75   : > { %2681 = vmatprep.subr.bf16.mxu0 %v7571_v59  ;;  %3452 = vmatpush1.bf16.msra.mxu1 %v7587_v0  ;;  %v7692_v59 = vld [vmem:[%s9656_s1 + $0x488] ss:$16 sps:$4 sm:$0xff]   ;;  %v7634_v0 = vld [vmem:[%s8218_s27 + $0xb0] ss:$28 sps:$4 sm:$0xff]  }
  0x76   : > { %2557 = vmatmul.mubr.bf16.gmra.mrb[24].mxu0 %v7508_v61  ;;  %3329 = vmatmul.mubr.bf16.gmra.mrb[24].mxu1 %v7508_v61  ;;  %v7697_v61 = vld [vmem:[%s9656_s1 + $0x4ac] ss:$16 sps:$4 sm:$0xff]  }
  0x77   : > { %2566 = vmatprep.mubr.bf16.mxu0 %v7512_v62  ;;  %3338 = vmatprep.mubr.bf16.mxu1 %v7512_v62  ;;  %v7655_v62 = vld [vmem:[%s9656_s1 + $0x4c4] ss:$16 sps:$4 sm:$0xff]  }
  0x78   : > { %2682 = vmatpush1.bf16.msra.mxu0 %v7569_v63  ;;  %3453 = vmatprep.subr.bf16.mxu1 %v7598_v2  ;;  %v7695_v63 = vld [vmem:[%s9656_s1 + $0x4a8] ss:$16 sps:$4 sm:$0xff]   ;;  %v7653_v2 = vld [vmem:[%s9656_s1 + $0x4c0] ss:$16 sps:$4 sm:$0xff]  }
  0x79   : > { %2683 = vmatprep.subr.bf16.mxu0 %v7583_v1  ;;  %3454 = vmatpush1.bf16.msra.mxu1 %v7596_v4  ;;  %v7638_v1 = vld [vmem:[%s8218_s27 + $0xec] ss:$28 sps:$4 sm:$0xff]   ;;  %v7661_v4 = vld [vmem:[%s9656_s1 + $0x4e4] ss:$16 sps:$4 sm:$0xff]  }
  0x7a   : > { %3455 = vmatprep.subr.bf16.mxu1 %v7601_v6  ;;  %v7659_v6 = vld [vmem:[%s9656_s1 + $0x4e0] ss:$16 sps:$4 sm:$0xff]  }
  0x7c   : > { %2684 = vmatpush1.bf16.msra.mxu0 %v7581_v3  ;;  %v7706_v3 = vld [vmem:[%s9656_s1 + $0x4cc] ss:$16 sps:$4 sm:$0xff]  }
  0x7d   : > { %2685 = vmatprep.subr.bf16.mxu0 %v7595_v5  ;;  %3456 = vmatpush1.bf16.msra.mxu1 %v7599_v10  ;;  %v7704_v5 = vld [vmem:[%s9656_s1 + $0x4c8] ss:$16 sps:$4 sm:$0xff]  }
  0x7e   : > { %2567 = vmatmul.mubr.bf16.gmra.mrb[28].mxu0 %v7514_v7  ;;  %3339 = vmatmul.mubr.bf16.gmra.mrb[28].mxu1 %v7514_v7  ;;  %v7709_v7 = vld [vmem:[%s9656_s1 + $0x4ec] ss:$16 sps:$4 sm:$0xff]   ;;  %v7640_v10 = vld [vmem:[%s8218_s27 + $0xe8] ss:$28 sps:$4 sm:$0xff]  }
  0x7f   : > { %2576 = vmatprep.mubr.bf16.mxu0 %v7518_v8  ;;  %3348 = vmatprep.mubr.bf16.mxu1 %v7518_v8  ;;  %v7667_v8 = vld [vmem:[%s9656_s1 + $0x504] ss:$16 sps:$4 sm:$0xff]  }
  0x80   : > { %2686 = vmatpush1.bf16.msra.mxu0 %v7593_v9  ;;  %3457 = vmatprep.subr.bf16.mxu1 %v7610_v12  ;;  %v7707_v9 = vld [vmem:[%s9656_s1 + $0x4e8] ss:$16 sps:$4 sm:$0xff]   ;;  %v7665_v12 = vld [vmem:[%s9656_s1 + $0x500] ss:$16 sps:$4 sm:$0xff]  }
  0x81   : > { %2687 = vmatprep.subr.bf16.mxu0 %v7607_v11  ;;  %3458 = vmatpush1.bf16.msra.mxu1 %v7608_v14  ;;  %v7644_v11 = vld [vmem:[%s8218_s27 + $0x124] ss:$28 sps:$4 sm:$0xff]  }
  0x82   : > { %3459 = vmatprep.subr.bf16.mxu1 %v7613_v15  ;;  %v7679_v14 = vld [vmem:[%s9656_s1 + $0x524] ss:$16 sps:$4 sm:$0xff]   ;;  %v7716_v15 = vld [vmem:[%s9656_s1 + $0x508] ss:$16 sps:$4 sm:$0xff]  }
  0x84   : > { %2688 = vmatpush1.bf16.msra.mxu0 %v7605_v13  ;;  %v7718_v13 = vld [vmem:[%s9656_s1 + $0x50c] ss:$16 sps:$4 sm:$0xff]  }
  0x85   : > { %2850 = vmatprep.subr.bf16.mxu0 %v7619_v16  ;;  %3460 = vmatpush1.bf16.msra.mxu1 %v7611_v19  ;;  %v7677_v16 = vld [vmem:[%s9656_s1 + $0x520] ss:$16 sps:$4 sm:$0xff]   ;;  %v7719_v19 = vld [vmem:[%s9656_s1 + $0x528] ss:$16 sps:$4 sm:$0xff]  }
  0x86   : > { %2577 = vmatmul.mubr.bf16.gmra.mrb[32].mxu0 %v7520_v17  ;;  %3349 = vmatmul.mubr.bf16.gmra.mrb[32].mxu1 %v7520_v17  ;;  %v7721_v17 = vld [vmem:[%s9656_s1 + $0x52c] ss:$16 sps:$4 sm:$0xff]  }
  0x87   : > { %2586 = vmatprep.mubr.bf16.mxu0 %v7530_v18  ;;  %3358 = vmatprep.mubr.bf16.mxu1 %v7530_v18  ;;  %v7691_v18 = vld [vmem:[%s9656_s1 + $0x544] ss:$16 sps:$4 sm:$0xff]  }
  0x88   : > { %3622 = vmatprep.subr.bf16.mxu1 %v7670_v20  ;;  %v7646_v20 = vld [vmem:[%s8218_s27 + $0x120] ss:$28 sps:$4 sm:$0xff]  }
  0x8e   : > { %2587 = vmatmul.mubr.bf16.gmra.mrb[36].mxu0 %v7532_v21  ;;  %3359 = vmatmul.mubr.bf16.gmra.mrb[36].mxu1 %v7532_v21  ;;  %v7650_v21 = vld [vmem:[%s8218_s27 + $0x15c] ss:$28 sps:$4 sm:$0xff]  }
  0x8f   : > { %2596 = vmatprep.mubr.bf16.mxu0 %v7542_v22  ;;  %3368 = vmatprep.mubr.bf16.mxu1 %v7542_v22  ;;  %v7689_v22 = vld [vmem:[%s9656_s1 + $0x540] ss:$16 sps:$4 sm:$0xff]  }
  0x96   : > { %2597 = vmatmul.mubr.bf16.gmra.mrb[40].mxu0 %v7544_v23  ;;  %3369 = vmatmul.mubr.bf16.gmra.mrb[40].mxu1 %v7544_v23  ;;  %v7730_v23 = vld [vmem:[%s9656_s1 + $0x54c] ss:$16 sps:$4 sm:$0xff]  }
  0x97   : > { %2606 = vmatprep.mubr.bf16.mxu0 %v7554_v24  ;;  %3378 = vmatprep.mubr.bf16.mxu1 %v7554_v24  ;;  %v7703_v24 = vld [vmem:[%s9656_s1 + $0x564] ss:$16 sps:$4 sm:$0xff]  }
  0x9e   : > { %2607 = vmatmul.mubr.bf16.gmra.mrb[44].mxu0 %v7556_v25  ;;  %3379 = vmatmul.mubr.bf16.gmra.mrb[44].mxu1 %v7556_v25  ;;  %v7728_v25 = vld [vmem:[%s9656_s1 + $0x548] ss:$16 sps:$4 sm:$0xff]  }
  0x9f   : > { %2616 = vmatprep.mubr.bf16.mxu0 %v7566_v26  ;;  %3388 = vmatprep.mubr.bf16.mxu1 %v7566_v26  ;;  %v7701_v26 = vld [vmem:[%s9656_s1 + $0x560] ss:$16 sps:$4 sm:$0xff]  }
  0xa6   : > { %2617 = vmatmul.mubr.bf16.gmra.mrb[48].mxu0 %v7568_v27  ;;  %3389 = vmatmul.mubr.bf16.gmra.mrb[48].mxu1 %v7568_v27  ;;  %v7733_v27 = vld [vmem:[%s9656_s1 + $0x56c] ss:$16 sps:$4 sm:$0xff]  }
  0xa7   : > { %2626 = vmatprep.mubr.bf16.mxu0 %v7578_v28  ;;  %3398 = vmatprep.mubr.bf16.mxu1 %v7578_v28  ;;  %v7715_v28 = vld [vmem:[%s9656_s1 + $0x584] ss:$16 sps:$4 sm:$0xff]  }
  0xae   : > { %2627 = vmatmul.mubr.bf16.gmra.mrb[52].mxu0 %v7580_v29  ;;  %3399 = vmatmul.mubr.bf16.gmra.mrb[52].mxu1 %v7580_v29  ;;  %v7731_v29 = vld [vmem:[%s9656_s1 + $0x568] ss:$16 sps:$4 sm:$0xff]  }
  0xaf   : > { %2636 = vmatprep.mubr.bf16.mxu0 %v7590_v30  ;;  %3408 = vmatprep.mubr.bf16.mxu1 %v7590_v30  ;;  %v7652_v30 = vld [vmem:[%s8218_s27 + $0x158] ss:$28 sps:$4 sm:$0xff]  }
  0xb6   : > { %2637 = vmatmul.mubr.bf16.gmra.mrb[56].mxu0 %v7592_v31  ;;  %3409 = vmatmul.mubr.bf16.gmra.mrb[56].mxu1 %v7592_v31  ;;  %v7656_v31 = vld [vmem:[%s8218_s27 + $0x194] ss:$28 sps:$4 sm:$0xff]  }
  0xb7   : > { %2646 = vmatprep.mubr.bf16.mxu0 %v7602_v32  ;;  %3418 = vmatprep.mubr.bf16.mxu1 %v7602_v32  ;;  %v7713_v32 = vld [vmem:[%s9656_s1 + $0x580] ss:$16 sps:$4 sm:$0xff]  }
  0xbe   : > { %2647 = vmatmul.mubr.bf16.gmra.mrb[60].mxu0 %v7604_v33  ;;  %3419 = vmatmul.mubr.bf16.gmra.mrb[60].mxu1 %v7604_v33  ;;  %v7742_v33 = vld [vmem:[%s9656_s1 + $0x58c] ss:$16 sps:$4 sm:$0xff]  }
  0xbf   : > { %2689 = vmatprep.mubr.bf16.mxu0 %v7616_v34  ;;  %3461 = vmatprep.mubr.bf16.mxu1 %v7616_v34  ;;  %v7727_v34 = vld [vmem:[%s9656_s1 + $0x5a4] ss:$16 sps:$4 sm:$0xff]  }
  0xc6   : > { %2690 = vmatmul.mubr.bf16.vlgmr.msra.gmra.mrb[0].mxu0 %v7614_v35  ;;  %3462 = vmatmul.mubr.bf16.vlgmr.msra.gmra.mrb[0].mxu1 %v7614_v35  ;;  %v7740_v35 = vld [vmem:[%s9656_s1 + $0x588] ss:$16 sps:$4 sm:$0xff]  }
  0xc7   : > { %2851 = vmatpush1.bf16.msra.mxu0 %v7617_v36  ;;  %2699 = vmatprep.mubr.bf16.mxu0 %v7620_v37  ;;  %v7725_v36 = vld [vmem:[%s9656_s1 + $0x5a0] ss:$16 sps:$4 sm:$0xff]  }
  0xc8   : > { %3471 = vmatprep.mubr.bf16.mxu1 %v7620_v37  ;;  %2852 = vmatprep.subr.bf16.mxu0 %v7625_v38  ;;  %v7745_v37 = vld [vmem:[%s9656_s1 + $0x5ac] ss:$16 sps:$4 sm:$0xff]   ;;  %v7739_v38 = vld [vmem:[%s9656_s1 + $0x5c4] ss:$16 sps:$4 sm:$0xff]  }
  0xc9   : > { %3623 = vmatpush1.bf16.msra.mxu1 %v7668_v39  ;;  %v7743_v39 = vld [vmem:[%s9656_s1 + $0x5a8] ss:$16 sps:$4 sm:$0xff]  }
  0xca   : > { %3624 = vmatprep.subr.bf16.mxu1 %v7673_v41  ;;  %v7662_v41 = vld [vmem:[%s8218_s27 + $0x1cc] ss:$28 sps:$4 sm:$0xff]  }
  0xcb   : > { %2853 = vmatpush1.bf16.msra.mxu0 %v7623_v40  ;;  %v7658_v40 = vld [vmem:[%s8218_s27 + $0x190] ss:$28 sps:$4 sm:$0xff]  }
  0xcc   : > { %2854 = vmatprep.subr.bf16.mxu0 %v7631_v42  ;;  %v7737_v42 = vld [vmem:[%s9656_s1 + $0x5c0] ss:$16 sps:$4 sm:$0xff]  }
  0xcd   : > { %3625 = vmatpush1.bf16.msra.mxu1 %v7671_v44  ;;  %v7751_v44 = vld [vmem:[%s9656_s1 + $0x5e4] ss:$16 sps:$4 sm:$0xff]  }
  0xce   : > { %2700 = vmatmul.mubr.bf16.gmra.mrb[4].mxu0 %v7622_v43  ;;  %3472 = vmatmul.mubr.bf16.gmra.mrb[4].mxu1 %v7622_v43  ;;  %v7754_v43 = vld [vmem:[%s9656_s1 + $0x5cc] ss:$16 sps:$4 sm:$0xff]  }
  0xcf   : > { %2709 = vmatprep.mubr.bf16.mxu0 %v7626_v45  ;;  %3481 = vmatprep.mubr.bf16.mxu1 %v7626_v45  ;;  %v7752_v45 = vld [vmem:[%s9656_s1 + $0x5c8] ss:$16 sps:$4 sm:$0xff]  }
  0xd0   : > { %2855 = vmatpush1.bf16.msra.mxu0 %v7629_v46  ;;  %3626 = vmatprep.subr.bf16.mxu1 %v7682_v47  ;;  %v7757_v46 = vld [vmem:[%s9656_s1 + $0x5ec] ss:$16 sps:$4 sm:$0xff]   ;;  %v7749_v47 = vld [vmem:[%s9656_s1 + $0x5e0] ss:$16 sps:$4 sm:$0xff]  }
  0xd1   : > { %2856 = vmatprep.subr.bf16.mxu0 %v7637_v48  ;;  %3627 = vmatpush1.bf16.msra.mxu1 %v7680_v49  ;;  %v7755_v48 = vld [vmem:[%s9656_s1 + $0x5e8] ss:$16 sps:$4 sm:$0xff]   ;;  %v7763_v49 = vld [vmem:[%s9656_s1 + $0x604] ss:$16 sps:$4 sm:$0xff]  }
  0xd2   : > { %3628 = vmatprep.subr.bf16.mxu1 %v7685_v51  ;;  %v7674_v51 = vld [vmem:[%s8218_s27 + $0x204] ss:$28 sps:$4 sm:$0xff]  }
  0xd4   : > { %2857 = vmatpush1.bf16.msra.mxu0 %v7635_v50  ;;  %v7664_v50 = vld [vmem:[%s8218_s27 + $0x1c8] ss:$28 sps:$4 sm:$0xff]  }
  0xd5   : > { %2858 = vmatprep.subr.bf16.mxu0 %v7643_v52  ;;  %3629 = vmatpush1.bf16.msra.mxu1 %v7683_v53  ;;  %v7676_v52 = vld [vmem:[%s8218_s27 + $0x200] ss:$28 sps:$4 sm:$0xff]  }
  0xd6   : > { %2710 = vmatmul.mubr.bf16.gmra.mrb[8].mxu0 %v7628_v54  ;;  %3482 = vmatmul.mubr.bf16.gmra.mrb[8].mxu1 %v7628_v54  ;;  %v7686_v53 = vld [vmem:[%s8218_s27 + $0x23c] ss:$28 sps:$4 sm:$0xff]  }
  0xd7   : > { %2719 = vmatprep.mubr.bf16.mxu0 %v7632_v55  ;;  %3491 = vmatprep.mubr.bf16.mxu1 %v7632_v55  ;;  %v7688_v54 = vld [vmem:[%s8218_s27 + $0x238] ss:$28 sps:$4 sm:$0xff]  }
  0xd8   : > { %2859 = vmatpush1.bf16.msra.mxu0 %v7641_v56  ;;  %3630 = vmatprep.subr.bf16.mxu1 %v7694_v57  ;;  %v7698_v55 = vld [vmem:[%s8218_s27 + $0x274] ss:$28 sps:$4 sm:$0xff]   ;;  %v7710_v57 = vld [vmem:[%s8218_s27 + $0x2ac] ss:$28 sps:$4 sm:$0xff]  }
  0xd9   : > { %2860 = vmatprep.subr.bf16.mxu0 %v7649_v58  ;;  %3631 = vmatpush1.bf16.msra.mxu1 %v7692_v59  ;;  %v7700_v56 = vld [vmem:[%s8218_s27 + $0x270] ss:$28 sps:$4 sm:$0xff]   ;;  %v7712_v58 = vld [vmem:[%s8218_s27 + $0x2a8] ss:$28 sps:$4 sm:$0xff]  }
  0xda   : > { %3632 = vmatprep.subr.bf16.mxu1 %v7697_v61  ;;  %v7722_v59 = vld [vmem:[%s8218_s27 + $0x2e4] ss:$28 sps:$4 sm:$0xff]  }
  0xdb   : > { %v7724_v61 = vld [vmem:[%s8218_s27 + $0x2e0] ss:$28 sps:$4 sm:$0xff]  }
  0xdc   : > { %2861 = vmatpush1.bf16.msra.mxu0 %v7647_v60  ;;  %v7820_v60 = vld [vmem:[%s9656_s1 + $0x60c] ss:$16 sps:$4 sm:$0xff]  }
  0xdd   : > { %2862 = vmatprep.subr.bf16.mxu0 %v7655_v62  ;;  %3633 = vmatpush1.bf16.msra.mxu1 %v7695_v63  ;;  %v7734_v62 = vld [vmem:[%s8218_s27 + $0x31c] ss:$28 sps:$4 sm:$0xff]  }
  0xde   : > { %2720 = vmatmul.mubr.bf16.gmra.mrb[12].mxu0 %v7634_v0  ;;  %3492 = vmatmul.mubr.bf16.gmra.mrb[12].mxu1 %v7634_v0  ;;  %v7736_v63 = vld [vmem:[%s8218_s27 + $0x318] ss:$28 sps:$4 sm:$0xff]  }
  0xdf   : > { %2729 = vmatprep.mubr.bf16.mxu0 %v7638_v1  ;;  %3501 = vmatprep.mubr.bf16.mxu1 %v7638_v1  ;;  %v7746_v0 = vld [vmem:[%s8218_s27 + $0x354] ss:$28 sps:$4 sm:$0xff]  }
  0xe0   : > { %2863 = vmatpush1.bf16.msra.mxu0 %v7653_v2  ;;  %3634 = vmatprep.subr.bf16.mxu1 %v7706_v3  ;;  %v7748_v1 = vld [vmem:[%s8218_s27 + $0x350] ss:$28 sps:$4 sm:$0xff]  }
  0xe1   : > { %2864 = vmatprep.subr.bf16.mxu0 %v7661_v4  ;;  %3635 = vmatpush1.bf16.msra.mxu1 %v7704_v5  ;;  %v7760_v2 = vld [vmem:[%s8218_s27 + $0x14] ss:$28 sps:$4 sm:$0xff]   ;;  %v7764_v5 = vld [vmem:[%s8218_s27 + $0x4c] ss:$28 sps:$4 sm:$0xff]  }
  0xe2   : > { %3636 = vmatprep.subr.bf16.mxu1 %v7709_v7  ;;  %v7758_v3 = vld [vmem:[%s8218_s27 + $0x10] ss:$28 sps:$4 sm:$0xff]   ;;  %v7818_v7 = vld [vmem:[%s9656_s1 + $0x608] ss:$16 sps:$4 sm:$0xff]  }
  0xe3   : > { %v7761_v4 = vld [vmem:[%s9656_s1 + $0x600] ss:$16 sps:$4 sm:$0xff]  }
  0xe4   : > { %2865 = vmatpush1.bf16.msra.mxu0 %v7659_v6  ;;  %v7772_v6 = vld [vmem:[%s9656_s1 + $0x624] ss:$16 sps:$4 sm:$0xff]  }
  0xe5   : > { %2866 = vmatprep.subr.bf16.mxu0 %v7667_v8  ;;  %3637 = vmatpush1.bf16.msra.mxu1 %v7707_v9  ;;  %v7823_v8 = vld [vmem:[%s9656_s1 + $0x62c] ss:$16 sps:$4 sm:$0xff]   ;;  %v7770_v9 = vld [vmem:[%s9656_s1 + $0x620] ss:$16 sps:$4 sm:$0xff]  }
  0xe6   : > { %2730 = vmatmul.mubr.bf16.gmra.mrb[16].mxu0 %v7640_v10  ;;  %3502 = vmatmul.mubr.bf16.gmra.mrb[16].mxu1 %v7640_v10  ;;  %v7781_v10 = vld [vmem:[%s9656_s1 + $0x644] ss:$16 sps:$4 sm:$0xff]  }
  0xe7   : > { %2739 = vmatprep.mubr.bf16.mxu0 %v7644_v11  ;;  %3511 = vmatprep.mubr.bf16.mxu1 %v7644_v11  ;;  %v7821_v11 = vld [vmem:[%s9656_s1 + $0x628] ss:$16 sps:$4 sm:$0xff]  }
  0xe8   : > { %2867 = vmatpush1.bf16.msra.mxu0 %v7665_v12  ;;  %3638 = vmatprep.subr.bf16.mxu1 %v7718_v13  ;;  %v7766_v12 = vld [vmem:[%s8218_s27 + $0x48] ss:$28 sps:$4 sm:$0xff]  }
  0xe9   : > { %2868 = vmatprep.subr.bf16.mxu0 %v7679_v14  ;;  %3639 = vmatpush1.bf16.msra.mxu1 %v7716_v15  ;;  %v7767_v13 = vld [vmem:[%s8218_s27 + $0x84] ss:$28 sps:$4 sm:$0xff]   ;;  %v7829_v15 = vld [vmem:[%s9656_s1 + $0x64c] ss:$16 sps:$4 sm:$0xff]  }
  0xea   : > { %3640 = vmatprep.subr.bf16.mxu1 %v7721_v17  ;;  %v7779_v14 = vld [vmem:[%s9656_s1 + $0x640] ss:$16 sps:$4 sm:$0xff]   ;;  %v7827_v17 = vld [vmem:[%s9656_s1 + $0x648] ss:$16 sps:$4 sm:$0xff]  }
  0xec   : > { %2869 = vmatpush1.bf16.msra.mxu0 %v7677_v16  ;;  %v7790_v16 = vld [vmem:[%s9656_s1 + $0x664] ss:$16 sps:$4 sm:$0xff]  }
  0xed   : > { %2870 = vmatprep.subr.bf16.mxu0 %v7691_v18  ;;  %3641 = vmatpush1.bf16.msra.mxu1 %v7719_v19  ;;  %v7832_v18 = vld [vmem:[%s9656_s1 + $0x66c] ss:$16 sps:$4 sm:$0xff]   ;;  %v7788_v19 = vld [vmem:[%s9656_s1 + $0x660] ss:$16 sps:$4 sm:$0xff]  }
  0xee   : > { %2740 = vmatmul.mubr.bf16.gmra.mrb[20].mxu0 %v7646_v20  ;;  %3512 = vmatmul.mubr.bf16.gmra.mrb[20].mxu1 %v7646_v20  ;;  %v7799_v20 = vld [vmem:[%s9656_s1 + $0x684] ss:$16 sps:$4 sm:$0xff]  }
  0xef   : > { %2749 = vmatprep.mubr.bf16.mxu0 %v7650_v21  ;;  %3521 = vmatprep.mubr.bf16.mxu1 %v7650_v21  ;;  %v7830_v21 = vld [vmem:[%s9656_s1 + $0x668] ss:$16 sps:$4 sm:$0xff]  }
  0xf0   : > { %2871 = vmatpush1.bf16.msra.mxu0 %v7689_v22  ;;  %3642 = vmatprep.subr.bf16.mxu1 %v7730_v23  ;;  %v7769_v22 = vld [vmem:[%s8218_s27 + $0x80] ss:$28 sps:$4 sm:$0xff]  }
  0xf1   : > { %2872 = vmatprep.subr.bf16.mxu0 %v7703_v24  ;;  %3643 = vmatpush1.bf16.msra.mxu1 %v7728_v25  ;;  %v7773_v23 = vld [vmem:[%s8218_s27 + $0xbc] ss:$28 sps:$4 sm:$0xff]   ;;  %v7797_v24 = vld [vmem:[%s9656_s1 + $0x680] ss:$16 sps:$4 sm:$0xff]  }
  0xf2   : > { %3644 = vmatprep.subr.bf16.mxu1 %v7733_v27  ;;  %v7841_v25 = vld [vmem:[%s9656_s1 + $0x68c] ss:$16 sps:$4 sm:$0xff]   ;;  %v7839_v27 = vld [vmem:[%s9656_s1 + $0x688] ss:$16 sps:$4 sm:$0xff]  }
  0xf4   : > { %2873 = vmatpush1.bf16.msra.mxu0 %v7701_v26  ;;  %v7808_v26 = vld [vmem:[%s9656_s1 + $0x6a4] ss:$16 sps:$4 sm:$0xff]  }
  0xf5   : > { %2874 = vmatprep.subr.bf16.mxu0 %v7715_v28  ;;  %3645 = vmatpush1.bf16.msra.mxu1 %v7731_v29  ;;  %v7844_v28 = vld [vmem:[%s9656_s1 + $0x6ac] ss:$16 sps:$4 sm:$0xff]   ;;  %v7806_v29 = vld [vmem:[%s9656_s1 + $0x6a0] ss:$16 sps:$4 sm:$0xff]  }
  0xf6   : > { %2750 = vmatmul.mubr.bf16.gmra.mrb[24].mxu0 %v7652_v30  ;;  %3522 = vmatmul.mubr.bf16.gmra.mrb[24].mxu1 %v7652_v30  ;;  %v7817_v30 = vld [vmem:[%s9656_s1 + $0x6c4] ss:$16 sps:$4 sm:$0xff]  }
  0xf7   : > { %2759 = vmatprep.mubr.bf16.mxu0 %v7656_v31  ;;  %3531 = vmatprep.mubr.bf16.mxu1 %v7656_v31  ;;  %v7842_v31 = vld [vmem:[%s9656_s1 + $0x6a8] ss:$16 sps:$4 sm:$0xff]  }
  0xf8   : > { %2875 = vmatpush1.bf16.msra.mxu0 %v7713_v32  ;;  %3646 = vmatprep.subr.bf16.mxu1 %v7742_v33  ;;  %v7775_v32 = vld [vmem:[%s8218_s27 + $0xb8] ss:$28 sps:$4 sm:$0xff]  }
  0xf9   : > { %2876 = vmatprep.subr.bf16.mxu0 %v7727_v34  ;;  %3647 = vmatpush1.bf16.msra.mxu1 %v7740_v35  ;;  %v7776_v33 = vld [vmem:[%s8218_s27 + $0xf4] ss:$28 sps:$4 sm:$0xff]   ;;  %v7850_v35 = vld [vmem:[%s9656_s1 + $0x6cc] ss:$16 sps:$4 sm:$0xff]  }
  0xfa   : > { %3648 = vmatprep.subr.bf16.mxu1 %v7745_v37  ;;  %v7815_v34 = vld [vmem:[%s9656_s1 + $0x6c0] ss:$16 sps:$4 sm:$0xff]   ;;  %v7848_v37 = vld [vmem:[%s9656_s1 + $0x6c8] ss:$16 sps:$4 sm:$0xff]  }
  0xfc   : > { %2877 = vmatpush1.bf16.msra.mxu0 %v7725_v36  ;;  %v7838_v36 = vld [vmem:[%s9656_s1 + $0x6e4] ss:$16 sps:$4 sm:$0xff]  }
  0xfd   : > { %2878 = vmatprep.subr.bf16.mxu0 %v7739_v38  ;;  %3649 = vmatpush1.bf16.msra.mxu1 %v7743_v39  ;;  %v7853_v38 = vld [vmem:[%s9656_s1 + $0x6ec] ss:$16 sps:$4 sm:$0xff]   ;;  %v7836_v39 = vld [vmem:[%s9656_s1 + $0x6e0] ss:$16 sps:$4 sm:$0xff]  }
  0xfe   : > { %2760 = vmatmul.mubr.bf16.gmra.mrb[28].mxu0 %v7658_v40  ;;  %3532 = vmatmul.mubr.bf16.gmra.mrb[28].mxu1 %v7658_v40  ;;  %v7851_v40 = vld [vmem:[%s9656_s1 + $0x6e8] ss:$16 sps:$4 sm:$0xff]  }
  0xff   : > { %2769 = vmatprep.mubr.bf16.mxu0 %v7662_v41  ;;  %3541 = vmatprep.mubr.bf16.mxu1 %v7662_v41  ;;  %v7778_v41 = vld [vmem:[%s8218_s27 + $0xf0] ss:$28 sps:$4 sm:$0xff]  }
 0x100   : > { %2879 = vmatpush1.bf16.msra.mxu0 %v7737_v42  ;;  %3650 = vmatprep.subr.bf16.mxu1 %v7754_v43  ;;  %v7782_v42 = vld [vmem:[%s8218_s27 + $0x12c] ss:$28 sps:$4 sm:$0xff]  }
 0x101   : > { %2880 = vmatprep.subr.bf16.mxu0 %v7751_v44  ;;  %3651 = vmatpush1.bf16.msra.mxu1 %v7752_v45  ;;  %v7784_v43 = vld [vmem:[%s8218_s27 + $0x128] ss:$28 sps:$4 sm:$0xff]   ;;  %v7787_v45 = vld [vmem:[%s8218_s27 + $0x160] ss:$28 sps:$4 sm:$0xff]  }
 0x102   : > { %3652 = vmatprep.subr.bf16.mxu1 %v7757_v46  ;;  %v7785_v44 = vld [vmem:[%s8218_s27 + $0x164] ss:$28 sps:$4 sm:$0xff]   ;;  %v7791_v46 = vld [vmem:[%s8218_s27 + $0x19c] ss:$28 sps:$4 sm:$0xff]  }
 0x104   : > { %2881 = vmatpush1.bf16.msra.mxu0 %v7749_v47  ;;  %v7793_v47 = vld [vmem:[%s8218_s27 + $0x198] ss:$28 sps:$4 sm:$0xff]  }
 0x105   : > { %3653 = vmatpush1.bf16.msra.mxu1 %v7755_v48  ;;  %3043 = vmatprep.subr.bf16.mxu0 %v7763_v49  ;;  %v7794_v48 = vld [vmem:[%s8218_s27 + $0x1d4] ss:$28 sps:$4 sm:$0xff]  }
 0x106   : > { %2770 = vmatmul.mubr.bf16.gmra.mrb[32].mxu0 %v7664_v50  ;;  %3542 = vmatmul.mubr.bf16.gmra.mrb[32].mxu1 %v7664_v50  ;;  %v7796_v49 = vld [vmem:[%s8218_s27 + $0x1d0] ss:$28 sps:$4 sm:$0xff]  }
 0x107   : > { %2779 = vmatprep.mubr.bf16.mxu0 %v7674_v51  ;;  %3551 = vmatprep.mubr.bf16.mxu1 %v7674_v51  ;;  %v7800_v50 = vld [vmem:[%s8218_s27 + $0x20c] ss:$28 sps:$4 sm:$0xff]  }
 0x108   : > { %3815 = vmatprep.subr.bf16.mxu1 %v7820_v60  ;;  %v7802_v51 = vld [vmem:[%s8218_s27 + $0x208] ss:$28 sps:$4 sm:$0xff]  }
 0x109   : > { %v7826_v60 = vld [vmem:[%s8218_s27 + $0x2e8] ss:$28 sps:$4 sm:$0xff]  }
 0x10e   : > { %2780 = vmatmul.mubr.bf16.gmra.mrb[36].mxu0 %v7676_v52  ;;  %3552 = vmatmul.mubr.bf16.gmra.mrb[36].mxu1 %v7676_v52  ;;  %v7803_v52 = vld [vmem:[%s8218_s27 + $0x244] ss:$28 sps:$4 sm:$0xff]  }
 0x10f   : > { %2789 = vmatprep.mubr.bf16.mxu0 %v7686_v53  ;;  %3561 = vmatprep.mubr.bf16.mxu1 %v7686_v53  ;;  %v7805_v53 = vld [vmem:[%s8218_s27 + $0x240] ss:$28 sps:$4 sm:$0xff]  }
 0x116   : > { %2790 = vmatmul.mubr.bf16.gmra.mrb[40].mxu0 %v7688_v54  ;;  %3562 = vmatmul.mubr.bf16.gmra.mrb[40].mxu1 %v7688_v54  ;;  %v7809_v54 = vld [vmem:[%s8218_s27 + $0x27c] ss:$28 sps:$4 sm:$0xff]  }
 0x117   : > { %2799 = vmatprep.mubr.bf16.mxu0 %v7698_v55  ;;  %3571 = vmatprep.mubr.bf16.mxu1 %v7698_v55  ;;  %v7811_v55 = vld [vmem:[%s8218_s27 + $0x278] ss:$28 sps:$4 sm:$0xff]  }
 0x11e   : > { %2800 = vmatmul.mubr.bf16.gmra.mrb[44].mxu0 %v7700_v56  ;;  %3572 = vmatmul.mubr.bf16.gmra.mrb[44].mxu1 %v7700_v56  ;;  %v7812_v56 = vld [vmem:[%s8218_s27 + $0x2b4] ss:$28 sps:$4 sm:$0xff]  }
 0x11f   : > { %2809 = vmatprep.mubr.bf16.mxu0 %v7710_v57  ;;  %3581 = vmatprep.mubr.bf16.mxu1 %v7710_v57  ;;  %v7868_v57 = vld [vmem:[%s9658_s3 + $0x4] ss:$8 sps:$4 sm:$0xff]  }
 0x126   : > { %2810 = vmatmul.mubr.bf16.gmra.mrb[48].mxu0 %v7712_v58  ;;  %3582 = vmatmul.mubr.bf16.gmra.mrb[48].mxu1 %v7712_v58  ;;  %v7814_v58 = vld [vmem:[%s8218_s27 + $0x2b0] ss:$28 sps:$4 sm:$0xff]  }
 0x127   : > { %2819 = vmatprep.mubr.bf16.mxu0 %v7722_v59  ;;  %3591 = vmatprep.mubr.bf16.mxu1 %v7722_v59  ;;  %v7824_v59 = vld [vmem:[%s8218_s27 + $0x2ec] ss:$28 sps:$4 sm:$0xff]  }
 0x12e   : > { %2820 = vmatmul.mubr.bf16.gmra.mrb[52].mxu0 %v7724_v61  ;;  %3592 = vmatmul.mubr.bf16.gmra.mrb[52].mxu1 %v7724_v61  ;;  %v7833_v61 = vld [vmem:[%s8218_s27 + $0x324] ss:$28 sps:$4 sm:$0xff]  }
 0x12f   : > { %2829 = vmatprep.mubr.bf16.mxu0 %v7734_v62  ;;  %3601 = vmatprep.mubr.bf16.mxu1 %v7734_v62  ;;  %v7835_v62 = vld [vmem:[%s8218_s27 + $0x320] ss:$28 sps:$4 sm:$0xff]  }
 0x136   : > { %2830 = vmatmul.mubr.bf16.gmra.mrb[56].mxu0 %v7736_v63  ;;  %3602 = vmatmul.mubr.bf16.gmra.mrb[56].mxu1 %v7736_v63  ;;  %v7845_v63 = vld [vmem:[%s8218_s27 + $0x35c] ss:$28 sps:$4 sm:$0xff]  }
 0x137   : > { %2839 = vmatprep.mubr.bf16.mxu0 %v7746_v0  ;;  %3611 = vmatprep.mubr.bf16.mxu1 %v7746_v0  ;;  %v7847_v0 = vld [vmem:[%s8218_s27 + $0x358] ss:$28 sps:$4 sm:$0xff]  }
 0x13e   : > { %2840 = vmatmul.mubr.bf16.gmra.mrb[60].mxu0 %v7748_v1  ;;  %3612 = vmatmul.mubr.bf16.gmra.mrb[60].mxu1 %v7748_v1  ;;  %v8006_v1 = vmov 0  }
 0x13f   : > { %2882 = vmatprep.mubr.bf16.mxu0 %v7760_v2  ;;  %3654 = vmatprep.mubr.bf16.mxu1 %v7760_v2  ;;  %v7854_v2 = vld [vmem:[%s8218_s27 + $0x18] ss:$28 sps:$4 sm:$0xff]  }
 0x146   : > { %2883 = vmatmul.mubr.bf16.vlgmr.msra.gmra.mrb[0].mxu0 %v7758_v3  ;;  %3655 = vmatmul.mubr.bf16.vlgmr.msra.gmra.mrb[0].mxu1 %v7758_v3  ;;  %v7866_v3 = vld [vmem:[%s9658_s3] ss:$8 sps:$4 sm:$0xff]  }
 0x147   : > { %3044 = vmatpush1.bf16.msra.mxu0 %v7761_v4  ;;  %2892 = vmatprep.mubr.bf16.mxu0 %v7764_v5  ;;  %v7872_v4 = vld [vmem:[%s9658_s3 + $0x14] ss:$8 sps:$4 sm:$0xff]  }
 0x148   : > { %3664 = vmatprep.mubr.bf16.mxu1 %v7764_v5  ;;  %3045 = vmatprep.subr.bf16.mxu0 %v7772_v6  ;;  %v7870_v5 = vld [vmem:[%s9658_s3 + $0x10] ss:$8 sps:$4 sm:$0xff]   ;;  %v7876_v6 = vld [vmem:[%s9658_s3 + $0x24] ss:$8 sps:$4 sm:$0xff]  }
 0x149   : > { %3816 = vmatpush1.bf16.msra.mxu1 %v7818_v7  ;;  %v7855_v7 = vld [vmem:[%s8218_s27 + $0x50] ss:$28 sps:$4 sm:$0xff]  }
 0x14a   : > { %3817 = vmatprep.subr.bf16.mxu1 %v7823_v8  ;;  %v7874_v8 = vld [vmem:[%s9658_s3 + $0x20] ss:$8 sps:$4 sm:$0xff]  }
 0x14b   : > { %3046 = vmatpush1.bf16.msra.mxu0 %v7770_v9  ;;  %v7880_v9 = vld [vmem:[%s9658_s3 + $0x34] ss:$8 sps:$4 sm:$0xff]  }
 0x14c   : > { %3047 = vmatprep.subr.bf16.mxu0 %v7781_v10  ;;  %v7878_v10 = vld [vmem:[%s9658_s3 + $0x30] ss:$8 sps:$4 sm:$0xff]  }
 0x14d   : > { %3818 = vmatpush1.bf16.msra.mxu1 %v7821_v11  ;;  %v7884_v11 = vld [vmem:[%s9658_s3 + $0x44] ss:$8 sps:$4 sm:$0xff]  }
 0x14e   : > { %2893 = vmatmul.mubr.bf16.gmra.mrb[4].mxu0 %v7766_v12  ;;  %3665 = vmatmul.mubr.bf16.gmra.mrb[4].mxu1 %v7766_v12  ;;  %v7856_v12 = vld [vmem:[%s8218_s27 + $0x88] ss:$28 sps:$4 sm:$0xff]  }
 0x14f   : > { %2902 = vmatprep.mubr.bf16.mxu0 %v7767_v13  ;;  %3674 = vmatprep.mubr.bf16.mxu1 %v7767_v13  ;;  %v7882_v13 = vld [vmem:[%s9658_s3 + $0x40] ss:$8 sps:$4 sm:$0xff]  }
 0x150   : > { %3048 = vmatpush1.bf16.msra.mxu0 %v7779_v14  ;;  %3819 = vmatprep.subr.bf16.mxu1 %v7829_v15  ;;  %v7887_v14 = vld [vmem:[%s9658_s3 + $0x54] ss:$8 sps:$4 sm:$0xff]   ;;  %v7885_v15 = vld [vmem:[%s9658_s3 + $0x50] ss:$8 sps:$4 sm:$0xff]  }
 0x151   : > { %3049 = vmatprep.subr.bf16.mxu0 %v7790_v16  ;;  %3820 = vmatpush1.bf16.msra.mxu1 %v7827_v17  ;;  %v7890_v16 = vld [vmem:[%s9658_s3 + $0x64] ss:$8 sps:$4 sm:$0xff]   ;;  %v7857_v17 = vld [vmem:[%s8218_s27 + $0xc0] ss:$28 sps:$4 sm:$0xff]  }
 0x152   : > { %3821 = vmatprep.subr.bf16.mxu1 %v7832_v18  ;;  %v7888_v18 = vld [vmem:[%s9658_s3 + $0x60] ss:$8 sps:$4 sm:$0xff]  }
 0x154   : > { %3050 = vmatpush1.bf16.msra.mxu0 %v7788_v19  ;;  %v7893_v19 = vld [vmem:[%s9658_s3 + $0x74] ss:$8 sps:$4 sm:$0xff]  }
 0x155   : > { %3051 = vmatprep.subr.bf16.mxu0 %v7799_v20  ;;  %3822 = vmatpush1.bf16.msra.mxu1 %v7830_v21  ;;  %v7891_v20 = vld [vmem:[%s9658_s3 + $0x70] ss:$8 sps:$4 sm:$0xff]   ;;  %v7896_v21 = vld [vmem:[%s9658_s3 + $0x84] ss:$8 sps:$4 sm:$0xff]  }
 0x156   : > { %2903 = vmatmul.mubr.bf16.gmra.mrb[8].mxu0 %v7769_v22  ;;  %3675 = vmatmul.mubr.bf16.gmra.mrb[8].mxu1 %v7769_v22  ;;  %v7858_v22 = vld [vmem:[%s8218_s27 + $0xf8] ss:$28 sps:$4 sm:$0xff]  }
 0x157   : > { %2912 = vmatprep.mubr.bf16.mxu0 %v7773_v23  ;;  %3684 = vmatprep.mubr.bf16.mxu1 %v7773_v23  ;;  %v7894_v23 = vld [vmem:[%s9658_s3 + $0x80] ss:$8 sps:$4 sm:$0xff]  }
 0x158   : > { %3052 = vmatpush1.bf16.msra.mxu0 %v7797_v24  ;;  %3823 = vmatprep.subr.bf16.mxu1 %v7841_v25  ;;  %v7899_v24 = vld [vmem:[%s9658_s3 + $0x94] ss:$8 sps:$4 sm:$0xff]   ;;  %v7897_v25 = vld [vmem:[%s9658_s3 + $0x90] ss:$8 sps:$4 sm:$0xff]  }
 0x159   : > { %3053 = vmatprep.subr.bf16.mxu0 %v7808_v26  ;;  %3824 = vmatpush1.bf16.msra.mxu1 %v7839_v27  ;;  %v7902_v26 = vld [vmem:[%s9658_s3 + $0xa4] ss:$8 sps:$4 sm:$0xff]  }
 0x15a   : > { %3825 = vmatprep.subr.bf16.mxu1 %v7844_v28  ;;  %v7859_v27 = vld [vmem:[%s8218_s27 + $0x130] ss:$28 sps:$4 sm:$0xff]   ;;  %v7900_v28 = vld [vmem:[%s9658_s3 + $0xa0] ss:$8 sps:$4 sm:$0xff]  }
 0x15c   : > { %3054 = vmatpush1.bf16.msra.mxu0 %v7806_v29  ;;  %v7905_v29 = vld [vmem:[%s9658_s3 + $0xb4] ss:$8 sps:$4 sm:$0xff]  }
 0x15d   : > { %3055 = vmatprep.subr.bf16.mxu0 %v7817_v30  ;;  %3826 = vmatpush1.bf16.msra.mxu1 %v7842_v31  ;;  %v7903_v30 = vld [vmem:[%s9658_s3 + $0xb0] ss:$8 sps:$4 sm:$0xff]   ;;  %v7908_v31 = vld [vmem:[%s9658_s3 + $0xc4] ss:$8 sps:$4 sm:$0xff]  }
 0x15e   : > { %2913 = vmatmul.mubr.bf16.gmra.mrb[12].mxu0 %v7775_v32  ;;  %3685 = vmatmul.mubr.bf16.gmra.mrb[12].mxu1 %v7775_v32  ;;  %v7860_v32 = vld [vmem:[%s8218_s27 + $0x168] ss:$28 sps:$4 sm:$0xff]  }
 0x15f   : > { %2922 = vmatprep.mubr.bf16.mxu0 %v7776_v33  ;;  %3694 = vmatprep.mubr.bf16.mxu1 %v7776_v33  ;;  %v7906_v33 = vld [vmem:[%s9658_s3 + $0xc0] ss:$8 sps:$4 sm:$0xff]  }
 0x160   : > { %3056 = vmatpush1.bf16.msra.mxu0 %v7815_v34  ;;  %3827 = vmatprep.subr.bf16.mxu1 %v7850_v35  ;;  %v7911_v34 = vld [vmem:[%s9658_s3 + $0xd4] ss:$8 sps:$4 sm:$0xff]   ;;  %v7909_v35 = vld [vmem:[%s9658_s3 + $0xd0] ss:$8 sps:$4 sm:$0xff]  }
 0x161   : > { %3057 = vmatprep.subr.bf16.mxu0 %v7838_v36  ;;  %3828 = vmatpush1.bf16.msra.mxu1 %v7848_v37  ;;  %v7914_v36 = vld [vmem:[%s9658_s3 + $0xe4] ss:$8 sps:$4 sm:$0xff]   ;;  %v7861_v37 = vld [vmem:[%s8218_s27 + $0x1a0] ss:$28 sps:$4 sm:$0xff]  }
 0x162   : > { %3829 = vmatprep.subr.bf16.mxu1 %v7853_v38  ;;  %v7912_v38 = vld [vmem:[%s9658_s3 + $0xe0] ss:$8 sps:$4 sm:$0xff]  }
 0x164   : > { %3058 = vmatpush1.bf16.msra.mxu0 %v7836_v39  ;;  %v7862_v39 = vld [vmem:[%s8218_s27 + $0x1d8] ss:$28 sps:$4 sm:$0xff]  }
 0x165   : > { %3830 = vmatpush1.bf16.msra.mxu1 %v7851_v40  ;;  %4596 = vmatprep.subr.bf16.mxu0 %v7868_v57  ;;  %v7863_v40 = vld [vmem:[%s8218_s27 + $0x210] ss:$28 sps:$4 sm:$0xff]  }
 0x166   : > { %2923 = vmatmul.mubr.bf16.gmra.mrb[16].mxu0 %v7778_v41  ;;  %3695 = vmatmul.mubr.bf16.gmra.mrb[16].mxu1 %v7778_v41  ;;  %v7864_v41 = vld [vmem:[%s8218_s27 + $0x248] ss:$28 sps:$4 sm:$0xff]  }
 0x167   : > { %2932 = vmatprep.mubr.bf16.mxu0 %v7782_v42  ;;  %3704 = vmatprep.mubr.bf16.mxu1 %v7782_v42  ;;  %v7865_v42 = vld [vmem:[%s8218_s27 + $0x280] ss:$28 sps:$4 sm:$0xff]  }
 0x16e   : > { %2933 = vmatmul.mubr.bf16.gmra.mrb[20].mxu0 %v7784_v43  ;;  %3705 = vmatmul.mubr.bf16.gmra.mrb[20].mxu1 %v7784_v43  ;;  %v7917_v43 = vld [vmem:[%s9658_s3 + $0xf4] ss:$8 sps:$4 sm:$0xff]  }
 0x16f   : > { %2942 = vmatprep.mubr.bf16.mxu0 %v7785_v44  ;;  %3714 = vmatprep.mubr.bf16.mxu1 %v7785_v44  ;;  %v7915_v44 = vld [vmem:[%s9658_s3 + $0xf0] ss:$8 sps:$4 sm:$0xff]  }
 0x176   : > { %2943 = vmatmul.mubr.bf16.gmra.mrb[24].mxu0 %v7787_v45  ;;  %3715 = vmatmul.mubr.bf16.gmra.mrb[24].mxu1 %v7787_v45  ;;  %v7869_v45 = vld [vmem:[%s8218_s27 + $0x2b8] ss:$28 sps:$4 sm:$0xff]  }
 0x177   : > { %2952 = vmatprep.mubr.bf16.mxu0 %v7791_v46  ;;  %3724 = vmatprep.mubr.bf16.mxu1 %v7791_v46  ;;  %v7920_v46 = vld [vmem:[%s9658_s3 + $0x104] ss:$8 sps:$4 sm:$0xff]  }
 0x17e   : > { %2953 = vmatmul.mubr.bf16.gmra.mrb[28].mxu0 %v7793_v47  ;;  %3725 = vmatmul.mubr.bf16.gmra.mrb[28].mxu1 %v7793_v47  ;;  %v7873_v47 = vld [vmem:[%s8218_s27 + $0x2f0] ss:$28 sps:$4 sm:$0xff]  }
 0x17f   : > { %2962 = vmatprep.mubr.bf16.mxu0 %v7794_v48  ;;  %3734 = vmatprep.mubr.bf16.mxu1 %v7794_v48  ;;  %v7877_v48 = vld [vmem:[%s8218_s27 + $0x328] ss:$28 sps:$4 sm:$0xff]  }
 0x186   : > { %2963 = vmatmul.mubr.bf16.gmra.mrb[32].mxu0 %v7796_v49  ;;  %3735 = vmatmul.mubr.bf16.gmra.mrb[32].mxu1 %v7796_v49  ;;  %v7881_v49 = vld [vmem:[%s8218_s27 + $0x360] ss:$28 sps:$4 sm:$0xff]  }
 0x187   : > { %2972 = vmatprep.mubr.bf16.mxu0 %v7800_v50  ;;  %3744 = vmatprep.mubr.bf16.mxu1 %v7800_v50  ;;  %v748_v50 = vlaneseq }
 0x18e   : > { %2973 = vmatmul.mubr.bf16.gmra.mrb[36].mxu0 %v7802_v51  ;;  %3745 = vmatmul.mubr.bf16.gmra.mrb[36].mxu1 %v7802_v51  ;;  %v9000_v51 = vshrl.u32 %v748_v50, 7 }
 0x18f   : > { %2982 = vmatprep.mubr.bf16.mxu0 %v7803_v52  ;;  %3754 = vmatprep.mubr.bf16.mxu1 %v7803_v52 }
 0x190   : > { %v750_v52 = vsub.s32 0, %v9000_v51 }
 0x196   : > { %2983 = vmatmul.mubr.bf16.gmra.mrb[40].mxu0 %v7805_v53  ;;  %3755 = vmatmul.mubr.bf16.gmra.mrb[40].mxu1 %v7805_v53  ;;  %v758_v53 = vsub.s32 2, %v9000_v51 }
 0x197   : > { %2992 = vmatprep.mubr.bf16.mxu0 %v7809_v54  ;;  %3764 = vmatprep.mubr.bf16.mxu1 %v7809_v54  ;;  %v746_v54 = vld [vmem:[%s9657_s2] sm:$0xf] }
 0x198   : > { %v9011_v57 = vrot.slane %v746_v54, %v750_v52 }
 0x19e   : > { %2993 = vmatmul.mubr.bf16.gmra.mrb[44].mxu0 %v7811_v55  ;;  %3765 = vmatmul.mubr.bf16.gmra.mrb[44].mxu1 %v7811_v55  ;;  %v754_v55 = vsub.s32 1, %v9000_v51 }
 0x19f   : > { %3002 = vmatprep.mubr.bf16.mxu0 %v7812_v56  ;;  %3774 = vmatprep.mubr.bf16.mxu1 %v7812_v56  ;;  %v762_v56 = vsub.s32 3, %v9000_v51 }
 0x1a6   : > { %3003 = vmatmul.mubr.bf16.gmra.mrb[48].mxu0 %v7814_v58  ;;  %3775 = vmatmul.mubr.bf16.gmra.mrb[48].mxu1 %v7814_v58  ;;  %v9013_v58 = vrot.slane %v746_v54, %v758_v53 }
 0x1a7   : > { %3012 = vmatprep.mubr.bf16.mxu0 %v7824_v59  ;;  %3784 = vmatprep.mubr.bf16.mxu1 %v7824_v59  ;;  %v9017_v59 = vrot.slane %v746_v54, %v754_v55 }
 0x1ae   : > { %3013 = vmatmul.mubr.bf16.gmra.mrb[52].mxu0 %v7826_v60  ;;  %3785 = vmatmul.mubr.bf16.gmra.mrb[52].mxu1 %v7826_v60  ;;  %v9019_v60 = vrot.slane %v746_v54, %v762_v56 }
 0x1af   : > { %3022 = vmatprep.mubr.bf16.mxu0 %v7833_v61  ;;  %3794 = vmatprep.mubr.bf16.mxu1 %v7833_v61 }
 0x1b6   : > { %3023 = vmatmul.mubr.bf16.gmra.mrb[56].mxu0 %v7835_v62  ;;  %3795 = vmatmul.mubr.bf16.gmra.mrb[56].mxu1 %v7835_v62 }
 0x1b7   : > { %3032 = vmatprep.mubr.bf16.mxu0 %v7845_v63  ;;  %3804 = vmatprep.mubr.bf16.mxu1 %v7845_v63 }
 0x1be   : > { %3033 = vmatmul.mubr.bf16.gmra.mrb[60].mxu0 %v7847_v0  ;;  %3805 = vmatmul.mubr.bf16.gmra.mrb[60].mxu1 %v7847_v0 }
 0x1bf   : > { %3075 = vmatprep.mubr.bf16.mxu0 %v8006_v1  ;;  %3847 = vmatprep.mubr.bf16.mxu1 %v8006_v1 }
 0x1c6   : > { %3076 = vmatmul.mubr.bf16.vlgmr.msra.gmra.mrb[0].mxu0 %v7854_v2  ;;  %3848 = vmatmul.mubr.bf16.vlgmr.msra.gmra.mrb[0].mxu1 %v7854_v2 }
 0x1c7   : > { %3085 = vmatprep.mubr.bf16.mxu0 %v8006_v1  ;;  %3857 = vmatprep.mubr.bf16.mxu1 %v8006_v1 }
 0x1c8   : > { %4597 = vmatpush1.bf16.msra.mxu0 %v7866_v3 }
 0x1c9   : > { %4598 = vmatprep.subr.bf16.mxu0 %v7872_v4 }
 0x1cc   : > { %4599 = vmatpush1.bf16.msra.mxu0 %v7870_v5 }
 0x1cd   : > { %4600 = vmatprep.subr.bf16.mxu0 %v7876_v6 }
 0x1ce   : > { %3086 = vmatmul.mubr.bf16.gmra.mrb[4].mxu0 %v7855_v7  ;;  %3858 = vmatmul.mubr.bf16.gmra.mrb[4].mxu1 %v7855_v7 }
 0x1cf   : > { %3095 = vmatprep.mubr.bf16.mxu0 %v8006_v1  ;;  %3867 = vmatprep.mubr.bf16.mxu1 %v8006_v1 }
 0x1d0   : > { %4601 = vmatpush1.bf16.msra.mxu0 %v7874_v8 }
 0x1d1   : > { %4602 = vmatprep.subr.bf16.mxu0 %v7880_v9 }
 0x1d4   : > { %4603 = vmatpush1.bf16.msra.mxu0 %v7878_v10 }
 0x1d5   : > { %4604 = vmatprep.subr.bf16.mxu0 %v7884_v11 }
 0x1d6   : > { %3096 = vmatmul.mubr.bf16.gmra.mrb[8].mxu0 %v7856_v12  ;;  %3868 = vmatmul.mubr.bf16.gmra.mrb[8].mxu1 %v7856_v12 }
 0x1d7   : > { %3105 = vmatprep.mubr.bf16.mxu0 %v8006_v1  ;;  %3877 = vmatprep.mubr.bf16.mxu1 %v8006_v1 }
 0x1d8   : > { %4605 = vmatpush1.bf16.msra.mxu0 %v7882_v13 }
 0x1d9   : > { %4606 = vmatprep.subr.bf16.mxu0 %v7887_v14 }
 0x1dc   : > { %4607 = vmatpush1.bf16.msra.mxu0 %v7885_v15 }
 0x1dd   : > { %4608 = vmatprep.subr.bf16.mxu0 %v7890_v16 }
 0x1de   : > { %3106 = vmatmul.mubr.bf16.gmra.mrb[12].mxu0 %v7857_v17  ;;  %3878 = vmatmul.mubr.bf16.gmra.mrb[12].mxu1 %v7857_v17 }
 0x1df   : > { %3115 = vmatprep.mubr.bf16.mxu0 %v8006_v1  ;;  %3887 = vmatprep.mubr.bf16.mxu1 %v8006_v1 }
 0x1e0   : > { %4609 = vmatpush1.bf16.msra.mxu0 %v7888_v18 }
 0x1e1   : > { %4610 = vmatprep.subr.bf16.mxu0 %v7893_v19 }
 0x1e4   : > { %4611 = vmatpush1.bf16.msra.mxu0 %v7891_v20 }
 0x1e5   : > { %4612 = vmatprep.subr.bf16.mxu0 %v7896_v21 }
 0x1e6   : > { %3116 = vmatmul.mubr.bf16.gmra.mrb[16].mxu0 %v7858_v22  ;;  %3888 = vmatmul.mubr.bf16.gmra.mrb[16].mxu1 %v7858_v22 }
 0x1e7   : > { %3125 = vmatprep.mubr.bf16.mxu0 %v8006_v1  ;;  %3897 = vmatprep.mubr.bf16.mxu1 %v8006_v1 }
 0x1e8   : > { %4613 = vmatpush1.bf16.msra.mxu0 %v7894_v23 }
 0x1e9   : > { %4614 = vmatprep.subr.bf16.mxu0 %v7899_v24 }
 0x1ec   : > { %4615 = vmatpush1.bf16.msra.mxu0 %v7897_v25 }
 0x1ed   : > { %4616 = vmatprep.subr.bf16.mxu0 %v7902_v26 }
 0x1ee   : > { %3126 = vmatmul.mubr.bf16.gmra.mrb[20].mxu0 %v7859_v27  ;;  %3898 = vmatmul.mubr.bf16.gmra.mrb[20].mxu1 %v7859_v27  ;;  %v7918_v27 = vld [vmem:[%s9658_s3 + $0x100] ss:$8 sps:$4 sm:$0xff]  }
 0x1ef   : > { %3135 = vmatprep.mubr.bf16.mxu0 %v8006_v1  ;;  %3907 = vmatprep.mubr.bf16.mxu1 %v8006_v1 }
 0x1f0   : > { %4617 = vmatpush1.bf16.msra.mxu0 %v7900_v28 }
 0x1f1   : > { %4618 = vmatprep.subr.bf16.mxu0 %v7905_v29 }
 0x1f4   : > { %4619 = vmatpush1.bf16.msra.mxu0 %v7903_v30 }
 0x1f5   : > { %4620 = vmatprep.subr.bf16.mxu0 %v7908_v31 }
 0x1f6   : > { %3136 = vmatmul.mubr.bf16.gmra.mrb[24].mxu0 %v7860_v32  ;;  %3908 = vmatmul.mubr.bf16.gmra.mrb[24].mxu1 %v7860_v32  ;;  %v7923_v32 = vld [vmem:[%s9658_s3 + $0x114] ss:$8 sps:$4 sm:$0xff]  }
 0x1f7   : > { %3145 = vmatprep.mubr.bf16.mxu0 %v8006_v1  ;;  %3917 = vmatprep.mubr.bf16.mxu1 %v8006_v1 }
 0x1f8   : > { %4621 = vmatpush1.bf16.msra.mxu0 %v7906_v33 }
 0x1f9   : > { %4622 = vmatprep.subr.bf16.mxu0 %v7911_v34 }
 0x1fc   : > { %4623 = vmatpush1.bf16.msra.mxu0 %v7909_v35 }
 0x1fd   : > { %4624 = vmatprep.subr.bf16.mxu0 %v7914_v36 }
 0x1fe   : > { %3146 = vmatmul.mubr.bf16.gmra.mrb[28].mxu0 %v7861_v37  ;;  %3918 = vmatmul.mubr.bf16.gmra.mrb[28].mxu1 %v7861_v37 }
 0x1ff   : > { %3155 = vmatprep.mubr.bf16.mxu0 %v8006_v1  ;;  %3927 = vmatprep.mubr.bf16.mxu1 %v8006_v1 }
 0x200   : > { %4625 = vmatpush1.bf16.msra.mxu0 %v7912_v38 }
 0x201   : > { %4626 = vmatprep.subr.bf16.mxu0 %v7917_v43  ;;  %v7921_v43 = vld [vmem:[%s9658_s3 + $0x110] ss:$8 sps:$4 sm:$0xff]  }
 0x204   : > { %4627 = vmatpush1.bf16.msra.mxu0 %v7915_v44 }
 0x205   : > { %4789 = vmatprep.subr.bf16.mxu0 %v7920_v46 }
 0x206   : > { %3156 = vmatmul.mubr.bf16.gmra.mrb[32].mxu0 %v7862_v39  ;;  %3928 = vmatmul.mubr.bf16.gmra.mrb[32].mxu1 %v7862_v39 }
 0x207   : > { %3165 = vmatprep.mubr.bf16.mxu0 %v8006_v1  ;;  %3937 = vmatprep.mubr.bf16.mxu1 %v8006_v1 }
 0x20e   : > { %3166 = vmatmul.mubr.bf16.gmra.mrb[36].mxu0 %v7863_v40  ;;  %3938 = vmatmul.mubr.bf16.gmra.mrb[36].mxu1 %v7863_v40 }
 0x20f   : > { %3175 = vmatprep.mubr.bf16.mxu0 %v8006_v1  ;;  %3947 = vmatprep.mubr.bf16.mxu1 %v8006_v1 }
 0x216   : > { %3176 = vmatmul.mubr.bf16.gmra.mrb[40].mxu0 %v7864_v41  ;;  %3948 = vmatmul.mubr.bf16.gmra.mrb[40].mxu1 %v7864_v41 }
 0x217   : > { %3185 = vmatprep.mubr.bf16.mxu0 %v8006_v1  ;;  %3957 = vmatprep.mubr.bf16.mxu1 %v8006_v1 }
 0x21e   : > { %3186 = vmatmul.mubr.bf16.gmra.mrb[44].mxu0 %v7865_v42  ;;  %3958 = vmatmul.mubr.bf16.gmra.mrb[44].mxu1 %v7865_v42 }
 0x21f   : > { %3195 = vmatprep.mubr.bf16.mxu0 %v8006_v1  ;;  %3967 = vmatprep.mubr.bf16.mxu1 %v8006_v1 }
 0x226   : > { %3196 = vmatmul.mubr.bf16.gmra.mrb[48].mxu0 %v7869_v45  ;;  %3968 = vmatmul.mubr.bf16.gmra.mrb[48].mxu1 %v7869_v45 }
 0x227   : > { %3205 = vmatprep.mubr.bf16.mxu0 %v8006_v1  ;;  %3977 = vmatprep.mubr.bf16.mxu1 %v8006_v1 }
 0x22e   : > { %3206 = vmatmul.mubr.bf16.gmra.mrb[52].mxu0 %v7873_v47  ;;  %3978 = vmatmul.mubr.bf16.gmra.mrb[52].mxu1 %v7873_v47 }
 0x22f   : > { %3215 = vmatprep.mubr.bf16.mxu0 %v8006_v1  ;;  %3987 = vmatprep.mubr.bf16.mxu1 %v8006_v1 }
 0x236   : > { %3216 = vmatmul.mubr.bf16.gmra.mrb[56].mxu0 %v7877_v48  ;;  %3988 = vmatmul.mubr.bf16.gmra.mrb[56].mxu1 %v7877_v48  ;;  %v7926_v48 = vld [vmem:[%s9658_s3 + $0x124] ss:$8 sps:$4 sm:$0xff]  }
 0x237   : > { %3225 = vmatprep.mubr.bf16.mxu0 %v8006_v1  ;;  %3997 = vmatprep.mubr.bf16.mxu1 %v8006_v1 }
 0x23e   : > { %3226 = vmatmul.mubr.bf16.gmra.mrb[60].mxu0 %v7881_v49  ;;  %3998 = vmatmul.mubr.bf16.gmra.mrb[60].mxu1 %v7881_v49 }
 0x299   : > { %v3077_v61 = vpop.f32.mrb[0].mxu0  ;;  %v3849_v62 = vpop.f32.mrb[0].mxu1 }
 0x29a   : > { %v6724_v63 = vadd.f32 %v3077_v61, %v9011_v57  ;;  %v6788_v0 = vadd.f32 %v3849_v62, %v9013_v58  ;;  %v3079_v1 = vpop.f32.mrb[1].mxu0  ;;  %v3851_v2 = vpop.f32.mrb[1].mxu1 }
 0x29b   : > { %v6725_v3 = vadd.f32 %v3079_v1, %v9017_v59  ;;  %v6789_v4 = vadd.f32 %v3851_v2, %v9019_v60  ;;  %v3081_v5 = vpop.f32.mrb[2].mxu0  ;;  %v3853_v6 = vpop.f32.mrb[2].mxu1  ;;  %v7924_v2 = vld [vmem:[%s9658_s3 + $0x120] ss:$8 sps:$4 sm:$0xff]  }
 0x29c   : > { %v6726_v7 = vadd.f32 %v3081_v5, %v9011_v57  ;;  %v6790_v8 = vadd.f32 %v3853_v6, %v9013_v58  ;;  %v3083_v9 = vpop.f32.mrb[3].mxu0  ;;  %v3855_v10 = vpop.f32.mrb[3].mxu1  ;;  %v4008_v13 = vmax.f32 %v6724_v63, 0.0  ;;  %v4010_v14 = vmax.f32 %v6788_v0, 0.0 }
 0x29d   : > { %v6727_v11 = vadd.f32 %v3083_v9, %v9017_v59  ;;  %v6791_v12 = vadd.f32 %v3855_v10, %v9019_v60  ;;  %v4009_v17 = vmax.f32 %v6725_v3, 0.0  ;;  %v4011_v18 = vmax.f32 %v6789_v4, 0.0 }
 0x29e   : > { %v4012_v15 = vmax.f32 %v6726_v7, 0.0  ;;  %v4014_v16 = vmax.f32 %v6790_v8, 0.0  ;;  %v7929_v7 = vld [vmem:[%s9658_s3 + $0x134] ss:$8 sps:$4 sm:$0xff]  }
 0x29f   : > { %v4013_v19 = vmax.f32 %v6727_v11, 0.0  ;;  %v4015_v20 = vmax.f32 %v6791_v12, 0.0 }
 0x2a0   : > { %v4136_v21 = vpack.c.bf16 %v4012_v15, %v4008_v13  ;;  %v9029_v22 = vpack.c.bf16 %v4014_v16, %v4010_v14 }
 0x2a1   : > { %v4137_v23 = vpack.c.bf16 %v4013_v19, %v4009_v17  ;;  %v9031_v24 = vpack.c.bf16 %v4015_v20, %v4011_v18  ;;  %v3087_v25 = vpop.f32.mrb[4].mxu0  ;;  %v3859_v26 = vpop.f32.mrb[4].mxu1  ;;  %v7927_v18 = vld [vmem:[%s9658_s3 + $0x130] ss:$8 sps:$4 sm:$0xff]  }
 0x2a2   : > { %v6728_v28 = vadd.f32 %v3087_v25, %v9011_v57  ;;  %v6792_v29 = vadd.f32 %v3859_v26, %v9013_v58  ;;  %v3089_v30 = vpop.f32.mrb[5].mxu0  ;;  %v3861_v31 = vpop.f32.mrb[5].mxu1  ;;  %v7932_v25 = vld [vmem:[%s9658_s3 + $0x144] ss:$8 sps:$4 sm:$0xff]  }
 0x2a3   : > { %v6729_v33 = vadd.f32 %v3089_v30, %v9017_v59  ;;  %v6793_v34 = vadd.f32 %v3861_v31, %v9019_v60  ;;  %v3091_v35 = vpop.f32.mrb[6].mxu0  ;;  %v3863_v36 = vpop.f32.mrb[6].mxu1  ;;  %4628 = vmatprep.mubr.bf16.mxu0 %v4137_v23 }
 0x2a4   : > { %v6730_v37 = vadd.f32 %v3091_v35, %v9011_v57  ;;  %v6794_v38 = vadd.f32 %v3863_v36, %v9013_v58  ;;  %v3093_v39 = vpop.f32.mrb[7].mxu0  ;;  %v3865_v40 = vpop.f32.mrb[7].mxu1  ;;  %4629 = vmatmul.mubr.bf16.vlgmr.msra.gmra.mrb[64].mxu0 %v4136_v21  ;;  %v4016_v44 = vmax.f32 %v6728_v28, 0.0  ;;  %v4018_v45 = vmax.f32 %v6792_v29, 0.0  ;;  %v7930_v36 = vld [vmem:[%s9658_s3 + $0x140] ss:$8 sps:$4 sm:$0xff]  }
 0x2a5   : > { %v6731_v41 = vadd.f32 %v3093_v39, %v9017_v59  ;;  %v6795_v42 = vadd.f32 %v3865_v40, %v9019_v60  ;;  %4790 = vmatpush1.bf16.msra.mxu0 %v7918_v27  ;;  %v4017_v49 = vmax.f32 %v6729_v33, 0.0  ;;  %v4019_v50 = vmax.f32 %v6793_v34, 0.0 }
 0x2a6   : > { %v4020_v46 = vmax.f32 %v6730_v37, 0.0  ;;  %v4022_v47 = vmax.f32 %v6794_v38, 0.0  ;;  %4791 = vmatprep.subr.bf16.mxu0 %v7923_v32 }
 0x2a7   : > { %v4021_v53 = vmax.f32 %v6731_v41, 0.0  ;;  %v4023_v54 = vmax.f32 %v6795_v42, 0.0  ;;  %v7935_v41 = vld [vmem:[%s9658_s3 + $0x154] ss:$8 sps:$4 sm:$0xff]  }
 0x2a8   : > { %v4140_v56 = vpack.c.bf16 %v4020_v46, %v4016_v44  ;;  %v9053_v61 = vpack.c.bf16 %v4022_v47, %v4018_v45 }
 0x2a9   : > { %v4141_v62 = vpack.c.bf16 %v4021_v53, %v4017_v49  ;;  %v9055_v63 = vpack.c.bf16 %v4023_v54, %v4019_v50  ;;  %v3097_v0 = vpop.f32.mrb[8].mxu0  ;;  %v3869_v1 = vpop.f32.mrb[8].mxu1  ;;  %4792 = vmatpush1.bf16.msra.mxu0 %v7921_v43  ;;  %v7933_v54 = vld [vmem:[%s9658_s3 + $0x150] ss:$8 sps:$4 sm:$0xff]  }
 0x2aa   : > { %v6732_v3 = vadd.f32 %v3097_v0, %v9011_v57  ;;  %v6796_v4 = vadd.f32 %v3869_v1, %v9013_v58  ;;  %v3099_v5 = vpop.f32.mrb[9].mxu0  ;;  %v3871_v6 = vpop.f32.mrb[9].mxu1  ;;  %4793 = vmatprep.subr.bf16.mxu0 %v7926_v48 }
 0x2ab   : > { %v6733_v8 = vadd.f32 %v3099_v5, %v9017_v59  ;;  %v6797_v9 = vadd.f32 %v3871_v6, %v9019_v60  ;;  %v3101_v10 = vpop.f32.mrb[10].mxu0  ;;  %v3873_v11 = vpop.f32.mrb[10].mxu1  ;;  %4638 = vmatprep.mubr.bf16.mxu0 %v4141_v62 }
 0x2ac   : > { %v6734_v12 = vadd.f32 %v3101_v10, %v9011_v57  ;;  %v6798_v13 = vadd.f32 %v3873_v11, %v9013_v58  ;;  %v3103_v14 = vpop.f32.mrb[11].mxu0  ;;  %v3875_v15 = vpop.f32.mrb[11].mxu1  ;;  %4639 = vmatmul.mubr.bf16.gmra.mrb[68].mxu0 %v4140_v56  ;;  %v4024_v19 = vmax.f32 %v6732_v3, 0.0  ;;  %v4026_v20 = vmax.f32 %v6796_v4, 0.0 }
 0x2ad   : > { %v6735_v16 = vadd.f32 %v3103_v14, %v9017_v59  ;;  %v6799_v17 = vadd.f32 %v3875_v15, %v9019_v60  ;;  %4794 = vmatpush1.bf16.msra.mxu0 %v7924_v2  ;;  %v4025_v26 = vmax.f32 %v6733_v8, 0.0  ;;  %v4027_v27 = vmax.f32 %v6797_v9, 0.0  ;;  %v7938_v2 = vld [vmem:[%s9658_s3 + $0x164] ss:$8 sps:$4 sm:$0xff]  }
 0x2ae   : > { %v4028_v21 = vmax.f32 %v6734_v12, 0.0  ;;  %v4030_v23 = vmax.f32 %v6798_v13, 0.0  ;;  %4795 = vmatprep.subr.bf16.mxu0 %v7929_v7  ;;  %v7936_v13 = vld [vmem:[%s9658_s3 + $0x160] ss:$8 sps:$4 sm:$0xff]  }
 0x2af   : > { %v4029_v28 = vmax.f32 %v6735_v16, 0.0  ;;  %v4031_v29 = vmax.f32 %v6799_v17, 0.0 }
 0x2b0   : > { %v4144_v30 = vpack.c.bf16 %v4028_v21, %v4024_v19  ;;  %v9077_v31 = vpack.c.bf16 %v4030_v23, %v4026_v20 }
 0x2b1   : > { %v4145_v32 = vpack.c.bf16 %v4029_v28, %v4025_v26  ;;  %v9079_v33 = vpack.c.bf16 %v4031_v29, %v4027_v27  ;;  %v3107_v34 = vpop.f32.mrb[12].mxu0  ;;  %v3879_v35 = vpop.f32.mrb[12].mxu1  ;;  %4796 = vmatpush1.bf16.msra.mxu0 %v7927_v18  ;;  %v7941_v18 = vld [vmem:[%s9658_s3 + $0x174] ss:$8 sps:$4 sm:$0xff]  }
 0x2b2   : > { %v6736_v37 = vadd.f32 %v3107_v34, %v9011_v57  ;;  %v6800_v38 = vadd.f32 %v3879_v35, %v9013_v58  ;;  %v3109_v39 = vpop.f32.mrb[13].mxu0  ;;  %v3881_v40 = vpop.f32.mrb[13].mxu1  ;;  %4797 = vmatprep.subr.bf16.mxu0 %v7932_v25 }
 0x2b3   : > { %v6737_v42 = vadd.f32 %v3109_v39, %v9017_v59  ;;  %v6801_v43 = vadd.f32 %v3881_v40, %v9019_v60  ;;  %v3111_v44 = vpop.f32.mrb[14].mxu0  ;;  %v3883_v45 = vpop.f32.mrb[14].mxu1  ;;  %4648 = vmatprep.mubr.bf16.mxu0 %v4145_v32  ;;  %v7939_v32 = vld [vmem:[%s9658_s3 + $0x170] ss:$8 sps:$4 sm:$0xff]  }
 0x2b4   : > { %v6738_v46 = vadd.f32 %v3111_v44, %v9011_v57  ;;  %v6802_v47 = vadd.f32 %v3883_v45, %v9013_v58  ;;  %v3113_v48 = vpop.f32.mrb[15].mxu0  ;;  %v3885_v49 = vpop.f32.mrb[15].mxu1  ;;  %4649 = vmatmul.mubr.bf16.gmra.mrb[72].mxu0 %v4144_v30  ;;  %v4032_v56 = vmax.f32 %v6736_v37, 0.0  ;;  %v4034_v62 = vmax.f32 %v6800_v38, 0.0  ;;  %v7944_v38 = vld [vmem:[%s9658_s3 + $0x184] ss:$8 sps:$4 sm:$0xff]  }
 0x2b5   : > { %v6739_v50 = vadd.f32 %v3113_v48, %v9017_v59  ;;  %v6803_v53 = vadd.f32 %v3885_v49, %v9019_v60  ;;  %4798 = vmatpush1.bf16.msra.mxu0 %v7930_v36  ;;  %v4033_v3 = vmax.f32 %v6737_v42, 0.0  ;;  %v4035_v4 = vmax.f32 %v6801_v43, 0.0  ;;  %v7942_v49 = vld [vmem:[%s9658_s3 + $0x180] ss:$8 sps:$4 sm:$0xff]  }
 0x2b6   : > { %v4036_v0 = vmax.f32 %v6738_v46, 0.0  ;;  %v4038_v1 = vmax.f32 %v6802_v47, 0.0  ;;  %4799 = vmatprep.subr.bf16.mxu0 %v7935_v41 }
 0x2b7   : > { %v4037_v5 = vmax.f32 %v6739_v50, 0.0  ;;  %v4039_v6 = vmax.f32 %v6803_v53, 0.0 }
 0x2b8   : > { %v4148_v7 = vpack.c.bf16 %v4036_v0, %v4032_v56  ;;  %v9101_v8 = vpack.c.bf16 %v4038_v1, %v4034_v62  ;;  %v7947_v62 = vld [vmem:[%s9658_s3 + $0x194] ss:$8 sps:$4 sm:$0xff]  }
 0x2b9   : > { %v4149_v9 = vpack.c.bf16 %v4037_v5, %v4033_v3  ;;  %v9103_v10 = vpack.c.bf16 %v4039_v6, %v4035_v4  ;;  %v3117_v11 = vpop.f32.mrb[16].mxu0  ;;  %v3889_v12 = vpop.f32.mrb[16].mxu1  ;;  %4800 = vmatpush1.bf16.msra.mxu0 %v7933_v54 }
 0x2ba   : > { %v6740_v14 = vadd.f32 %v3117_v11, %v9011_v57  ;;  %v6804_v15 = vadd.f32 %v3889_v12, %v9013_v58  ;;  %v3119_v16 = vpop.f32.mrb[17].mxu0  ;;  %v3891_v17 = vpop.f32.mrb[17].mxu1  ;;  %4801 = vmatprep.subr.bf16.mxu0 %v7938_v2  ;;  %v7945_v12 = vld [vmem:[%s9658_s3 + $0x190] ss:$8 sps:$4 sm:$0xff]  }
 0x2bb   : > { %v6741_v19 = vadd.f32 %v3119_v16, %v9017_v59  ;;  %v6805_v20 = vadd.f32 %v3891_v17, %v9019_v60  ;;  %v3121_v21 = vpop.f32.mrb[18].mxu0  ;;  %v3893_v23 = vpop.f32.mrb[18].mxu1  ;;  %4658 = vmatprep.mubr.bf16.mxu0 %v4149_v9  ;;  %v7950_v17 = vld [vmem:[%s9658_s3 + $0x1a4] ss:$8 sps:$4 sm:$0xff]  }
 0x2bc   : > { %v6742_v25 = vadd.f32 %v3121_v21, %v9011_v57  ;;  %v6806_v26 = vadd.f32 %v3893_v23, %v9013_v58  ;;  %v3123_v27 = vpop.f32.mrb[19].mxu0  ;;  %v3895_v28 = vpop.f32.mrb[19].mxu1  ;;  %4659 = vmatmul.mubr.bf16.gmra.mrb[76].mxu0 %v4148_v7  ;;  %v4040_v34 = vmax.f32 %v6740_v14, 0.0  ;;  %v4042_v35 = vmax.f32 %v6804_v15, 0.0 }
 0x2bd   : > { %v6743_v29 = vadd.f32 %v3123_v27, %v9017_v59  ;;  %v6807_v30 = vadd.f32 %v3895_v28, %v9019_v60  ;;  %4802 = vmatpush1.bf16.msra.mxu0 %v7936_v13  ;;  %v4041_v39 = vmax.f32 %v6741_v19, 0.0  ;;  %v4043_v40 = vmax.f32 %v6805_v20, 0.0 }
 0x2be   : > { %v4044_v36 = vmax.f32 %v6742_v25, 0.0  ;;  %v4046_v37 = vmax.f32 %v6806_v26, 0.0  ;;  %4803 = vmatprep.subr.bf16.mxu0 %v7941_v18 }
 0x2bf   : > { %v4045_v41 = vmax.f32 %v6743_v29, 0.0  ;;  %v4047_v42 = vmax.f32 %v6807_v30, 0.0  ;;  %v7948_v30 = vld [vmem:[%s9658_s3 + $0x1a0] ss:$8 sps:$4 sm:$0xff]  }
 0x2c0   : > { %v4152_v43 = vpack.c.bf16 %v4044_v36, %v4040_v34  ;;  %v9125_v44 = vpack.c.bf16 %v4046_v37, %v4042_v35  ;;  %v7953_v37 = vld [vmem:[%s9658_s3 + $0x1b4] ss:$8 sps:$4 sm:$0xff]  }
 0x2c1   : > { %v4153_v45 = vpack.c.bf16 %v4045_v41, %v4041_v39  ;;  %v9127_v46 = vpack.c.bf16 %v4047_v42, %v4043_v40  ;;  %v3127_v47 = vpop.f32.mrb[20].mxu0  ;;  %v3899_v48 = vpop.f32.mrb[20].mxu1  ;;  %4804 = vmatpush1.bf16.msra.mxu0 %v7939_v32 }
 0x2c2   : > { %v6744_v50 = vadd.f32 %v3127_v47, %v9011_v57  ;;  %v6808_v53 = vadd.f32 %v3899_v48, %v9013_v58  ;;  %v3129_v54 = vpop.f32.mrb[21].mxu0  ;;  %v3901_v56 = vpop.f32.mrb[21].mxu1  ;;  %4805 = vmatprep.subr.bf16.mxu0 %v7944_v38 }
 0x2c3   : > { %v6745_v0 = vadd.f32 %v3129_v54, %v9017_v59  ;;  %v6809_v1 = vadd.f32 %v3901_v56, %v9019_v60  ;;  %v3131_v2 = vpop.f32.mrb[22].mxu0  ;;  %v3903_v3 = vpop.f32.mrb[22].mxu1  ;;  %4668 = vmatprep.mubr.bf16.mxu0 %v4153_v45 }
 0x2c4   : > { %v6746_v4 = vadd.f32 %v3131_v2, %v9011_v57  ;;  %v6810_v5 = vadd.f32 %v3903_v3, %v9013_v58  ;;  %v3133_v6 = vpop.f32.mrb[23].mxu0  ;;  %v3905_v7 = vpop.f32.mrb[23].mxu1  ;;  %4669 = vmatmul.mubr.bf16.gmra.mrb[80].mxu0 %v4152_v43  ;;  %v4048_v13 = vmax.f32 %v6744_v50, 0.0  ;;  %v4050_v14 = vmax.f32 %v6808_v53, 0.0  ;;  %v7951_v50 = vld [vmem:[%s9658_s3 + $0x1b0] ss:$8 sps:$4 sm:$0xff]  }
 0x2c5   : > { %v6747_v9 = vadd.f32 %v3133_v6, %v9017_v59  ;;  %v6811_v11 = vadd.f32 %v3905_v7, %v9019_v60  ;;  %4806 = vmatpush1.bf16.msra.mxu0 %v7942_v49  ;;  %v4049_v18 = vmax.f32 %v6745_v0, 0.0  ;;  %v4051_v19 = vmax.f32 %v6809_v1, 0.0  ;;  %v7956_v0 = vld [vmem:[%s9658_s3 + $0x1c4] ss:$8 sps:$4 sm:$0xff]  }
 0x2c6   : > { %v4052_v15 = vmax.f32 %v6746_v4, 0.0  ;;  %v4054_v16 = vmax.f32 %v6810_v5, 0.0  ;;  %4807 = vmatprep.subr.bf16.mxu0 %v7947_v62 }
 0x2c7   : > { %v4053_v20 = vmax.f32 %v6747_v9, 0.0  ;;  %v4055_v21 = vmax.f32 %v6811_v11, 0.0 }
 0x2c8   : > { %v4156_v23 = vpack.c.bf16 %v4052_v15, %v4048_v13  ;;  %v9149_v25 = vpack.c.bf16 %v4054_v16, %v4050_v14  ;;  %v7954_v13 = vld [vmem:[%s9658_s3 + $0x1c0] ss:$8 sps:$4 sm:$0xff]  }
 0x2c9   : > { %v4157_v26 = vpack.c.bf16 %v4053_v20, %v4049_v18  ;;  %v9151_v27 = vpack.c.bf16 %v4055_v21, %v4051_v19  ;;  %v3137_v28 = vpop.f32.mrb[24].mxu0  ;;  %v3909_v29 = vpop.f32.mrb[24].mxu1  ;;  %4808 = vmatpush1.bf16.msra.mxu0 %v7945_v12  ;;  %v7959_v18 = vld [vmem:[%s9658_s3 + $0x1d4] ss:$8 sps:$4 sm:$0xff]  }
 0x2ca   : > { %v6748_v32 = vadd.f32 %v3137_v28, %v9011_v57  ;;  %v6812_v34 = vadd.f32 %v3909_v29, %v9013_v58  ;;  %v3139_v35 = vpop.f32.mrb[25].mxu0  ;;  %v3911_v36 = vpop.f32.mrb[25].mxu1  ;;  %4809 = vmatprep.subr.bf16.mxu0 %v7950_v17 }
 0x2cb   : > { %v6749_v38 = vadd.f32 %v3139_v35, %v9017_v59  ;;  %v6813_v39 = vadd.f32 %v3911_v36, %v9019_v60  ;;  %v3141_v40 = vpop.f32.mrb[26].mxu0  ;;  %v3913_v41 = vpop.f32.mrb[26].mxu1  ;;  %4678 = vmatprep.mubr.bf16.mxu0 %v4157_v26  ;;  %v7957_v35 = vld [vmem:[%s9658_s3 + $0x1d0] ss:$8 sps:$4 sm:$0xff]  }
 0x2cc   : > { %v6750_v42 = vadd.f32 %v3141_v40, %v9011_v57  ;;  %v6814_v43 = vadd.f32 %v3913_v41, %v9013_v58  ;;  %v3143_v45 = vpop.f32.mrb[27].mxu0  ;;  %v3915_v47 = vpop.f32.mrb[27].mxu1  ;;  %4679 = vmatmul.mubr.bf16.gmra.mrb[84].mxu0 %v4156_v23  ;;  %v4056_v53 = vmax.f32 %v6748_v32, 0.0  ;;  %v4058_v54 = vmax.f32 %v6812_v34, 0.0  ;;  %v7962_v40 = vld [vmem:[%s9658_s3 + $0x1e4] ss:$8 sps:$4 sm:$0xff]  }
 0x2cd   : > { %v6751_v48 = vadd.f32 %v3143_v45, %v9017_v59  ;;  %v6815_v49 = vadd.f32 %v3915_v47, %v9019_v60  ;;  %4810 = vmatpush1.bf16.msra.mxu0 %v7948_v30  ;;  %v4057_v1 = vmax.f32 %v6749_v38, 0.0  ;;  %v4059_v2 = vmax.f32 %v6813_v39, 0.0 }
 0x2ce   : > { %v4060_v56 = vmax.f32 %v6750_v42, 0.0  ;;  %v4062_v62 = vmax.f32 %v6814_v43, 0.0  ;;  %4811 = vmatprep.subr.bf16.mxu0 %v7953_v37 }
 0x2cf   : > { %v4061_v3 = vmax.f32 %v6751_v48, 0.0  ;;  %v4063_v4 = vmax.f32 %v6815_v49, 0.0 }
 0x2d0   : > { %v4160_v5 = vpack.c.bf16 %v4060_v56, %v4056_v53  ;;  %v9173_v6 = vpack.c.bf16 %v4062_v62, %v4058_v54  ;;  %v7960_v56 = vld [vmem:[%s9658_s3 + $0x1e0] ss:$8 sps:$4 sm:$0xff]  }
 0x2d1   : > { %v4161_v7 = vpack.c.bf16 %v4061_v3, %v4057_v1  ;;  %v9175_v9 = vpack.c.bf16 %v4063_v4, %v4059_v2  ;;  %v3147_v11 = vpop.f32.mrb[28].mxu0  ;;  %v3919_v12 = vpop.f32.mrb[28].mxu1  ;;  %4812 = vmatpush1.bf16.msra.mxu0 %v7951_v50  ;;  %v7965_v3 = vld [vmem:[%s9658_s3 + $0x1f4] ss:$8 sps:$4 sm:$0xff]  }
 0x2d2   : > { %v6752_v14 = vadd.f32 %v3147_v11, %v9011_v57  ;;  %v6816_v15 = vadd.f32 %v3919_v12, %v9013_v58  ;;  %v3149_v16 = vpop.f32.mrb[29].mxu0  ;;  %v3921_v17 = vpop.f32.mrb[29].mxu1  ;;  %4813 = vmatprep.subr.bf16.mxu0 %v7956_v0 }
 0x2d3   : > { %v6753_v19 = vadd.f32 %v3149_v16, %v9017_v59  ;;  %v6817_v20 = vadd.f32 %v3921_v17, %v9019_v60  ;;  %v3151_v21 = vpop.f32.mrb[30].mxu0  ;;  %v3923_v23 = vpop.f32.mrb[30].mxu1  ;;  %4688 = vmatprep.mubr.bf16.mxu0 %v4161_v7 }
 0x2d4   : > { %v6754_v26 = vadd.f32 %v3151_v21, %v9011_v57  ;;  %v6818_v28 = vadd.f32 %v3923_v23, %v9013_v58  ;;  %v3153_v29 = vpop.f32.mrb[31].mxu0  ;;  %v3925_v30 = vpop.f32.mrb[31].mxu1  ;;  %4689 = vmatmul.mubr.bf16.gmra.mrb[88].mxu0 %v4160_v5  ;;  %v4064_v36 = vmax.f32 %v6752_v14, 0.0  ;;  %v4066_v37 = vmax.f32 %v6816_v15, 0.0 }
 0x2d5   : > { %v6755_v32 = vadd.f32 %v3153_v29, %v9017_v59  ;;  %v6819_v34 = vadd.f32 %v3925_v30, %v9019_v60  ;;  %4814 = vmatpush1.bf16.msra.mxu0 %v7954_v13  ;;  %v4065_v41 = vmax.f32 %v6753_v19, 0.0  ;;  %v4067_v42 = vmax.f32 %v6817_v20, 0.0 }
 0x2d6   : > { %v4068_v38 = vmax.f32 %v6754_v26, 0.0  ;;  %v4070_v39 = vmax.f32 %v6818_v28, 0.0  ;;  %4815 = vmatprep.subr.bf16.mxu0 %v7959_v18  ;;  %v7963_v18 = vld [vmem:[%s9658_s3 + $0x1f0] ss:$8 sps:$4 sm:$0xff]  }
 0x2d7   : > { %v4069_v43 = vmax.f32 %v6755_v32, 0.0  ;;  %v4071_v45 = vmax.f32 %v6819_v34, 0.0 }
 0x2d8   : > { %v4164_v47 = vpack.c.bf16 %v4068_v38, %v4064_v36  ;;  %v9197_v48 = vpack.c.bf16 %v4070_v39, %v4066_v37 }
 0x2d9   : > { %v4165_v49 = vpack.c.bf16 %v4069_v43, %v4065_v41  ;;  %v9199_v50 = vpack.c.bf16 %v4071_v45, %v4067_v42  ;;  %v3157_v53 = vpop.f32.mrb[32].mxu0  ;;  %v3929_v54 = vpop.f32.mrb[32].mxu1  ;;  %4816 = vmatpush1.bf16.msra.mxu0 %v7957_v35 }
 0x2da   : > { %v6756_v62 = vadd.f32 %v3157_v53, %v9011_v57  ;;  %v6820_v0 = vadd.f32 %v3929_v54, %v9013_v58  ;;  %v3159_v1 = vpop.f32.mrb[33].mxu0  ;;  %v3931_v2 = vpop.f32.mrb[33].mxu1  ;;  %4817 = vmatprep.subr.bf16.mxu0 %v7962_v40 }
 0x2db   : > { %v6757_v4 = vadd.f32 %v3159_v1, %v9017_v59  ;;  %v6821_v5 = vadd.f32 %v3931_v2, %v9019_v60  ;;  %v3161_v7 = vpop.f32.mrb[34].mxu0  ;;  %v3933_v11 = vpop.f32.mrb[34].mxu1  ;;  %4698 = vmatprep.mubr.bf16.mxu0 %v4165_v49 }
 0x2dc   : > { %v6758_v12 = vadd.f32 %v3161_v7, %v9011_v57  ;;  %v6822_v13 = vadd.f32 %v3933_v11, %v9013_v58  ;;  %v3163_v14 = vpop.f32.mrb[35].mxu0  ;;  %v3935_v15 = vpop.f32.mrb[35].mxu1  ;;  %4699 = vmatmul.mubr.bf16.gmra.mrb[92].mxu0 %v4164_v47  ;;  %v4072_v19 = vmax.f32 %v6756_v62, 0.0  ;;  %v4074_v20 = vmax.f32 %v6820_v0, 0.0 }
 0x2dd   : > { %v6759_v16 = vadd.f32 %v3163_v14, %v9017_v59  ;;  %v6823_v17 = vadd.f32 %v3935_v15, %v9019_v60  ;;  %4818 = vmatpush1.bf16.msra.mxu0 %v7960_v56  ;;  %v4073_v26 = vmax.f32 %v6757_v4, 0.0  ;;  %v4075_v28 = vmax.f32 %v6821_v5, 0.0 }
 0x2de   : > { %v4076_v21 = vmax.f32 %v6758_v12, 0.0  ;;  %v4078_v23 = vmax.f32 %v6822_v13, 0.0  ;;  %4819 = vmatprep.subr.bf16.mxu0 %v7965_v3 }
 0x2df   : > { %v4077_v29 = vmax.f32 %v6759_v16, 0.0  ;;  %v4079_v30 = vmax.f32 %v6823_v17, 0.0 }
 0x2e0   : > { %v4168_v32 = vpack.c.bf16 %v4076_v21, %v4072_v19  ;;  %v9218_v34 = vpack.c.bf16 %v4078_v23, %v4074_v20 }
 0x2e1   : > { %v4169_v35 = vpack.c.bf16 %v4077_v29, %v4073_v26  ;;  %v9220_v36 = vpack.c.bf16 %v4079_v30, %v4075_v28  ;;  %v3167_v37 = vpop.f32.mrb[36].mxu0  ;;  %v3939_v38 = vpop.f32.mrb[36].mxu1  ;;  %4820 = vmatpush1.bf16.msra.mxu0 %v7963_v18 }
 0x2e2   : > { %v6760_v39 = vadd.f32 %v3167_v37, %v9011_v57  ;;  %v6824_v40 = vadd.f32 %v3939_v38, %v9013_v58  ;;  %v3169_v41 = vpop.f32.mrb[37].mxu0  ;;  %v3941_v42 = vpop.f32.mrb[37].mxu1 }
 0x2e3   : > { %v6761_v43 = vadd.f32 %v3169_v41, %v9017_v59  ;;  %v6825_v45 = vadd.f32 %v3941_v42, %v9019_v60  ;;  %v3171_v47 = vpop.f32.mrb[38].mxu0  ;;  %v3943_v49 = vpop.f32.mrb[38].mxu1  ;;  %4708 = vmatprep.mubr.bf16.mxu0 %v4169_v35 }
 0x2e4   : > { %v6762_v53 = vadd.f32 %v3171_v47, %v9011_v57  ;;  %v6826_v54 = vadd.f32 %v3943_v49, %v9013_v58  ;;  %v3173_v56 = vpop.f32.mrb[39].mxu0  ;;  %v3945_v62 = vpop.f32.mrb[39].mxu1  ;;  %4709 = vmatmul.mubr.bf16.gmra.mrb[96].mxu0 %v4168_v32  ;;  %v4080_v2 = vmax.f32 %v6760_v39, 0.0  ;;  %v4082_v3 = vmax.f32 %v6824_v40, 0.0 }
 0x2e5   : > { %v6763_v0 = vadd.f32 %v3173_v56, %v9017_v59  ;;  %v6827_v1 = vadd.f32 %v3945_v62, %v9019_v60  ;;  %v4081_v7 = vmax.f32 %v6761_v43, 0.0  ;;  %v4083_v11 = vmax.f32 %v6825_v45, 0.0 }
 0x2e6   : > { %v4084_v4 = vmax.f32 %v6762_v53, 0.0  ;;  %v4086_v5 = vmax.f32 %v6826_v54, 0.0 }
 0x2e7   : > { %v4085_v12 = vmax.f32 %v6763_v0, 0.0  ;;  %v4087_v13 = vmax.f32 %v6827_v1, 0.0 }
 0x2e8   : > { %v4172_v14 = vpack.c.bf16 %v4084_v4, %v4080_v2  ;;  %v9230_v15 = vpack.c.bf16 %v4086_v5, %v4082_v3 }
 0x2e9   : > { %v4173_v16 = vpack.c.bf16 %v4085_v12, %v4081_v7  ;;  %v9232_v17 = vpack.c.bf16 %v4087_v13, %v4083_v11  ;;  %v3177_v18 = vpop.f32.mrb[40].mxu0  ;;  %v3949_v19 = vpop.f32.mrb[40].mxu1 }
 0x2ea   : > { %v6764_v20 = vadd.f32 %v3177_v18, %v9011_v57  ;;  %v6828_v21 = vadd.f32 %v3949_v19, %v9013_v58  ;;  %v3179_v23 = vpop.f32.mrb[41].mxu0  ;;  %v3951_v26 = vpop.f32.mrb[41].mxu1 }
 0x2eb   : > { %v6765_v28 = vadd.f32 %v3179_v23, %v9017_v59  ;;  %v6829_v29 = vadd.f32 %v3951_v26, %v9019_v60  ;;  %v3181_v30 = vpop.f32.mrb[42].mxu0  ;;  %v3953_v32 = vpop.f32.mrb[42].mxu1  ;;  %4718 = vmatprep.mubr.bf16.mxu0 %v4173_v16 }
 0x2ec   : > { %v6766_v35 = vadd.f32 %v3181_v30, %v9011_v57  ;;  %v6830_v37 = vadd.f32 %v3953_v32, %v9013_v58  ;;  %v3183_v38 = vpop.f32.mrb[43].mxu0  ;;  %v3955_v39 = vpop.f32.mrb[43].mxu1  ;;  %4719 = vmatmul.mubr.bf16.gmra.mrb[100].mxu0 %v4172_v14  ;;  %v4088_v42 = vmax.f32 %v6764_v20, 0.0  ;;  %v4090_v43 = vmax.f32 %v6828_v21, 0.0 }
 0x2ed   : > { %v6767_v40 = vadd.f32 %v3183_v38, %v9017_v59  ;;  %v6831_v41 = vadd.f32 %v3955_v39, %v9019_v60  ;;  %v4089_v49 = vmax.f32 %v6765_v28, 0.0  ;;  %v4091_v53 = vmax.f32 %v6829_v29, 0.0 }
 0x2ee   : > { %v4092_v45 = vmax.f32 %v6766_v35, 0.0  ;;  %v4094_v47 = vmax.f32 %v6830_v37, 0.0 }
 0x2ef   : > { %v4093_v54 = vmax.f32 %v6767_v40, 0.0  ;;  %v4095_v56 = vmax.f32 %v6831_v41, 0.0 }
 0x2f0   : > { %v4176_v62 = vpack.c.bf16 %v4092_v45, %v4088_v42  ;;  %v9242_v0 = vpack.c.bf16 %v4094_v47, %v4090_v43 }
 0x2f1   : > { %v4177_v1 = vpack.c.bf16 %v4093_v54, %v4089_v49  ;;  %v9244_v2 = vpack.c.bf16 %v4095_v56, %v4091_v53  ;;  %v3187_v3 = vpop.f32.mrb[44].mxu0  ;;  %v3959_v4 = vpop.f32.mrb[44].mxu1 }
 0x2f2   : > { %v6768_v5 = vadd.f32 %v3187_v3, %v9011_v57  ;;  %v6832_v7 = vadd.f32 %v3959_v4, %v9013_v58  ;;  %v3189_v11 = vpop.f32.mrb[45].mxu0  ;;  %v3961_v12 = vpop.f32.mrb[45].mxu1 }
 0x2f3   : > { %v6769_v13 = vadd.f32 %v3189_v11, %v9017_v59  ;;  %v6833_v14 = vadd.f32 %v3961_v12, %v9019_v60  ;;  %v3191_v16 = vpop.f32.mrb[46].mxu0  ;;  %v3963_v18 = vpop.f32.mrb[46].mxu1  ;;  %4728 = vmatprep.mubr.bf16.mxu0 %v4177_v1 }
 0x2f4   : > { %v6770_v19 = vadd.f32 %v3191_v16, %v9011_v57  ;;  %v6834_v20 = vadd.f32 %v3963_v18, %v9013_v58  ;;  %v3193_v21 = vpop.f32.mrb[47].mxu0  ;;  %v3965_v23 = vpop.f32.mrb[47].mxu1  ;;  %4729 = vmatmul.mubr.bf16.gmra.mrb[104].mxu0 %v4176_v62  ;;  %v4096_v29 = vmax.f32 %v6768_v5, 0.0  ;;  %v4098_v30 = vmax.f32 %v6832_v7, 0.0  ;;  %v7966_v18 = vld [vmem:[%s9660_s5 + $0x40] sm:$0xff]  }
 0x2f5   : > { %v6771_v26 = vadd.f32 %v3193_v21, %v9017_v59  ;;  %v6835_v28 = vadd.f32 %v3965_v23, %v9019_v60  ;;  %v4097_v37 = vmax.f32 %v6769_v13, 0.0  ;;  %v4099_v38 = vmax.f32 %v6833_v14, 0.0  ;;  %6468 = vmatprep.subr.bf16.mxu1 %v7966_v18 }
 0x2f6   : > { %v4100_v32 = vmax.f32 %v6770_v19, 0.0  ;;  %v4102_v35 = vmax.f32 %v6834_v20, 0.0  ;;  %v7967_v19 = vld [vmem:[%s9660_s5] sm:$0xff]  }
 0x2f7   : > { %v4101_v39 = vmax.f32 %v6771_v26, 0.0  ;;  %v4103_v40 = vmax.f32 %v6835_v28, 0.0  ;;  %6469 = vmatpush3.bf16.msra.mxu1 %v7967_v19 }
 0x2f8   : > { %v4180_v41 = vpack.c.bf16 %v4100_v32, %v4096_v29  ;;  %v9254_v42 = vpack.c.bf16 %v4102_v35, %v4098_v30 }
 0x2f9   : > { %v4181_v43 = vpack.c.bf16 %v4101_v39, %v4097_v37  ;;  %v9256_v45 = vpack.c.bf16 %v4103_v40, %v4099_v38  ;;  %v3197_v47 = vpop.f32.mrb[48].mxu0  ;;  %v3969_v49 = vpop.f32.mrb[48].mxu1 }
 0x2fa   : > { %v6772_v53 = vadd.f32 %v3197_v47, %v9011_v57  ;;  %v6836_v54 = vadd.f32 %v3969_v49, %v9013_v58  ;;  %v3199_v56 = vpop.f32.mrb[49].mxu0  ;;  %v3971_v62 = vpop.f32.mrb[49].mxu1 }
 0x2fb   : > { %v6773_v1 = vadd.f32 %v3199_v56, %v9017_v59  ;;  %v6837_v3 = vadd.f32 %v3971_v62, %v9019_v60  ;;  %v3201_v4 = vpop.f32.mrb[50].mxu0  ;;  %v3973_v5 = vpop.f32.mrb[50].mxu1  ;;  %4738 = vmatprep.mubr.bf16.mxu0 %v4181_v43 }
 0x2fc   : > { %v6774_v7 = vadd.f32 %v3201_v4, %v9011_v57  ;;  %v6838_v11 = vadd.f32 %v3973_v5, %v9013_v58  ;;  %v3203_v12 = vpop.f32.mrb[51].mxu0  ;;  %v3975_v13 = vpop.f32.mrb[51].mxu1  ;;  %4739 = vmatmul.mubr.bf16.gmra.mrb[108].mxu0 %v4180_v41  ;;  %v4104_v20 = vmax.f32 %v6772_v53, 0.0  ;;  %v4106_v21 = vmax.f32 %v6836_v54, 0.0 }
 0x2fd   : > { %v6775_v14 = vadd.f32 %v3203_v12, %v9017_v59  ;;  %v6839_v16 = vadd.f32 %v3975_v13, %v9019_v60  ;;  %v4105_v28 = vmax.f32 %v6773_v1, 0.0  ;;  %v4107_v29 = vmax.f32 %v6837_v3, 0.0 }
 0x2fe   : > { %v4108_v23 = vmax.f32 %v6774_v7, 0.0  ;;  %v4110_v26 = vmax.f32 %v6838_v11, 0.0 }
 0x2ff   : > { %v4109_v30 = vmax.f32 %v6775_v14, 0.0  ;;  %v4111_v32 = vmax.f32 %v6839_v16, 0.0 }
 0x300   : > { %v4184_v35 = vpack.c.bf16 %v4108_v23, %v4104_v20  ;;  %v9272_v37 = vpack.c.bf16 %v4110_v26, %v4106_v21 }
 0x301   : > { %v4185_v38 = vpack.c.bf16 %v4109_v30, %v4105_v28  ;;  %v9274_v39 = vpack.c.bf16 %v4111_v32, %v4107_v29  ;;  %v3207_v40 = vpop.f32.mrb[52].mxu0  ;;  %v3979_v41 = vpop.f32.mrb[52].mxu1 }
 0x302   : > { %v6776_v43 = vadd.f32 %v3207_v40, %v9011_v57  ;;  %v6840_v47 = vadd.f32 %v3979_v41, %v9013_v58  ;;  %v3209_v49 = vpop.f32.mrb[53].mxu0  ;;  %v3981_v53 = vpop.f32.mrb[53].mxu1 }
 0x303   : > { %v6777_v54 = vadd.f32 %v3209_v49, %v9017_v59  ;;  %v6841_v56 = vadd.f32 %v3981_v53, %v9019_v60  ;;  %v3211_v62 = vpop.f32.mrb[54].mxu0  ;;  %v3983_v1 = vpop.f32.mrb[54].mxu1  ;;  %4748 = vmatprep.mubr.bf16.mxu0 %v4185_v38 }
 0x304   : > { %v6778_v3 = vadd.f32 %v3211_v62, %v9011_v57  ;;  %v6842_v4 = vadd.f32 %v3983_v1, %v9013_v58  ;;  %v3213_v5 = vpop.f32.mrb[55].mxu0  ;;  %v3985_v7 = vpop.f32.mrb[55].mxu1  ;;  %4749 = vmatmul.mubr.bf16.gmra.mrb[112].mxu0 %v4184_v35  ;;  %v4112_v13 = vmax.f32 %v6776_v43, 0.0  ;;  %v4114_v14 = vmax.f32 %v6840_v47, 0.0 }
 0x305   : > { %v6779_v11 = vadd.f32 %v3213_v5, %v9017_v59  ;;  %v6843_v12 = vadd.f32 %v3985_v7, %v9019_v60  ;;  %v4113_v19 = vmax.f32 %v6777_v54, 0.0  ;;  %v4115_v20 = vmax.f32 %v6841_v56, 0.0  ;;  %v7968_v7 = vld [vmem:[%s9660_s5 + $0x48] sm:$0xff]  }
 0x306   : > { %v4116_v16 = vmax.f32 %v6778_v3, 0.0  ;;  %v4118_v18 = vmax.f32 %v6842_v4, 0.0  ;;  %6470 = vmatprep.subr.bf16.mxu1 %v7968_v7 }
 0x307   : > { %v4117_v21 = vmax.f32 %v6779_v11, 0.0  ;;  %v4119_v23 = vmax.f32 %v6843_v12, 0.0  ;;  %v7969_v11 = vld [vmem:[%s9660_s5 + $0x8] sm:$0xff]  }
 0x308   : > { %v4188_v26 = vpack.c.bf16 %v4116_v16, %v4112_v13  ;;  %v9284_v28 = vpack.c.bf16 %v4118_v18, %v4114_v14  ;;  %6471 = vmatpush3.bf16.msra.mxu1 %v7969_v11 }
 0x309   : > { %v4189_v29 = vpack.c.bf16 %v4117_v21, %v4113_v19  ;;  %v9286_v30 = vpack.c.bf16 %v4119_v23, %v4115_v20  ;;  %v3217_v32 = vpop.f32.mrb[56].mxu0  ;;  %v3989_v35 = vpop.f32.mrb[56].mxu1 }
 0x30a   : > { %v6780_v38 = vadd.f32 %v3217_v32, %v9011_v57  ;;  %v6844_v40 = vadd.f32 %v3989_v35, %v9013_v58  ;;  %v3219_v41 = vpop.f32.mrb[57].mxu0  ;;  %v3991_v43 = vpop.f32.mrb[57].mxu1 }
 0x30b   : > { %v6781_v47 = vadd.f32 %v3219_v41, %v9017_v59  ;;  %v6845_v49 = vadd.f32 %v3991_v43, %v9019_v60  ;;  %v3221_v53 = vpop.f32.mrb[58].mxu0  ;;  %v3993_v54 = vpop.f32.mrb[58].mxu1  ;;  %4758 = vmatprep.mubr.bf16.mxu0 %v4189_v29 }
 0x30c   : > { %v6782_v56 = vadd.f32 %v3221_v53, %v9011_v57  ;;  %v6846_v62 = vadd.f32 %v3993_v54, %v9013_v58  ;;  %v3223_v1 = vpop.f32.mrb[59].mxu0  ;;  %v3995_v3 = vpop.f32.mrb[59].mxu1  ;;  %4759 = vmatmul.mubr.bf16.gmra.mrb[116].mxu0 %v4188_v26  ;;  %v4120_v12 = vmax.f32 %v6780_v38, 0.0  ;;  %v4122_v13 = vmax.f32 %v6844_v40, 0.0 }
 0x30d   : > { %v6783_v4 = vadd.f32 %v3223_v1, %v9017_v59  ;;  %v6847_v5 = vadd.f32 %v3995_v3, %v9019_v60  ;;  %v4121_v18 = vmax.f32 %v6781_v47, 0.0  ;;  %v4123_v19 = vmax.f32 %v6845_v49, 0.0 }
 0x30e   : > { %v4124_v14 = vmax.f32 %v6782_v56, 0.0  ;;  %v4126_v16 = vmax.f32 %v6846_v62, 0.0 }
 0x30f   : > { %v4125_v20 = vmax.f32 %v6783_v4, 0.0  ;;  %v4127_v21 = vmax.f32 %v6847_v5, 0.0 }
 0x310   : > { %v4192_v23 = vpack.c.bf16 %v4124_v14, %v4120_v12  ;;  %v9302_v26 = vpack.c.bf16 %v4126_v16, %v4122_v13 }
 0x311   : > { %v4193_v29 = vpack.c.bf16 %v4125_v20, %v4121_v18  ;;  %v9304_v32 = vpack.c.bf16 %v4127_v21, %v4123_v19  ;;  %v3227_v35 = vpop.f32.mrb[60].mxu0  ;;  %v3999_v41 = vpop.f32.mrb[60].mxu1 }
 0x312   : > { %v6784_v43 = vadd.f32 %v3227_v35, %v9011_v57  ;;  %v6848_v38 = vadd.f32 %v3999_v41, %v9013_v58  ;;  %v3229_v40 = vpop.f32.mrb[61].mxu0  ;;  %v4001_v53 = vpop.f32.mrb[61].mxu1  ;;  %v7974_v41 = vld [vmem:[%s9660_s5 + $0x60] sm:$0xff]  }
 0x313   : > { %v6785_v47 = vadd.f32 %v3229_v40, %v9017_v59  ;;  %v6849_v49 = vadd.f32 %v4001_v53, %v9019_v60  ;;  %v3231_v54 = vpop.f32.mrb[62].mxu0  ;;  %v4003_v56 = vpop.f32.mrb[62].mxu1  ;;  %4768 = vmatprep.mubr.bf16.mxu0 %v4193_v29  ;;  %v7978_v40 = vld [vmem:[%s9660_s5 + $0x70] sm:$0xff]   ;;  %v7981_v53 = vld [vmem:[%s9660_s5 + $0x38] sm:$0xff]  }
 0x314   : > { %v6786_v62 = vadd.f32 %v3231_v54, %v9011_v57  ;;  %v6850_v1 = vadd.f32 %v4003_v56, %v9013_v58  ;;  %v3233_v3 = vpop.f32.mrb[63].mxu0  ;;  %v4005_v4 = vpop.f32.mrb[63].mxu1  ;;  %4769 = vmatmul.mubr.bf16.gmra.mrb[120].mxu0 %v4192_v23  ;;  %v4128_v11 = vmax.f32 %v6784_v43, 0.0  ;;  %v4130_v12 = vmax.f32 %v6848_v38, 0.0  ;;  %v7970_v58 = vld [vmem:[%s9660_s5 + $0x50] sm:$0xff]   ;;  %v7973_v23 = vld [vmem:[%s9660_s5 + $0x18] sm:$0xff]  }
 0x315   : > { %v6787_v5 = vadd.f32 %v3233_v3, %v9017_v59  ;;  %v6851_v7 = vadd.f32 %v4005_v4, %v9019_v60  ;;  %v4129_v16 = vmax.f32 %v6785_v47, 0.0  ;;  %v4131_v18 = vmax.f32 %v6849_v49, 0.0  ;;  %v7971_v59 = vld [vmem:[%s9660_s5 + $0x10] sm:$0xff]   ;;  %v7972_v60 = vld [vmem:[%s9660_s5 + $0x58] sm:$0xff]   ;;  %6472 = vmatprep.subr.bf16.mxu1 %v7970_v58  ;;  %v7975_v43 = vld [vmem:[%s9660_s5 + $0x20] sm:$0xff]  }
 0x316   : > { %v4132_v13 = vmax.f32 %v6786_v62, 0.0  ;;  %v4134_v14 = vmax.f32 %v6850_v1, 0.0  ;;  %6473 = vmatpush3.bf16.msra.mxu1 %v7971_v59  ;;  %v7977_v38 = vld [vmem:[%s9660_s5 + $0x28] sm:$0xff]   ;;  %v7985_v4 = vld [vmem:[%s9662_s7 + $0x18] sm:$0xff]  }
 0x317   : > { %v4133_v19 = vmax.f32 %v6787_v5, 0.0  ;;  %v4135_v20 = vmax.f32 %v6851_v7, 0.0  ;;  %6474 = vmatprep.subr.bf16.mxu1 %v7972_v60 }
 0x318   : > { %v4196_v21 = vpack.c.bf16 %v4132_v13, %v4128_v11  ;;  %v4198_v29 = vpack.c.bf16 %v4134_v14, %v4130_v12 }
 0x319   : > { %v4197_v57 = vpack.c.bf16 %v4133_v19, %v4129_v16  ;;  %v4199_v35 = vpack.c.bf16 %v4135_v20, %v4131_v18 }
 0x31a   : > { %6475 = vmatpush3.bf16.msra.mxu1 %v7973_v23 }
 0x31b   : > { %4778 = vmatprep.mubr.bf16.mxu0 %v4197_v57  ;;  %6476 = vmatprep.subr.bf16.mxu1 %v7974_v41 }
 0x31c   : > { %4779 = vmatmul.mubr.bf16.gmra.mrb[124].mxu0 %v4196_v21 }
 0x31d   : > { %4821 = vmatprep.mubr.bf16.mxu0 %v9031_v24  ;;  %v7976_v24 = vld [vmem:[%s9660_s5 + $0x68] sm:$0xff]  }
 0x31e   : > { %6477 = vmatpush3.bf16.msra.mxu1 %v7975_v43 }
 0x31f   : > { %6478 = vmatprep.subr.bf16.mxu1 %v7976_v24 }
 0x322   : > { %6479 = vmatpush3.bf16.msra.mxu1 %v7977_v38 }
 0x323   : > { %6480 = vmatprep.subr.bf16.mxu1 %v7978_v40 }
 0x324   : > { %4822 = vmatmul.mubr.bf16.vlgmr.msra.gmra.mrb[64].mxu0 %v9029_v22  ;;  %v7979_v22 = vld [vmem:[%s9660_s5 + $0x30] sm:$0xff]  }
 0x325   : > { %4831 = vmatprep.mubr.bf16.mxu0 %v9055_v63  ;;  %v7980_v63 = vld [vmem:[%s9660_s5 + $0x78] sm:$0xff]  }
 0x326   : > { %6481 = vmatpush3.bf16.msra.mxu1 %v7979_v22 }
 0x327   : > { %6482 = vmatprep.subr.bf16.mxu1 %v7980_v63 }
 0x32a   : > { %6483 = vmatpush3.bf16.msra.mxu1 %v7981_v53 }
 0x32c   : > { %4832 = vmatmul.mubr.bf16.gmra.mrb[68].mxu0 %v9053_v61  ;;  %v4264_v61 = vld [vmem:[%s9659_s4] sm:$0x3] }
 0x32d   : > { %4841 = vmatprep.mubr.bf16.mxu0 %v9079_v33  ;;  %v9389_v33 = vrot.slane %v4264_v61, %v754_v55 }
 0x334   : > { %4842 = vmatmul.mubr.bf16.gmra.mrb[72].mxu0 %v9077_v31  ;;  %v9385_v31 = vrot.slane %v4264_v61, %v750_v52 }
 0x335   : > { %4851 = vmatprep.mubr.bf16.mxu0 %v9103_v10 }
 0x33c   : > { %4852 = vmatmul.mubr.bf16.gmra.mrb[76].mxu0 %v9101_v8 }
 0x33d   : > { %4861 = vmatprep.mubr.bf16.mxu0 %v9127_v46 }
 0x344   : > { %4862 = vmatmul.mubr.bf16.gmra.mrb[80].mxu0 %v9125_v44 }
 0x345   : > { %4871 = vmatprep.mubr.bf16.mxu0 %v9151_v27 }
 0x34c   : > { %4872 = vmatmul.mubr.bf16.gmra.mrb[84].mxu0 %v9149_v25 }
 0x34d   : > { %4881 = vmatprep.mubr.bf16.mxu0 %v9175_v9  ;;  %v7982_v9 = vld [vmem:[%s9662_s7] sm:$0xff]  }
 0x34e   : > { %6628 = vmatprep.subr.bf16.mxu1 %v7982_v9 }
 0x354   : > { %4882 = vmatmul.mubr.bf16.gmra.mrb[88].mxu0 %v9173_v6 }
 0x355   : > { %4891 = vmatprep.mubr.bf16.mxu0 %v9199_v50 }
 0x35c   : > { %4892 = vmatmul.mubr.bf16.gmra.mrb[92].mxu0 %v9197_v48 }
 0x35d   : > { %4901 = vmatprep.mubr.bf16.mxu0 %v9220_v36 }
 0x364   : > { %4902 = vmatmul.mubr.bf16.gmra.mrb[96].mxu0 %v9218_v34 }
 0x365   : > { %4911 = vmatprep.mubr.bf16.mxu0 %v9232_v17 }
 0x36c   : > { %4912 = vmatmul.mubr.bf16.gmra.mrb[100].mxu0 %v9230_v15 }
 0x36d   : > { %4921 = vmatprep.mubr.bf16.mxu0 %v9244_v2  ;;  %v7983_v2 = vld [vmem:[%s9662_s7 + $0x8] sm:$0xff]  }
 0x374   : > { %4922 = vmatmul.mubr.bf16.gmra.mrb[104].mxu0 %v9242_v0 }
 0x375   : > { %4931 = vmatprep.mubr.bf16.mxu0 %v9256_v45 }
 0x37c   : > { %4932 = vmatmul.mubr.bf16.gmra.mrb[108].mxu0 %v9254_v42 }
 0x37d   : > { %4941 = vmatprep.mubr.bf16.mxu0 %v9274_v39 }
 0x384   : > { %4942 = vmatmul.mubr.bf16.gmra.mrb[112].mxu0 %v9272_v37 }
 0x385   : > { %4951 = vmatprep.mubr.bf16.mxu0 %v9286_v30 }
 0x38c   : > { %4952 = vmatmul.mubr.bf16.gmra.mrb[116].mxu0 %v9284_v28 }
 0x38d   : > { %4961 = vmatprep.mubr.bf16.mxu0 %v9304_v32  ;;  %v7984_v32 = vld [vmem:[%s9662_s7 + $0x10] sm:$0xff]  }
 0x394   : > { %4962 = vmatmul.mubr.bf16.gmra.mrb[120].mxu0 %v9302_v26 }
 0x395   : > { %4971 = vmatprep.mubr.bf16.mxu0 %v4199_v35 }
 0x39c   : > { %4972 = vmatmul.mubr.bf16.gmra.mrb[124].mxu0 %v4198_v29 }
 0x3f7   : > { %v4823_v8 = vpop.f32.mrb[64].mxu0 }
 0x3f8   : > { %v6852_v10 = vadd.f32 %v4823_v8, %v9385_v31  ;;  %v4825_v44 = vpop.f32.mrb[65].mxu0 }
 0x3f9   : > { %v6853_v46 = vadd.f32 %v4825_v44, %v9389_v33  ;;  %v4827_v25 = vpop.f32.mrb[66].mxu0 }
 0x3fa   : > { %v6854_v27 = vadd.f32 %v4827_v25, %v9385_v31  ;;  %v4829_v6 = vpop.f32.mrb[67].mxu0  ;;  %v4982_v48 = vmax.f32 %v6852_v10, 0.0 }
 0x3fb   : > { %v6855_v52 = vadd.f32 %v4829_v6, %v9389_v33  ;;  %v4983_v55 = vmax.f32 %v6853_v46, 0.0 }
 0x3fc   : > { %v4984_v51 = vmax.f32 %v6854_v27, 0.0 }
 0x3fd   : > { %v4985_v50 = vmax.f32 %v6855_v52, 0.0 }
 0x3fe   : > { %v5046_v34 = vpack.c.bf16 %v4984_v51, %v4982_v48 }
 0x3ff   : > { %v5047_v36 = vpack.c.bf16 %v4985_v50, %v4983_v55  ;;  %v4833_v15 = vpop.f32.mrb[68].mxu0 }
 0x400   : > { %v6856_v17 = vadd.f32 %v4833_v15, %v9385_v31  ;;  %v4835_v0 = vpop.f32.mrb[69].mxu0 }
 0x401   : > { %v6857_v42 = vadd.f32 %v4835_v0, %v9389_v33  ;;  %v4837_v45 = vpop.f32.mrb[70].mxu0  ;;  %5245 = vmatprep.mubr.bf16.mxu1 %v5047_v36 }
 0x402   : > { %v6858_v37 = vadd.f32 %v4837_v45, %v9385_v31  ;;  %v4839_v39 = vpop.f32.mrb[71].mxu0  ;;  %5246 = vmatmul.mubr.bf16.vlgmr.msra.gmra.mrb[64].mxu1 %v5046_v34  ;;  %v4986_v30 = vmax.f32 %v6856_v17, 0.0 }
 0x403   : > { %v6859_v28 = vadd.f32 %v4839_v39, %v9389_v33  ;;  %6629 = vmatpush3.bf16.msra.mxu1 %v7982_v9  ;;  %v4987_v47 = vmax.f32 %v6857_v42, 0.0 }
 0x404   : > { %v4988_v26 = vmax.f32 %v6858_v37, 0.0  ;;  %6630 = vmatprep.subr.bf16.mxu1 %v7983_v2 }
 0x405   : > { %v4989_v49 = vmax.f32 %v6859_v28, 0.0 }
 0x406   : > { %v5048_v54 = vpack.c.bf16 %v4988_v26, %v4986_v30 }
 0x407   : > { %v5049_v56 = vpack.c.bf16 %v4989_v49, %v4987_v47  ;;  %v4843_v62 = vpop.f32.mrb[72].mxu0  ;;  %6631 = vmatpush3.bf16.msra.mxu1 %v7983_v2 }
 0x408   : > { %v6860_v1 = vadd.f32 %v4843_v62, %v9385_v31  ;;  %v4845_v3 = vpop.f32.mrb[73].mxu0  ;;  %6632 = vmatprep.subr.bf16.mxu1 %v7984_v32 }
 0x409   : > { %v6861_v5 = vadd.f32 %v4845_v3, %v9389_v33  ;;  %v4847_v7 = vpop.f32.mrb[74].mxu0  ;;  %5253 = vmatprep.mubr.bf16.mxu1 %v5049_v56 }
 0x40a   : > { %v6862_v11 = vadd.f32 %v4847_v7, %v9385_v31  ;;  %v4849_v12 = vpop.f32.mrb[75].mxu0  ;;  %5254 = vmatmul.mubr.bf16.gmra.mrb[68].mxu1 %v5048_v54  ;;  %v4990_v14 = vmax.f32 %v6860_v1, 0.0 }
 0x40b   : > { %v6863_v13 = vadd.f32 %v4849_v12, %v9389_v33  ;;  %6633 = vmatpush3.bf16.msra.mxu1 %v7984_v32  ;;  %v4991_v18 = vmax.f32 %v6861_v5, 0.0 }
 0x40c   : > { %v4992_v16 = vmax.f32 %v6862_v11, 0.0  ;;  %6634 = vmatprep.subr.bf16.mxu1 %v7985_v4 }
 0x40d   : > { %v4993_v19 = vmax.f32 %v6863_v13, 0.0 }
 0x40e   : > { %v5050_v20 = vpack.c.bf16 %v4992_v16, %v4990_v14 }
 0x40f   : > { %v5051_v21 = vpack.c.bf16 %v4993_v19, %v4991_v18  ;;  %v4853_v29 = vpop.f32.mrb[76].mxu0  ;;  %6635 = vmatpush3.bf16.msra.mxu1 %v7985_v4 }
 0x410   : > { %v6864_v57 = vadd.f32 %v4853_v29, %v9385_v31  ;;  %v4855_v35 = vpop.f32.mrb[77].mxu0 }
 0x411   : > { %v6865_v58 = vadd.f32 %v4855_v35, %v9389_v33  ;;  %v4857_v59 = vpop.f32.mrb[78].mxu0  ;;  %5261 = vmatprep.mubr.bf16.mxu1 %v5051_v21 }
 0x412   : > { %v6866_v60 = vadd.f32 %v4857_v59, %v9385_v31  ;;  %v4859_v23 = vpop.f32.mrb[79].mxu0  ;;  %5262 = vmatmul.mubr.bf16.gmra.mrb[72].mxu1 %v5050_v20  ;;  %v4994_v43 = vmax.f32 %v6864_v57, 0.0 }
 0x413   : > { %v6867_v41 = vadd.f32 %v4859_v23, %v9389_v33  ;;  %v4995_v38 = vmax.f32 %v6865_v58, 0.0 }
 0x414   : > { %v4996_v24 = vmax.f32 %v6866_v60, 0.0 }
 0x415   : > { %v4997_v40 = vmax.f32 %v6867_v41, 0.0 }
 0x416   : > { %v5052_v22 = vpack.c.bf16 %v4996_v24, %v4994_v43 }
 0x417   : > { %v5053_v63 = vpack.c.bf16 %v4997_v40, %v4995_v38  ;;  %v4863_v53 = vpop.f32.mrb[80].mxu0 }
 0x418   : > { %v6868_v61 = vadd.f32 %v4863_v53, %v9385_v31  ;;  %v4865_v8 = vpop.f32.mrb[81].mxu0 }
 0x419   : > { %v6869_v10 = vadd.f32 %v4865_v8, %v9389_v33  ;;  %v4867_v44 = vpop.f32.mrb[82].mxu0  ;;  %5269 = vmatprep.mubr.bf16.mxu1 %v5053_v63 }
 0x41a   : > { %v6870_v46 = vadd.f32 %v4867_v44, %v9385_v31  ;;  %v4869_v25 = vpop.f32.mrb[83].mxu0  ;;  %5270 = vmatmul.mubr.bf16.gmra.mrb[76].mxu1 %v5052_v22  ;;  %v4998_v6 = vmax.f32 %v6868_v61, 0.0 }
 0x41b   : > { %v6871_v27 = vadd.f32 %v4869_v25, %v9389_v33  ;;  %v4999_v52 = vmax.f32 %v6869_v10, 0.0 }
 0x41c   : > { %v5000_v9 = vmax.f32 %v6870_v46, 0.0 }
 0x41d   : > { %v5001_v48 = vmax.f32 %v6871_v27, 0.0 }
 0x41e   : > { %v5054_v51 = vpack.c.bf16 %v5000_v9, %v4998_v6 }
 0x41f   : > { %v5055_v55 = vpack.c.bf16 %v5001_v48, %v4999_v52  ;;  %v4873_v50 = vpop.f32.mrb[84].mxu0 }
 0x420   : > { %v6872_v34 = vadd.f32 %v4873_v50, %v9385_v31  ;;  %v4875_v36 = vpop.f32.mrb[85].mxu0 }
 0x421   : > { %v6873_v15 = vadd.f32 %v4875_v36, %v9389_v33  ;;  %v4877_v17 = vpop.f32.mrb[86].mxu0  ;;  %5277 = vmatprep.mubr.bf16.mxu1 %v5055_v55 }
 0x422   : > { %v6874_v0 = vadd.f32 %v4877_v17, %v9385_v31  ;;  %v4879_v2 = vpop.f32.mrb[87].mxu0  ;;  %5278 = vmatmul.mubr.bf16.gmra.mrb[80].mxu1 %v5054_v51  ;;  %v5002_v45 = vmax.f32 %v6872_v34, 0.0 }
 0x423   : > { %v6875_v42 = vadd.f32 %v4879_v2, %v9389_v33  ;;  %v5003_v39 = vmax.f32 %v6873_v15, 0.0 }
 0x424   : > { %v5004_v37 = vmax.f32 %v6874_v0, 0.0 }
 0x425   : > { %v5005_v28 = vmax.f32 %v6875_v42, 0.0 }
 0x426   : > { %v5056_v30 = vpack.c.bf16 %v5004_v37, %v5002_v45 }
 0x427   : > { %v5057_v26 = vpack.c.bf16 %v5005_v28, %v5003_v39  ;;  %v4883_v32 = vpop.f32.mrb[88].mxu0 }
 0x428   : > { %v6876_v47 = vadd.f32 %v4883_v32, %v9385_v31  ;;  %v4885_v49 = vpop.f32.mrb[89].mxu0 }
 0x429   : > { %v6877_v54 = vadd.f32 %v4885_v49, %v9389_v33  ;;  %v4887_v56 = vpop.f32.mrb[90].mxu0  ;;  %5285 = vmatprep.mubr.bf16.mxu1 %v5057_v26 }
 0x42a   : > { %v6878_v62 = vadd.f32 %v4887_v56, %v9385_v31  ;;  %v4889_v1 = vpop.f32.mrb[91].mxu0  ;;  %5286 = vmatmul.mubr.bf16.gmra.mrb[84].mxu1 %v5056_v30  ;;  %v5006_v4 = vmax.f32 %v6876_v47, 0.0 }
 0x42b   : > { %v6879_v3 = vadd.f32 %v4889_v1, %v9389_v33  ;;  %v5007_v7 = vmax.f32 %v6877_v54, 0.0 }
 0x42c   : > { %v5008_v5 = vmax.f32 %v6878_v62, 0.0 }
 0x42d   : > { %v5009_v11 = vmax.f32 %v6879_v3, 0.0 }
 0x42e   : > { %v5058_v12 = vpack.c.bf16 %v5008_v5, %v5006_v4 }
 0x42f   : > { %v5059_v13 = vpack.c.bf16 %v5009_v11, %v5007_v7  ;;  %v4893_v14 = vpop.f32.mrb[92].mxu0 }
 0x430   : > { %v6880_v16 = vadd.f32 %v4893_v14, %v9385_v31  ;;  %v4895_v18 = vpop.f32.mrb[93].mxu0 }
 0x431   : > { %v6881_v19 = vadd.f32 %v4895_v18, %v9389_v33  ;;  %v4897_v20 = vpop.f32.mrb[94].mxu0  ;;  %5293 = vmatprep.mubr.bf16.mxu1 %v5059_v13 }
 0x432   : > { %v6882_v21 = vadd.f32 %v4897_v20, %v9385_v31  ;;  %v4899_v29 = vpop.f32.mrb[95].mxu0  ;;  %5294 = vmatmul.mubr.bf16.gmra.mrb[88].mxu1 %v5058_v12  ;;  %v5010_v35 = vmax.f32 %v6880_v16, 0.0 }
 0x433   : > { %v6883_v57 = vadd.f32 %v4899_v29, %v9389_v33  ;;  %v5011_v59 = vmax.f32 %v6881_v19, 0.0 }
 0x434   : > { %v5012_v58 = vmax.f32 %v6882_v21, 0.0 }
 0x435   : > { %v5013_v60 = vmax.f32 %v6883_v57, 0.0 }
 0x436   : > { %v5060_v23 = vpack.c.bf16 %v5012_v58, %v5010_v35  ;;  %v7986_v58 = vld [vmem:[%s9662_s7 + $0x20] sm:$0xff]  }
 0x437   : > { %v5061_v41 = vpack.c.bf16 %v5013_v60, %v5011_v59  ;;  %v4903_v43 = vpop.f32.mrb[96].mxu0  ;;  %6636 = vmatprep.subr.bf16.mxu1 %v7986_v58 }
 0x438   : > { %v6884_v24 = vadd.f32 %v4903_v43, %v9385_v31  ;;  %v4905_v38 = vpop.f32.mrb[97].mxu0  ;;  %6637 = vmatpush3.bf16.msra.mxu1 %v7986_v58 }
 0x439   : > { %v6885_v40 = vadd.f32 %v4905_v38, %v9389_v33  ;;  %v4907_v22 = vpop.f32.mrb[98].mxu0  ;;  %5301 = vmatprep.mubr.bf16.mxu1 %v5061_v41 }
 0x43a   : > { %v6886_v63 = vadd.f32 %v4907_v22, %v9385_v31  ;;  %v4909_v53 = vpop.f32.mrb[99].mxu0  ;;  %5302 = vmatmul.mubr.bf16.gmra.mrb[92].mxu1 %v5060_v23  ;;  %v5014_v8 = vmax.f32 %v6884_v24, 0.0 }
 0x43b   : > { %v6887_v61 = vadd.f32 %v4909_v53, %v9389_v33  ;;  %v5015_v44 = vmax.f32 %v6885_v40, 0.0  ;;  %v7987_v40 = vld [vmem:[%s9662_s7 + $0x28] sm:$0xff]  }
 0x43c   : > { %v5016_v10 = vmax.f32 %v6886_v63, 0.0  ;;  %6638 = vmatprep.subr.bf16.mxu1 %v7987_v40 }
 0x43d   : > { %v5017_v46 = vmax.f32 %v6887_v61, 0.0  ;;  %6639 = vmatpush3.bf16.msra.mxu1 %v7987_v40 }
 0x43e   : > { %v5062_v25 = vpack.c.bf16 %v5016_v10, %v5014_v8 }
 0x43f   : > { %v5063_v27 = vpack.c.bf16 %v5017_v46, %v5015_v44  ;;  %v4913_v6 = vpop.f32.mrb[100].mxu0  ;;  %v7988_v46 = vld [vmem:[%s9662_s7 + $0x30] sm:$0xff]  }
 0x440   : > { %v6888_v9 = vadd.f32 %v4913_v6, %v9385_v31  ;;  %v4915_v52 = vpop.f32.mrb[101].mxu0  ;;  %6640 = vmatprep.subr.bf16.mxu1 %v7988_v46 }
 0x441   : > { %v6889_v48 = vadd.f32 %v4915_v52, %v9389_v33  ;;  %v4917_v51 = vpop.f32.mrb[102].mxu0  ;;  %5309 = vmatprep.mubr.bf16.mxu1 %v5063_v27  ;;  %6641 = vmatpush3.bf16.msra.mxu1 %v7988_v46 }
 0x442   : > { %v6890_v55 = vadd.f32 %v4917_v51, %v9385_v31  ;;  %v4919_v50 = vpop.f32.mrb[103].mxu0  ;;  %5310 = vmatmul.mubr.bf16.gmra.mrb[96].mxu1 %v5062_v25  ;;  %v5018_v36 = vmax.f32 %v6888_v9, 0.0 }
 0x443   : > { %v6891_v34 = vadd.f32 %v4919_v50, %v9389_v33  ;;  %v5019_v17 = vmax.f32 %v6889_v48, 0.0 }
 0x444   : > { %v5020_v15 = vmax.f32 %v6890_v55, 0.0  ;;  %v7989_v55 = vld [vmem:[%s9662_s7 + $0x38] sm:$0xff]  }
 0x445   : > { %v5021_v0 = vmax.f32 %v6891_v34, 0.0  ;;  %6642 = vmatprep.subr.bf16.mxu1 %v7989_v55 }
 0x446   : > { %v5064_v2 = vpack.c.bf16 %v5020_v15, %v5018_v36  ;;  %6643 = vmatpush3.bf16.msra.mxu1 %v7989_v55 }
 0x447   : > { %v5065_v42 = vpack.c.bf16 %v5021_v0, %v5019_v17  ;;  %v4923_v45 = vpop.f32.mrb[104].mxu0 }
 0x448   : > { %v6892_v37 = vadd.f32 %v4923_v45, %v9385_v31  ;;  %v4925_v39 = vpop.f32.mrb[105].mxu0 }
 0x449   : > { %v6893_v28 = vadd.f32 %v4925_v39, %v9389_v33  ;;  %v4927_v30 = vpop.f32.mrb[106].mxu0  ;;  %5317 = vmatprep.mubr.bf16.mxu1 %v5065_v42 }
 0x44a   : > { %v6894_v26 = vadd.f32 %v4927_v30, %v9385_v31  ;;  %v4929_v32 = vpop.f32.mrb[107].mxu0  ;;  %5318 = vmatmul.mubr.bf16.gmra.mrb[100].mxu1 %v5064_v2  ;;  %v5022_v49 = vmax.f32 %v6892_v37, 0.0 }
 0x44b   : > { %v6895_v47 = vadd.f32 %v4929_v32, %v9389_v33  ;;  %v5023_v56 = vmax.f32 %v6893_v28, 0.0 }
 0x44c   : > { %v5024_v54 = vmax.f32 %v6894_v26, 0.0 }
 0x44d   : > { %v5025_v62 = vmax.f32 %v6895_v47, 0.0 }
 0x44e   : > { %v5066_v1 = vpack.c.bf16 %v5024_v54, %v5022_v49 }
 0x44f   : > { %v5067_v3 = vpack.c.bf16 %v5025_v62, %v5023_v56  ;;  %v4933_v4 = vpop.f32.mrb[108].mxu0 }
 0x450   : > { %v6896_v5 = vadd.f32 %v4933_v4, %v9385_v31  ;;  %v4935_v7 = vpop.f32.mrb[109].mxu0 }
 0x451   : > { %v6897_v11 = vadd.f32 %v4935_v7, %v9389_v33  ;;  %v4937_v12 = vpop.f32.mrb[110].mxu0  ;;  %5325 = vmatprep.mubr.bf16.mxu1 %v5067_v3 }
 0x452   : > { %v6898_v13 = vadd.f32 %v4937_v12, %v9385_v31  ;;  %v4939_v14 = vpop.f32.mrb[111].mxu0  ;;  %5326 = vmatmul.mubr.bf16.gmra.mrb[104].mxu1 %v5066_v1  ;;  %v5026_v18 = vmax.f32 %v6896_v5, 0.0 }
 0x453   : > { %v6899_v16 = vadd.f32 %v4939_v14, %v9389_v33  ;;  %v5027_v20 = vmax.f32 %v6897_v11, 0.0 }
 0x454   : > { %v5028_v19 = vmax.f32 %v6898_v13, 0.0 }
 0x455   : > { %v5029_v21 = vmax.f32 %v6899_v16, 0.0 }
 0x456   : > { %v5068_v29 = vpack.c.bf16 %v5028_v19, %v5026_v18 }
 0x457   : > { %v5069_v57 = vpack.c.bf16 %v5029_v21, %v5027_v20  ;;  %v4943_v35 = vpop.f32.mrb[112].mxu0 }
 0x458   : > { %v6900_v59 = vadd.f32 %v4943_v35, %v9385_v31  ;;  %v4945_v60 = vpop.f32.mrb[113].mxu0 }
 0x459   : > { %v6901_v23 = vadd.f32 %v4945_v60, %v9389_v33  ;;  %v4947_v41 = vpop.f32.mrb[114].mxu0  ;;  %5333 = vmatprep.mubr.bf16.mxu1 %v5069_v57  ;;  %v9482_v57 = vld [vmem:[%s9661_s6] ss:$0 sm:$0xff] }
 0x45a   : > { %v6902_v43 = vadd.f32 %v4947_v41, %v9385_v31  ;;  %v4949_v24 = vpop.f32.mrb[115].mxu0  ;;  %5334 = vmatmul.mubr.bf16.gmra.mrb[108].mxu1 %v5068_v29  ;;  %v5030_v22 = vmax.f32 %v6900_v59, 0.0 }
 0x45b   : > { %v6903_v38 = vadd.f32 %v4949_v24, %v9389_v33  ;;  %v5031_v53 = vmax.f32 %v6901_v23, 0.0  ;;  %v7990_v23 = vld [vmem:[%s9664_s9] sm:$0xff]  }
 0x45c   : > { %v5032_v63 = vmax.f32 %v6902_v43, 0.0  ;;  %6676 = vmatprep.subr.bf16.mxu1 %v7990_v23 }
 0x45d   : > { %v5033_v61 = vmax.f32 %v6903_v38, 0.0 }
 0x45e   : > { %v5070_v8 = vpack.c.bf16 %v5032_v63, %v5030_v22 }
 0x45f   : > { %v5071_v10 = vpack.c.bf16 %v5033_v61, %v5031_v53  ;;  %v4953_v44 = vpop.f32.mrb[116].mxu0 }
 0x460   : > { %v6904_v25 = vadd.f32 %v4953_v44, %v9385_v31  ;;  %v4955_v27 = vpop.f32.mrb[117].mxu0 }
 0x461   : > { %v6905_v6 = vadd.f32 %v4955_v27, %v9389_v33  ;;  %v4957_v9 = vpop.f32.mrb[118].mxu0  ;;  %5341 = vmatprep.mubr.bf16.mxu1 %v5071_v10 }
 0x462   : > { %v6906_v52 = vadd.f32 %v4957_v9, %v9385_v31  ;;  %v4959_v48 = vpop.f32.mrb[119].mxu0  ;;  %5342 = vmatmul.mubr.bf16.gmra.mrb[112].mxu1 %v5070_v8  ;;  %v5034_v50 = vmax.f32 %v6904_v25, 0.0 }
 0x463   : > { %v6907_v51 = vadd.f32 %v4959_v48, %v9389_v33  ;;  %v5035_v36 = vmax.f32 %v6905_v6, 0.0 }
 0x464   : > { %v5036_v34 = vmax.f32 %v6906_v52, 0.0 }
 0x465   : > { %v5037_v15 = vmax.f32 %v6907_v51, 0.0  ;;  %v7991_v51 = vld [vmem:[%s9664_s9 + $0x8] sm:$0xff]  }
 0x466   : > { %v5072_v17 = vpack.c.bf16 %v5036_v34, %v5034_v50 }
 0x467   : > { %v5073_v0 = vpack.c.bf16 %v5037_v15, %v5035_v36  ;;  %v4963_v2 = vpop.f32.mrb[120].mxu0  ;;  %v7992_v15 = vld [vmem:[%s9664_s9 + $0x10] sm:$0xff]  }
 0x468   : > { %v6908_v42 = vadd.f32 %v4963_v2, %v9385_v31  ;;  %v4965_v45 = vpop.f32.mrb[121].mxu0 }
 0x469   : > { %v6909_v37 = vadd.f32 %v4965_v45, %v9389_v33  ;;  %v4967_v39 = vpop.f32.mrb[122].mxu0  ;;  %5349 = vmatprep.mubr.bf16.mxu1 %v5073_v0 }
 0x46a   : > { %v6910_v28 = vadd.f32 %v4967_v39, %v9385_v31  ;;  %v4969_v30 = vpop.f32.mrb[123].mxu0  ;;  %5350 = vmatmul.mubr.bf16.gmra.mrb[116].mxu1 %v5072_v17  ;;  %v5038_v32 = vmax.f32 %v6908_v42, 0.0 }
 0x46b   : > { %v6911_v26 = vadd.f32 %v4969_v30, %v9389_v33  ;;  %v5039_v49 = vmax.f32 %v6909_v37, 0.0 }
 0x46c   : > { %v5040_v47 = vmax.f32 %v6910_v28, 0.0  ;;  %v7993_v28 = vld [vmem:[%s9664_s9 + $0x18] sm:$0xff]  }
 0x46d   : > { %v5041_v54 = vmax.f32 %v6911_v26, 0.0 }
 0x46e   : > { %v5074_v56 = vpack.c.bf16 %v5040_v47, %v5038_v32 }
 0x46f   : > { %v5075_v62 = vpack.c.bf16 %v5041_v54, %v5039_v49  ;;  %v4973_v1 = vpop.f32.mrb[124].mxu0  ;;  %v7994_v49 = vld [vmem:[%s9664_s9 + $0x20] sm:$0xff]  }
 0x470   : > { %v6912_v3 = vadd.f32 %v4973_v1, %v9385_v31  ;;  %v4975_v4 = vpop.f32.mrb[125].mxu0 }
 0x471   : > { %v6913_v5 = vadd.f32 %v4975_v4, %v9389_v33  ;;  %v4977_v7 = vpop.f32.mrb[126].mxu0  ;;  %5357 = vmatprep.mubr.bf16.mxu1 %v5075_v62 }
 0x472   : > { %v6914_v11 = vadd.f32 %v4977_v7, %v9385_v31  ;;  %v4979_v12 = vpop.f32.mrb[127].mxu0  ;;  %5358 = vmatmul.mubr.bf16.gmra.mrb[120].mxu1 %v5074_v56  ;;  %v5042_v14 = vmax.f32 %v6912_v3, 0.0  ;;  %v7995_v7 = vld [vmem:[%s9664_s9 + $0x28] sm:$0xff]  }
 0x473   : > { %v6915_v13 = vadd.f32 %v4979_v12, %v9389_v33  ;;  %v5043_v18 = vmax.f32 %v6913_v5, 0.0 }
 0x474   : > { %v5044_v16 = vmax.f32 %v6914_v11, 0.0 }
 0x475   : > { %v5045_v19 = vmax.f32 %v6915_v13, 0.0 }
 0x476   : > { %v5076_v20 = vpack.c.bf16 %v5044_v16, %v5042_v14 }
 0x477   : > { %v5077_v21 = vpack.c.bf16 %v5045_v19, %v5043_v18 }
 0x479   : > { %5365 = vmatprep.mubr.bf16.mxu1 %v5077_v21 }
 0x47a   : > { %5366 = vmatmul.mubr.bf16.gmra.mrb[124].mxu1 %v5076_v20 }
 0x4d5   : > { %v6484_v29 = vpop.f32.mrb[64].mxu1 }
 0x4d6   : > { %v6485_v35 = vpop.f32.mrb[65].mxu1 }
 0x4d7   : > { %v6486_v31 = vadd.f32 %v6485_v35, %v6484_v29  ;;  %v6487_v58 = vpop.f32.mrb[66].mxu1 }
 0x4d8   : > { %v6488_v59 = vpop.f32.mrb[67].mxu1 }
 0x4d9   : > { %v5248_v33 = vadd.f32 %v6486_v31, %v9482_v57  ;;  %v6489_v60 = vadd.f32 %v6488_v59, %v6487_v58 }
 0x4db   : > { %v5251_v41 = vadd.f32 %v6489_v60, %v9482_v57  ;;  %v5374_v43 = vmax.f32 %v5248_v33, 0.0 }
 0x4dd   : > { %v5375_v24 = vmax.f32 %v5251_v41, 0.0  ;;  %v6490_v38 = vpop.f32.mrb[68].mxu1 }
 0x4de   : > { %v6491_v40 = vpop.f32.mrb[69].mxu1 }
 0x4df   : > { %v6492_v22 = vadd.f32 %v6491_v40, %v6490_v38  ;;  %v6493_v63 = vpop.f32.mrb[70].mxu1  ;;  %v5406_v53 = vpack.c.bf16 %v5375_v24, %v5374_v43 }
 0x4e0   : > { %v6494_v61 = vpop.f32.mrb[71].mxu1 }
 0x4e1   : > { %v5256_v8 = vadd.f32 %v6492_v22, %v9482_v57  ;;  %v6495_v10 = vadd.f32 %v6494_v61, %v6493_v63  ;;  %6644 = vmatprep.mubr.bf16.mxu1 %v5406_v53 }
 0x4e3   : > { %v5259_v44 = vadd.f32 %v6495_v10, %v9482_v57  ;;  %v5376_v46 = vmax.f32 %v5256_v8, 0.0 }
 0x4e5   : > { %v5377_v25 = vmax.f32 %v5259_v44, 0.0  ;;  %v6496_v27 = vpop.f32.mrb[72].mxu1 }
 0x4e6   : > { %v6497_v6 = vpop.f32.mrb[73].mxu1 }
 0x4e7   : > { %v5407_v9 = vpack.c.bf16 %v5377_v25, %v5376_v46  ;;  %v6498_v52 = vadd.f32 %v6497_v6, %v6496_v27  ;;  %v6499_v48 = vpop.f32.mrb[74].mxu1 }
 0x4e8   : > { %v6500_v55 = vpop.f32.mrb[75].mxu1 }
 0x4e9   : > { %v5264_v50 = vadd.f32 %v6498_v52, %v9482_v57  ;;  %v6501_v34 = vadd.f32 %v6500_v55, %v6499_v48  ;;  %6645 = vmatmul.mubr.bf16.vlgmr.msra.gmra.mrb[128].mxu1 %v5407_v9 }
 0x4ea   : > { %6677 = vmatpush3.bf16.msra.mxu1 %v7990_v23 }
 0x4eb   : > { %v5267_v36 = vadd.f32 %v6501_v34, %v9482_v57  ;;  %6678 = vmatprep.subr.bf16.mxu1 %v7991_v51  ;;  %v5378_v17 = vmax.f32 %v5264_v50, 0.0 }
 0x4ed   : > { %v5379_v0 = vmax.f32 %v5267_v36, 0.0  ;;  %v6502_v2 = vpop.f32.mrb[76].mxu1 }
 0x4ee   : > { %v6503_v42 = vpop.f32.mrb[77].mxu1  ;;  %6679 = vmatpush3.bf16.msra.mxu1 %v7991_v51 }
 0x4ef   : > { %v6504_v45 = vadd.f32 %v6503_v42, %v6502_v2  ;;  %v6505_v37 = vpop.f32.mrb[78].mxu1  ;;  %v5408_v39 = vpack.c.bf16 %v5379_v0, %v5378_v17  ;;  %6680 = vmatprep.subr.bf16.mxu1 %v7992_v15 }
 0x4f0   : > { %v6506_v30 = vpop.f32.mrb[79].mxu1 }
 0x4f1   : > { %v5272_v26 = vadd.f32 %v6504_v45, %v9482_v57  ;;  %v6507_v32 = vadd.f32 %v6506_v30, %v6505_v37  ;;  %6648 = vmatprep.mubr.bf16.mxu1 %v5408_v39 }
 0x4f2   : > { %6681 = vmatpush3.bf16.msra.mxu1 %v7992_v15 }
 0x4f3   : > { %v5275_v47 = vadd.f32 %v6507_v32, %v9482_v57  ;;  %6682 = vmatprep.subr.bf16.mxu1 %v7993_v28  ;;  %v5380_v54 = vmax.f32 %v5272_v26, 0.0 }
 0x4f5   : > { %v5381_v56 = vmax.f32 %v5275_v47, 0.0  ;;  %v6508_v62 = vpop.f32.mrb[80].mxu1 }
 0x4f6   : > { %v6509_v1 = vpop.f32.mrb[81].mxu1  ;;  %6683 = vmatpush3.bf16.msra.mxu1 %v7993_v28 }
 0x4f7   : > { %v6510_v3 = vadd.f32 %v6509_v1, %v6508_v62  ;;  %v6511_v4 = vpop.f32.mrb[82].mxu1  ;;  %v5409_v5 = vpack.c.bf16 %v5381_v56, %v5380_v54  ;;  %6684 = vmatprep.subr.bf16.mxu1 %v7994_v49 }
 0x4f8   : > { %v6512_v11 = vpop.f32.mrb[83].mxu1 }
 0x4f9   : > { %v5280_v12 = vadd.f32 %v6510_v3, %v9482_v57  ;;  %v6513_v13 = vadd.f32 %v6512_v11, %v6511_v4  ;;  %6649 = vmatmul.mubr.bf16.gmra.mrb[132].mxu1 %v5409_v5 }
 0x4fa   : > { %6685 = vmatpush3.bf16.msra.mxu1 %v7994_v49 }
 0x4fb   : > { %v5283_v14 = vadd.f32 %v6513_v13, %v9482_v57  ;;  %6686 = vmatprep.subr.bf16.mxu1 %v7995_v7  ;;  %v5382_v16 = vmax.f32 %v5280_v12, 0.0 }
 0x4fd   : > { %v5383_v18 = vmax.f32 %v5283_v14, 0.0  ;;  %v6514_v19 = vpop.f32.mrb[84].mxu1 }
 0x4fe   : > { %v6515_v20 = vpop.f32.mrb[85].mxu1  ;;  %6687 = vmatpush3.bf16.msra.mxu1 %v7995_v7 }
 0x4ff   : > { %v6516_v21 = vadd.f32 %v6515_v20, %v6514_v19  ;;  %v6517_v29 = vpop.f32.mrb[86].mxu1  ;;  %v5410_v35 = vpack.c.bf16 %v5383_v18, %v5382_v16 }
 0x500   : > { %v6518_v31 = vpop.f32.mrb[87].mxu1 }
 0x501   : > { %v5288_v58 = vadd.f32 %v6516_v21, %v9482_v57  ;;  %v6519_v59 = vadd.f32 %v6518_v31, %v6517_v29  ;;  %6652 = vmatprep.mubr.bf16.mxu1 %v5410_v35 }
 0x503   : > { %v5291_v33 = vadd.f32 %v6519_v59, %v9482_v57  ;;  %v5384_v60 = vmax.f32 %v5288_v58, 0.0 }
 0x505   : > { %v5385_v23 = vmax.f32 %v5291_v33, 0.0  ;;  %v6520_v41 = vpop.f32.mrb[88].mxu1 }
 0x506   : > { %v6521_v43 = vpop.f32.mrb[89].mxu1 }
 0x507   : > { %v6522_v24 = vadd.f32 %v6521_v43, %v6520_v41  ;;  %v6523_v38 = vpop.f32.mrb[90].mxu1  ;;  %v5411_v40 = vpack.c.bf16 %v5385_v23, %v5384_v60 }
 0x508   : > { %v6524_v22 = vpop.f32.mrb[91].mxu1 }
 0x509   : > { %v5296_v63 = vadd.f32 %v6522_v24, %v9482_v57  ;;  %v6525_v53 = vadd.f32 %v6524_v22, %v6523_v38  ;;  %6653 = vmatmul.mubr.bf16.gmra.mrb[136].mxu1 %v5411_v40 }
 0x50b   : > { %v5299_v61 = vadd.f32 %v6525_v53, %v9482_v57  ;;  %v5386_v8 = vmax.f32 %v5296_v63, 0.0 }
 0x50d   : > { %v5387_v10 = vmax.f32 %v5299_v61, 0.0  ;;  %v6526_v44 = vpop.f32.mrb[92].mxu1 }
 0x50e   : > { %v6527_v46 = vpop.f32.mrb[93].mxu1 }
 0x50f   : > { %v6528_v25 = vadd.f32 %v6527_v46, %v6526_v44  ;;  %v6529_v27 = vpop.f32.mrb[94].mxu1  ;;  %v5412_v6 = vpack.c.bf16 %v5387_v10, %v5386_v8 }
 0x510   : > { %v6530_v9 = vpop.f32.mrb[95].mxu1 }
 0x511   : > { %v5304_v52 = vadd.f32 %v6528_v25, %v9482_v57  ;;  %v6531_v48 = vadd.f32 %v6530_v9, %v6529_v27  ;;  %6656 = vmatprep.mubr.bf16.mxu1 %v5412_v6  ;;  %v7996_v6 = vld [vmem:[%s9664_s9 + $0x30] sm:$0xff]  }
 0x512   : > { %6688 = vmatprep.subr.bf16.mxu1 %v7996_v6 }
 0x513   : > { %v5307_v51 = vadd.f32 %v6531_v48, %v9482_v57  ;;  %v5388_v55 = vmax.f32 %v5304_v52, 0.0  ;;  %6689 = vmatpush3.bf16.msra.mxu1 %v7996_v6 }
 0x515   : > { %v5389_v50 = vmax.f32 %v5307_v51, 0.0  ;;  %v6532_v34 = vpop.f32.mrb[96].mxu1 }
 0x516   : > { %v6533_v36 = vpop.f32.mrb[97].mxu1 }
 0x517   : > { %v6534_v15 = vadd.f32 %v6533_v36, %v6532_v34  ;;  %v6535_v17 = vpop.f32.mrb[98].mxu1  ;;  %v5413_v0 = vpack.c.bf16 %v5389_v50, %v5388_v55  ;;  %v7997_v36 = vld [vmem:[%s9664_s9 + $0x38] sm:$0xff]  }
 0x518   : > { %v6536_v2 = vpop.f32.mrb[99].mxu1  ;;  %6690 = vmatprep.subr.bf16.mxu1 %v7997_v36 }
 0x519   : > { %v5312_v42 = vadd.f32 %v6534_v15, %v9482_v57  ;;  %v6537_v45 = vadd.f32 %v6536_v2, %v6535_v17  ;;  %6657 = vmatmul.mubr.bf16.gmra.mrb[140].mxu1 %v5413_v0 }
 0x51a   : > { %6691 = vmatpush3.bf16.msra.mxu1 %v7997_v36 }
 0x51b   : > { %v5315_v37 = vadd.f32 %v6537_v45, %v9482_v57  ;;  %v5390_v39 = vmax.f32 %v5312_v42, 0.0 }
 0x51d   : > { %v5391_v28 = vmax.f32 %v5315_v37, 0.0  ;;  %v6538_v30 = vpop.f32.mrb[100].mxu1 }
 0x51e   : > { %v6539_v26 = vpop.f32.mrb[101].mxu1 }
 0x51f   : > { %v6540_v32 = vadd.f32 %v6539_v26, %v6538_v30  ;;  %v6541_v47 = vpop.f32.mrb[102].mxu1  ;;  %v5414_v49 = vpack.c.bf16 %v5391_v28, %v5390_v39 }
 0x520   : > { %v6542_v54 = vpop.f32.mrb[103].mxu1 }
 0x521   : > { %v5320_v56 = vadd.f32 %v6540_v32, %v9482_v57  ;;  %v6543_v62 = vadd.f32 %v6542_v54, %v6541_v47  ;;  %6660 = vmatprep.mubr.bf16.mxu1 %v5414_v49 }
 0x523   : > { %v5323_v1 = vadd.f32 %v6543_v62, %v9482_v57  ;;  %v5392_v3 = vmax.f32 %v5320_v56, 0.0 }
 0x525   : > { %v5393_v4 = vmax.f32 %v5323_v1, 0.0  ;;  %v6544_v5 = vpop.f32.mrb[104].mxu1 }
 0x526   : > { %v6545_v7 = vpop.f32.mrb[105].mxu1 }
 0x527   : > { %v6546_v11 = vadd.f32 %v6545_v7, %v6544_v5  ;;  %v6547_v12 = vpop.f32.mrb[106].mxu1  ;;  %v5415_v13 = vpack.c.bf16 %v5393_v4, %v5392_v3 }
 0x528   : > { %v6548_v14 = vpop.f32.mrb[107].mxu1 }
 0x529   : > { %v5328_v16 = vadd.f32 %v6546_v11, %v9482_v57  ;;  %v6549_v18 = vadd.f32 %v6548_v14, %v6547_v12  ;;  %6661 = vmatmul.mubr.bf16.gmra.mrb[144].mxu1 %v5415_v13 }
 0x52b   : > { %v5331_v19 = vadd.f32 %v6549_v18, %v9482_v57  ;;  %v5394_v20 = vmax.f32 %v5328_v16, 0.0  ;;  %v9543_v16 = vld [vmem:[%s9663_s8] ss:$0 sm:$0xff] }
 0x52d   : > { %v5395_v21 = vmax.f32 %v5331_v19, 0.0  ;;  %v6550_v29 = vpop.f32.mrb[108].mxu1 }
 0x52e   : > { %v6551_v35 = vpop.f32.mrb[109].mxu1 }
 0x52f   : > { %v6552_v31 = vadd.f32 %v6551_v35, %v6550_v29  ;;  %v6553_v58 = vpop.f32.mrb[110].mxu1  ;;  %v5416_v59 = vpack.c.bf16 %v5395_v21, %v5394_v20 }
 0x530   : > { %v6554_v33 = vpop.f32.mrb[111].mxu1 }
 0x531   : > { %v5336_v60 = vadd.f32 %v6552_v31, %v9482_v57  ;;  %v6555_v23 = vadd.f32 %v6554_v33, %v6553_v58  ;;  %6664 = vmatprep.mubr.bf16.mxu1 %v5416_v59 }
 0x533   : > { %v5339_v41 = vadd.f32 %v6555_v23, %v9482_v57  ;;  %v5396_v43 = vmax.f32 %v5336_v60, 0.0 }
 0x535   : > { %v5397_v24 = vmax.f32 %v5339_v41, 0.0  ;;  %v6556_v38 = vpop.f32.mrb[112].mxu1 }
 0x536   : > { %v6557_v40 = vpop.f32.mrb[113].mxu1 }
 0x537   : > { %v6558_v22 = vadd.f32 %v6557_v40, %v6556_v38  ;;  %v6559_v63 = vpop.f32.mrb[114].mxu1  ;;  %v5417_v53 = vpack.c.bf16 %v5397_v24, %v5396_v43 }
 0x538   : > { %v6560_v61 = vpop.f32.mrb[115].mxu1 }
 0x539   : > { %v5344_v8 = vadd.f32 %v6558_v22, %v9482_v57  ;;  %v6561_v10 = vadd.f32 %v6560_v61, %v6559_v63  ;;  %6665 = vmatmul.mubr.bf16.gmra.mrb[148].mxu1 %v5417_v53 }
 0x53b   : > { %v5347_v44 = vadd.f32 %v6561_v10, %v9482_v57  ;;  %v5398_v46 = vmax.f32 %v5344_v8, 0.0 }
 0x53d   : > { %v5399_v25 = vmax.f32 %v5347_v44, 0.0  ;;  %v6562_v27 = vpop.f32.mrb[116].mxu1 }
 0x53e   : > { %v6563_v9 = vpop.f32.mrb[117].mxu1 }
 0x53f   : > { %v6564_v52 = vadd.f32 %v6563_v9, %v6562_v27  ;;  %v6565_v48 = vpop.f32.mrb[118].mxu1  ;;  %v5418_v51 = vpack.c.bf16 %v5399_v25, %v5398_v46 }
 0x540   : > { %v6566_v55 = vpop.f32.mrb[119].mxu1 }
 0x541   : > { %v5352_v50 = vadd.f32 %v6564_v52, %v9482_v57  ;;  %v6567_v34 = vadd.f32 %v6566_v55, %v6565_v48  ;;  %6668 = vmatprep.mubr.bf16.mxu1 %v5418_v51 }
 0x543   : > { %v5355_v15 = vadd.f32 %v6567_v34, %v9482_v57  ;;  %v5400_v17 = vmax.f32 %v5352_v50, 0.0 }
 0x545   : > { %v5401_v0 = vmax.f32 %v5355_v15, 0.0  ;;  %v6568_v2 = vpop.f32.mrb[120].mxu1 }
 0x546   : > { %v6569_v42 = vpop.f32.mrb[121].mxu1 }
 0x547   : > { %v6570_v45 = vadd.f32 %v6569_v42, %v6568_v2  ;;  %v6571_v37 = vpop.f32.mrb[122].mxu1  ;;  %v5419_v39 = vpack.c.bf16 %v5401_v0, %v5400_v17 }
 0x548   : > { %v6572_v28 = vpop.f32.mrb[123].mxu1 }
 0x549   : > { %v5360_v30 = vadd.f32 %v6570_v45, %v9482_v57  ;;  %v6573_v26 = vadd.f32 %v6572_v28, %v6571_v37  ;;  %6669 = vmatmul.mubr.bf16.gmra.mrb[152].mxu1 %v5419_v39 }
 0x54b   : > { %v5363_v32 = vadd.f32 %v6573_v26, %v9482_v57  ;;  %v5402_v47 = vmax.f32 %v5360_v30, 0.0 }
 0x54d   : > { %v5403_v49 = vmax.f32 %v5363_v32, 0.0  ;;  %v6574_v54 = vpop.f32.mrb[124].mxu1 }
 0x54e   : > { %v6575_v56 = vpop.f32.mrb[125].mxu1 }
 0x54f   : > { %v6576_v62 = vadd.f32 %v6575_v56, %v6574_v54  ;;  %v6577_v1 = vpop.f32.mrb[126].mxu1  ;;  %v5420_v3 = vpack.c.bf16 %v5403_v49, %v5402_v47 }
 0x550   : > { %v6578_v4 = vpop.f32.mrb[127].mxu1 }
 0x551   : > { %v5368_v5 = vadd.f32 %v6576_v62, %v9482_v57  ;;  %v6579_v7 = vadd.f32 %v6578_v4, %v6577_v1  ;;  %6672 = vmatprep.mubr.bf16.mxu1 %v5420_v3 }
 0x553   : > { %v5371_v11 = vadd.f32 %v6579_v7, %v9482_v57  ;;  %v5404_v12 = vmax.f32 %v5368_v5, 0.0 }
 0x555   : > { %v5405_v13 = vmax.f32 %v5371_v11, 0.0 }
 0x557   : > { %v5421_v14 = vpack.c.bf16 %v5405_v13, %v5404_v12 }
 0x559   : > { %6673 = vmatmul.mubr.bf16.gmra.mrb[156].mxu1 %v5421_v14 }
 0x5bc   : > { %v6646_v18 = vpop.f32.mrb[128].mxu1 }
 0x5bd   : > { %v5536_v19 = vadd.f32 %v6646_v18, %v9543_v16  ;;  %v5527_v20 = vpop.f32.mrb[129].mxu1 }
 0x5be   : > { %v5528_v21 = vadd.f32 %v9543_v16, %v5527_v20  ;;  %v6647_v29 = vpop.f32.mrb[130].mxu1 }
 0x5bf   : > { %v5539_v35 = vadd.f32 %v6647_v29, %v9543_v16  ;;  %v5530_v31 = vpop.f32.mrb[131].mxu1  ;;  %v5656_v58 = vmax.f32 %v5536_v19, 0.0 }
 0x5c0   : > { %v5531_v57 = vadd.f32 %v9543_v16, %v5530_v31  ;;  %v5654_v33 = vmax.f32 %v5528_v21, 0.0 }
 0x5c1   : > { %v5657_v59 = vmax.f32 %v5539_v35, 0.0 }
 0x5c2   : > { %v5655_v60 = vmax.f32 %v5531_v57, 0.0 }
 0x5c3   : > { %v5687_v23 = vpack.c.bf16 %v5657_v59, %v5656_v58 }
 0x5c4   : > { %v5686_v41 = vpack.c.bf16 %v5655_v60, %v5654_v33 }
 0x5c6   : > { %6692 = vmatprep.mubr.bf16.mxu1 %v5686_v41 }
 0x5c7   : > { %6693 = vmatmul.mubr.bf16.vlgmr.msra.gmra.mrb[160].mxu1 %v5687_v23 }
 0x5cc   : > { %v6650_v43 = vpop.f32.mrb[132].mxu1 }
 0x5cd   : > { %v5552_v24 = vadd.f32 %v6650_v43, %v9543_v16  ;;  %v5543_v38 = vpop.f32.mrb[133].mxu1 }
 0x5ce   : > { %v5544_v40 = vadd.f32 %v9543_v16, %v5543_v38  ;;  %v6651_v22 = vpop.f32.mrb[134].mxu1 }
 0x5cf   : > { %v5555_v63 = vadd.f32 %v6651_v22, %v9543_v16  ;;  %v5546_v53 = vpop.f32.mrb[135].mxu1  ;;  %v5660_v8 = vmax.f32 %v5552_v24, 0.0 }
 0x5d0   : > { %v5547_v61 = vadd.f32 %v9543_v16, %v5546_v53  ;;  %v5658_v44 = vmax.f32 %v5544_v40, 0.0 }
 0x5d1   : > { %v5661_v10 = vmax.f32 %v5555_v63, 0.0 }
 0x5d2   : > { %v5659_v46 = vmax.f32 %v5547_v61, 0.0 }
 0x5d3   : > { %v5689_v25 = vpack.c.bf16 %v5661_v10, %v5660_v8 }
 0x5d4   : > { %v5688_v27 = vpack.c.bf16 %v5659_v46, %v5658_v44 }
 0x5d6   : > { %6696 = vmatprep.mubr.bf16.mxu1 %v5688_v27 }
 0x5d7   : > { %6697 = vmatmul.mubr.bf16.gmra.mrb[164].mxu1 %v5689_v25 }
 0x5dc   : > { %v6654_v6 = vpop.f32.mrb[136].mxu1 }
 0x5dd   : > { %v5568_v9 = vadd.f32 %v6654_v6, %v9543_v16  ;;  %v5559_v52 = vpop.f32.mrb[137].mxu1 }
 0x5de   : > { %v5560_v48 = vadd.f32 %v9543_v16, %v5559_v52  ;;  %v6655_v51 = vpop.f32.mrb[138].mxu1 }
 0x5df   : > { %v5571_v55 = vadd.f32 %v6655_v51, %v9543_v16  ;;  %v5562_v50 = vpop.f32.mrb[139].mxu1  ;;  %v5664_v36 = vmax.f32 %v5568_v9, 0.0 }
 0x5e0   : > { %v5563_v34 = vadd.f32 %v9543_v16, %v5562_v50  ;;  %v5662_v17 = vmax.f32 %v5560_v48, 0.0 }
 0x5e1   : > { %v5665_v15 = vmax.f32 %v5571_v55, 0.0 }
 0x5e2   : > { %v5663_v0 = vmax.f32 %v5563_v34, 0.0 }
 0x5e3   : > { %v5691_v2 = vpack.c.bf16 %v5665_v15, %v5664_v36 }
 0x5e4   : > { %v5690_v42 = vpack.c.bf16 %v5663_v0, %v5662_v17 }
 0x5e6   : > { %6700 = vmatprep.mubr.bf16.mxu1 %v5690_v42 }
 0x5e7   : > { %6701 = vmatmul.mubr.bf16.gmra.mrb[168].mxu1 %v5691_v2 }
 0x5ec   : > { %v6658_v45 = vpop.f32.mrb[140].mxu1 }
 0x5ed   : > { %v5584_v37 = vadd.f32 %v6658_v45, %v9543_v16  ;;  %v5575_v39 = vpop.f32.mrb[141].mxu1 }
 0x5ee   : > { %v5576_v28 = vadd.f32 %v9543_v16, %v5575_v39  ;;  %v6659_v30 = vpop.f32.mrb[142].mxu1 }
 0x5ef   : > { %v5587_v26 = vadd.f32 %v6659_v30, %v9543_v16  ;;  %v5578_v32 = vpop.f32.mrb[143].mxu1  ;;  %v5668_v49 = vmax.f32 %v5584_v37, 0.0 }
 0x5f0   : > { %v5579_v47 = vadd.f32 %v9543_v16, %v5578_v32  ;;  %v5666_v56 = vmax.f32 %v5576_v28, 0.0 }
 0x5f1   : > { %v5669_v54 = vmax.f32 %v5587_v26, 0.0 }
 0x5f2   : > { %v5667_v62 = vmax.f32 %v5579_v47, 0.0  ;;  %v9581_v47 = vld [vmem:[%s9665_s10] ss:$0 sm:$0xff] }
 0x5f3   : > { %v5693_v1 = vpack.c.bf16 %v5669_v54, %v5668_v49 }
 0x5f4   : > { %v5692_v3 = vpack.c.bf16 %v5667_v62, %v5666_v56 }
 0x5f6   : > { %6704 = vmatprep.mubr.bf16.mxu1 %v5692_v3 }
 0x5f7   : > { %6705 = vmatmul.mubr.bf16.gmra.mrb[172].mxu1 %v5693_v1 }
 0x5fc   : > { %v6662_v4 = vpop.f32.mrb[144].mxu1 }
 0x5fd   : > { %v5600_v5 = vadd.f32 %v6662_v4, %v9543_v16  ;;  %v5591_v7 = vpop.f32.mrb[145].mxu1 }
 0x5fe   : > { %v5592_v11 = vadd.f32 %v9543_v16, %v5591_v7  ;;  %v6663_v12 = vpop.f32.mrb[146].mxu1 }
 0x5ff   : > { %v5603_v13 = vadd.f32 %v6663_v12, %v9543_v16  ;;  %v5594_v14 = vpop.f32.mrb[147].mxu1  ;;  %v5672_v19 = vmax.f32 %v5600_v5, 0.0 }
 0x600   : > { %v5595_v18 = vadd.f32 %v9543_v16, %v5594_v14  ;;  %v5670_v21 = vmax.f32 %v5592_v11, 0.0 }
 0x601   : > { %v5673_v20 = vmax.f32 %v5603_v13, 0.0 }
 0x602   : > { %v5671_v29 = vmax.f32 %v5595_v18, 0.0 }
 0x603   : > { %v5695_v35 = vpack.c.bf16 %v5673_v20, %v5672_v19 }
 0x604   : > { %v5694_v31 = vpack.c.bf16 %v5671_v29, %v5670_v21 }
 0x606   : > { %6708 = vmatprep.mubr.bf16.mxu1 %v5694_v31 }
 0x607   : > { %6709 = vmatmul.mubr.bf16.gmra.mrb[176].mxu1 %v5695_v35 }
 0x60c   : > { %v6666_v57 = vpop.f32.mrb[148].mxu1 }
 0x60d   : > { %v5616_v58 = vadd.f32 %v6666_v57, %v9543_v16  ;;  %v5607_v59 = vpop.f32.mrb[149].mxu1 }
 0x60e   : > { %v5608_v33 = vadd.f32 %v9543_v16, %v5607_v59  ;;  %v6667_v60 = vpop.f32.mrb[150].mxu1 }
 0x60f   : > { %v5619_v23 = vadd.f32 %v6667_v60, %v9543_v16  ;;  %v5610_v41 = vpop.f32.mrb[151].mxu1  ;;  %v5676_v24 = vmax.f32 %v5616_v58, 0.0 }
 0x610   : > { %v5611_v43 = vadd.f32 %v9543_v16, %v5610_v41  ;;  %v5674_v40 = vmax.f32 %v5608_v33, 0.0 }
 0x611   : > { %v5677_v38 = vmax.f32 %v5619_v23, 0.0 }
 0x612   : > { %v5675_v22 = vmax.f32 %v5611_v43, 0.0 }
 0x613   : > { %v5697_v63 = vpack.c.bf16 %v5677_v38, %v5676_v24 }
 0x614   : > { %v5696_v53 = vpack.c.bf16 %v5675_v22, %v5674_v40 }
 0x616   : > { %6712 = vmatprep.mubr.bf16.mxu1 %v5696_v53 }
 0x617   : > { %6713 = vmatmul.mubr.bf16.gmra.mrb[180].mxu1 %v5697_v63 }
 0x61c   : > { %v6670_v61 = vpop.f32.mrb[152].mxu1 }
 0x61d   : > { %v5632_v8 = vadd.f32 %v6670_v61, %v9543_v16  ;;  %v5623_v10 = vpop.f32.mrb[153].mxu1 }
 0x61e   : > { %v5624_v44 = vadd.f32 %v9543_v16, %v5623_v10  ;;  %v6671_v46 = vpop.f32.mrb[154].mxu1 }
 0x61f   : > { %v5635_v25 = vadd.f32 %v6671_v46, %v9543_v16  ;;  %v5626_v27 = vpop.f32.mrb[155].mxu1  ;;  %v5680_v9 = vmax.f32 %v5632_v8, 0.0 }
 0x620   : > { %v5627_v6 = vadd.f32 %v9543_v16, %v5626_v27  ;;  %v5678_v48 = vmax.f32 %v5624_v44, 0.0 }
 0x621   : > { %v5681_v52 = vmax.f32 %v5635_v25, 0.0 }
 0x622   : > { %v5679_v51 = vmax.f32 %v5627_v6, 0.0 }
 0x623   : > { %v5699_v55 = vpack.c.bf16 %v5681_v52, %v5680_v9 }
 0x624   : > { %v5698_v50 = vpack.c.bf16 %v5679_v51, %v5678_v48 }
 0x626   : > { %6716 = vmatprep.mubr.bf16.mxu1 %v5698_v50 }
 0x627   : > { %6717 = vmatmul.mubr.bf16.gmra.mrb[184].mxu1 %v5699_v55 }
 0x62c   : > { %v6674_v34 = vpop.f32.mrb[156].mxu1 }
 0x62d   : > { %v5648_v36 = vadd.f32 %v6674_v34, %v9543_v16  ;;  %v5639_v15 = vpop.f32.mrb[157].mxu1 }
 0x62e   : > { %v5640_v17 = vadd.f32 %v9543_v16, %v5639_v15  ;;  %v6675_v0 = vpop.f32.mrb[158].mxu1 }
 0x62f   : > { %v5651_v2 = vadd.f32 %v6675_v0, %v9543_v16  ;;  %v5642_v42 = vpop.f32.mrb[159].mxu1  ;;  %v5684_v37 = vmax.f32 %v5648_v36, 0.0 }
 0x630   : > { %v5643_v45 = vadd.f32 %v9543_v16, %v5642_v42  ;;  %v5682_v28 = vmax.f32 %v5640_v17, 0.0 }
 0x631   : > { %v5685_v39 = vmax.f32 %v5651_v2, 0.0 }
 0x632   : > { %v5683_v30 = vmax.f32 %v5643_v45, 0.0 }
 0x633   : > { %v5701_v26 = vpack.c.bf16 %v5685_v39, %v5684_v37 }
 0x634   : > { %v5700_v32 = vpack.c.bf16 %v5683_v30, %v5682_v28 }
 0x636   : > { %6720 = vmatprep.mubr.bf16.mxu1 %v5700_v32 }
 0x637   : > { %6721 = vmatmul.mubr.bf16.gmra.mrb[188].mxu1 %v5701_v26 }
 0x69a   : > { %v6694_v16 = vpop.f32.mrb[160].mxu1 }
 0x69b   : > { %v5816_v49 = vadd.f32 %v6694_v16, %v9581_v47  ;;  %v5807_v54 = vpop.f32.mrb[161].mxu1 }
 0x69c   : > { %v5808_v56 = vadd.f32 %v9581_v47, %v5807_v54  ;;  %v6695_v62 = vpop.f32.mrb[162].mxu1 }
 0x69d   : > { %5936 = vst [vmem:[%s9586_s21 + $0x10] sm:$0xff] %v5816_v49  ;;  %v5819_v1 = vadd.f32 %v6695_v62, %v9581_v47  ;;  %v5810_v3 = vpop.f32.mrb[163].mxu1 }
 0x69e   : > { %5934 = vst [vmem:[%s9586_s21] sm:$0xff] %v5808_v56  ;;  %v5811_v4 = vadd.f32 %v9581_v47, %v5810_v3 }
 0x69f   : > { %5937 = vst [vmem:[%s9586_s21 + $0x18] sm:$0xff] %v5819_v1 }
 0x6a0   : > { %5935 = vst [vmem:[%s9586_s21 + $0x8] sm:$0xff] %v5811_v4 }
 0x6aa   : > { %v6698_v5 = vpop.f32.mrb[164].mxu1 }
 0x6ab   : > { %v5832_v7 = vadd.f32 %v6698_v5, %v9581_v47  ;;  %v5823_v11 = vpop.f32.mrb[165].mxu1 }
 0x6ac   : > { %v5824_v12 = vadd.f32 %v9581_v47, %v5823_v11  ;;  %v6699_v13 = vpop.f32.mrb[166].mxu1 }
 0x6ad   : > { %5940 = vst [vmem:[%s9586_s21 + $0x30] sm:$0xff] %v5832_v7  ;;  %v5835_v14 = vadd.f32 %v6699_v13, %v9581_v47  ;;  %v5826_v18 = vpop.f32.mrb[167].mxu1 }
 0x6ae   : > { %5938 = vst [vmem:[%s9586_s21 + $0x20] sm:$0xff] %v5824_v12  ;;  %v5827_v19 = vadd.f32 %v9581_v47, %v5826_v18 }
 0x6af   : > { %5941 = vst [vmem:[%s9586_s21 + $0x38] sm:$0xff] %v5835_v14 }
 0x6b0   : > { %5939 = vst [vmem:[%s9586_s21 + $0x28] sm:$0xff] %v5827_v19 }
 0x6ba   : > { %v6702_v20 = vpop.f32.mrb[168].mxu1 }
 0x6bb   : > { %v5848_v21 = vadd.f32 %v6702_v20, %v9581_v47  ;;  %v5839_v29 = vpop.f32.mrb[169].mxu1 }
 0x6bc   : > { %v5840_v35 = vadd.f32 %v9581_v47, %v5839_v29  ;;  %v6703_v31 = vpop.f32.mrb[170].mxu1 }
 0x6bd   : > { %5944 = vst [vmem:[%s9586_s21 + $0x50] sm:$0xff] %v5848_v21  ;;  %v5851_v57 = vadd.f32 %v6703_v31, %v9581_v47  ;;  %v5842_v58 = vpop.f32.mrb[171].mxu1 }
 0x6be   : > { %5942 = vst [vmem:[%s9586_s21 + $0x40] sm:$0xff] %v5840_v35  ;;  %v5843_v59 = vadd.f32 %v9581_v47, %v5842_v58 }
 0x6bf   : > { %5945 = vst [vmem:[%s9586_s21 + $0x58] sm:$0xff] %v5851_v57 }
 0x6c0   : > { %5943 = vst [vmem:[%s9586_s21 + $0x48] sm:$0xff] %v5843_v59 }
 0x6ca   : > { %v6706_v33 = vpop.f32.mrb[172].mxu1 }
 0x6cb   : > { %v5864_v60 = vadd.f32 %v6706_v33, %v9581_v47  ;;  %v5855_v23 = vpop.f32.mrb[173].mxu1 }
 0x6cc   : > { %v5856_v41 = vadd.f32 %v9581_v47, %v5855_v23  ;;  %v6707_v43 = vpop.f32.mrb[174].mxu1 }
 0x6cd   : > { %5948 = vst [vmem:[%s9586_s21 + $0x70] sm:$0xff] %v5864_v60  ;;  %v5867_v24 = vadd.f32 %v6707_v43, %v9581_v47  ;;  %v5858_v38 = vpop.f32.mrb[175].mxu1 }
 0x6ce   : > { %5946 = vst [vmem:[%s9586_s21 + $0x60] sm:$0xff] %v5856_v41  ;;  %v5859_v40 = vadd.f32 %v9581_v47, %v5858_v38 }
 0x6cf   : > { %5949 = vst [vmem:[%s9586_s21 + $0x78] sm:$0xff] %v5867_v24 }
 0x6d0   : > { %5947 = vst [vmem:[%s9586_s21 + $0x68] sm:$0xff] %v5859_v40 }
 0x6da   : > { %v6710_v22 = vpop.f32.mrb[176].mxu1 }
 0x6db   : > { %v5880_v63 = vadd.f32 %v6710_v22, %v9581_v47  ;;  %v5871_v53 = vpop.f32.mrb[177].mxu1 }
 0x6dc   : > { %v5872_v61 = vadd.f32 %v9581_v47, %v5871_v53  ;;  %v6711_v8 = vpop.f32.mrb[178].mxu1 }
 0x6dd   : > { %5952 = vst [vmem:[%s9586_s21 + $0x90] sm:$0xff] %v5880_v63  ;;  %v5883_v10 = vadd.f32 %v6711_v8, %v9581_v47  ;;  %v5874_v44 = vpop.f32.mrb[179].mxu1 }
 0x6de   : > { %5950 = vst [vmem:[%s9586_s21 + $0x80] sm:$0xff] %v5872_v61  ;;  %v5875_v46 = vadd.f32 %v9581_v47, %v5874_v44 }
 0x6df   : > { %5953 = vst [vmem:[%s9586_s21 + $0x98] sm:$0xff] %v5883_v10 }
 0x6e0   : > { %5951 = vst [vmem:[%s9586_s21 + $0x88] sm:$0xff] %v5875_v46 }
 0x6ea   : > { %v6714_v25 = vpop.f32.mrb[180].mxu1 }
 0x6eb   : > { %v5896_v27 = vadd.f32 %v6714_v25, %v9581_v47  ;;  %v5887_v6 = vpop.f32.mrb[181].mxu1 }
 0x6ec   : > { %v5888_v9 = vadd.f32 %v9581_v47, %v5887_v6  ;;  %v6715_v52 = vpop.f32.mrb[182].mxu1 }
 0x6ed   : > { %5956 = vst [vmem:[%s9586_s21 + $0xb0] sm:$0xff] %v5896_v27  ;;  %v5899_v48 = vadd.f32 %v6715_v52, %v9581_v47  ;;  %v5890_v51 = vpop.f32.mrb[183].mxu1 }
 0x6ee   : > { %5954 = vst [vmem:[%s9586_s21 + $0xa0] sm:$0xff] %v5888_v9  ;;  %v5891_v55 = vadd.f32 %v9581_v47, %v5890_v51 }
 0x6ef   : > { %5957 = vst [vmem:[%s9586_s21 + $0xb8] sm:$0xff] %v5899_v48 }
 0x6f0   : > { %5955 = vst [vmem:[%s9586_s21 + $0xa8] sm:$0xff] %v5891_v55 }
 0x6fa   : > { %v6718_v50 = vpop.f32.mrb[184].mxu1 }
 0x6fb   : > { %v5912_v34 = vadd.f32 %v6718_v50, %v9581_v47  ;;  %v5903_v36 = vpop.f32.mrb[185].mxu1 }
 0x6fc   : > { %v5904_v15 = vadd.f32 %v9581_v47, %v5903_v36  ;;  %v6719_v17 = vpop.f32.mrb[186].mxu1 }
 0x6fd   : > { %5960 = vst [vmem:[%s9586_s21 + $0xd0] sm:$0xff] %v5912_v34  ;;  %v5915_v0 = vadd.f32 %v6719_v17, %v9581_v47  ;;  %v5906_v2 = vpop.f32.mrb[187].mxu1 }
 0x6fe   : > { %5958 = vst [vmem:[%s9586_s21 + $0xc0] sm:$0xff] %v5904_v15  ;;  %v5907_v42 = vadd.f32 %v9581_v47, %v5906_v2 }
 0x6ff   : > { %5961 = vst [vmem:[%s9586_s21 + $0xd8] sm:$0xff] %v5915_v0 }
 0x700   : > { %5959 = vst [vmem:[%s9586_s21 + $0xc8] sm:$0xff] %v5907_v42 }
 0x70a   : > { %v6722_v45 = vpop.f32.mrb[188].mxu1 }
 0x70b   : > { %v5928_v37 = vadd.f32 %v6722_v45, %v9581_v47  ;;  %v5919_v39 = vpop.f32.mrb[189].mxu1 }
 0x70c   : > { %v5920_v28 = vadd.f32 %v9581_v47, %v5919_v39  ;;  %v6723_v30 = vpop.f32.mrb[190].mxu1 }
 0x70d   : > { %5964 = vst [vmem:[%s9586_s21 + $0xf0] sm:$0xff] %v5928_v37  ;;  %v5931_v26 = vadd.f32 %v6723_v30, %v9581_v47  ;;  %v5922_v32 = vpop.f32.mrb[191].mxu1 }
 0x70e   : > { %5962 = vst [vmem:[%s9586_s21 + $0xe0] sm:$0xff] %v5920_v28  ;;  %v5923_v16 = vadd.f32 %v9581_v47, %v5922_v32 }
 0x70f   : > { %5965 = vst [vmem:[%s9586_s21 + $0xf8] sm:$0xff] %v5931_v26 }
 0x710   : > { %5963 = vst [vmem:[%s9586_s21 + $0xe8] sm:$0xff] %v5923_v16 }
 0x711 PF: > { %s21_s17 = sadd.s32 1, %s8004_s17  }
 0x712   : > { %p18_p4 = scmp.ge.s32.totalorder %s21_s17, 4  }
 0x714   :  { %20 = sbr.rel (!%p18_p4) target bundleno = 1 (0x1), region = 94 }

</bundles_post_ra>
